<compile_context>
chip_gen: v7x
topology: tpu7x:2x2x1
jax: 0.10.0
libtpu: 0.0.40
codegen_flags: <defaults>
</compile_context>

<pallas_src>
import functools

import jax
import jax.numpy as jnp
from jax import lax
from jax.experimental import pallas as pl
from jax.experimental.pallas import tpu as pltpu

_EPS = 1e-5
_ACT_DTYPE = jnp.bfloat16            # inter-layer activation / residual storage dtype
_VMEM_LIMIT = 48 * 1024 * 1024       # > 16/32 MiB scoped defaults, < v7x's 64 MiB physical


def _round_up(n, m):
    return ((n + m - 1) // m) * m


def _lane_pad_target():
    """Channel-dim padding multiple: MXU output width (256 on v6e/v7x, 128 lane width otherwise)."""
    try:
        kind = jax.devices()[0].device_kind.lower()
    except Exception:
        kind = ""
    return 256 if any(tag in kind for tag in ("v6", "v7", "7x")) else 128


# -------------------- single-buffering of resident operands (pl.Buffered) --------------------


def _probe_copy_kernel(x_ref, o_ref):
    o_ref[...] = x_ref[...]


@functools.lru_cache(maxsize=1)
def _resident_pipeline_mode():
    """pl.Buffered(1) for grid-invariant operands (weights / BN scale / shift) when supported."""
    if not hasattr(pl, "Buffered"):
        return None
    try:
        spec = pl.BlockSpec((8, 128), lambda i: (0, 0), pipeline_mode=pl.Buffered(1))
        fn = pl.pallas_call(
            _probe_copy_kernel,
            out_shape=jax.ShapeDtypeStruct((8, 128), jnp.float32),
            grid=(2,),
            in_specs=[spec],
            out_specs=pl.BlockSpec((8, 128), lambda i: (0, 0)),
        )
        jax.block_until_ready(fn(jnp.zeros((8, 128), jnp.float32)))
        return pl.Buffered(1)
    except Exception:
        return None


def _spec_resident(shape):
    """BlockSpec for an operand that stays resident across all grid steps (constant index map)."""
    index_map = lambda b: (0,) * len(shape)
    mode = _resident_pipeline_mode()
    if mode is not None:
        return pl.BlockSpec(shape, index_map, pipeline_mode=mode)
    return pl.BlockSpec(shape, index_map)


# ------------------------------------ fused conv kernel ------------------------------------


def _make_conv_bn_act_kernel(tap_bases, m_rows, relu, has_residual):
    """Conv (as tap-shifted GEMMs) + folded BN (+ residual add) + optional ReLU, one image per step.

    x_ref : (1, rows, Cin)        bf16  -- flattened, phase-decomposed, spatially padded slab
    w_ref : (n_taps, Cin, Cout)   bf16  -- per-tap weight matrices (resident)
    scale_ref / shift_ref : (1, Cout) f32 (resident, folded BatchNorm)
    r_ref : (1, m_rows, Cout)     bf16  -- optional residual (overlapped-row layout)
    o_ref : (1, m_rows, Cout)     bf16
    """

    def kernel(*refs):
        if has_residual:
            x_ref, w_ref, scale_ref, shift_ref, r_ref, o_ref = refs
        else:
            x_ref, w_ref, scale_ref, shift_ref, o_ref = refs
            r_ref = None
        cout = o_ref.shape[-1]
        acc = jnp.zeros((m_rows, cout), jnp.float32)
        # In-kernel tap loop: kh*kw contiguous-slice MXU matmuls with f32 accumulation.
        for t, base in enumerate(tap_bases):
            acc = acc + jnp.dot(
                x_ref[0, pl.ds(base, m_rows), :],
                w_ref[t],
                preferred_element_type=jnp.float32,
            )
        # f32 epilogue: BN affine (+ residual) (+ ReLU), single cast on the way out.
        y = acc * scale_ref[...] + shift_ref[...]
        if has_residual:
            y = y + r_ref[0].astype(jnp.float32)
        if relu:
            y = jnp.maximum(y, 0.0)
        o_ref[0] = y.astype(o_ref.dtype)

    return kernel


def _phase_split(x, s):
    """(B, Hp, Wp, C) -> (B, s*s*Hph, Wph, C): phase (a, b) holds x[:, a::s, b::s, :].

    Turns a strided conv into static contiguous in-kernel slices (no strided VMEM reads)."""
    if s == 1:
        return x, x.shape[1]
    B, Hp, Wp, C = x.shape
    hph, wph = -(-Hp // s), -(-Wp // s)
    x = jnp.pad(x, ((0, 0), (0, hph * s - Hp), (0, wph * s - Wp), (0, 0)))
    x = x.reshape(B, hph, s, wph, s, C)
    x = jnp.transpose(x, (0, 2, 4, 1, 3, 5))          # (B, sy, sx, hph, wph, C)
    return x.reshape(B, s * s * hph, wph, C), hph


def _to_overlapped_rows(r, ho, wo, wph, m_rows):
    """(B, Ho, Wo, C) -> (B, m_rows, C) with output (i, j) living at flattened row i*wph + j."""
    B, _, _, C = r.shape
    r = jnp.pad(r, ((0, 0), (0, 0), (0, wph - wo), (0, 0))).reshape(B, ho * wph, C)
    if m_rows > ho * wph:
        r = jnp.pad(r, ((0, 0), (0, m_rows - ho * wph), (0, 0)))
    return r[:, :m_rows, :]


def _from_overlapped_rows(y, ho, wo, wph):
    """(B, m_rows, C) -> (B, Ho, Wo, C), dropping the overlap garbage columns."""
    B, m_rows, C = y.shape
    full = ho * wph
    if m_rows < full:
        y = jnp.pad(y, ((0, 0), (0, full - m_rows), (0, 0)))
    else:
        y = y[:, :full, :]
    return y.reshape(B, ho, wph, C)[:, :, :wo, :]


def conv_bn_act_pallas(x, w_taps, scale, shift, *, kh, kw, stride, padding,
                       residual=None, relu=True):
    """Fused Conv2d(bias=False) + eval-mode BN (+ residual add) + optional ReLU, one pallas_call.

    x:        (B, H, W, Cin)      bf16, channel dim already lane/MXU padded
    w_taps:   (kh*kw, Cin, Cout)  bf16
    scale:    (1, Cout) f32,  shift: (1, Cout) f32   (folded BatchNorm)
    residual: (B, Ho, Wo, Cout)   bf16 or None
    returns   (B, Ho, Wo, Cout)   bf16
    """
    if kh == 1 and kw == 1 and stride > 1:
        # 1x1 strided conv == spatial subsample + 1x1 conv (cheap XLA slice in the wrapper).
        x = x[:, ::stride, ::stride, :]
        stride = 1
    B, H, W, cin = x.shape
    cout = w_taps.shape[-1]
    ho = (H + 2 * padding - kh) // stride + 1
    wo = (W + 2 * padding - kw) // stride + 1
    if padding:
        x = jnp.pad(x, ((0, 0), (padding, padding), (padding, padding), (0, 0)))

    x_ph, hph = _phase_split(x, stride)               # (B, s*s*hph, wph, C)
    wph = x_ph.shape[2]
    x2 = x_ph.reshape(B, -1, cin)                     # row index = (phase*hph + u)*wph + v

    # Overlapped-rows GEMM: output (i, j) lives at flattened row i*wph + j; every tap is a
    # contiguous (m_rows, Cin) slice of x2 at a static base offset -> no in-kernel reshapes.
    m_rows = _round_up((ho - 1) * wph + wo, 8)        # sublane-aligned -> unmasked stores
    tap_bases = []
    for ky in range(kh):
        for kx in range(kw):
            phase = (ky % stride) * stride + (kx % stride)
            tap_bases.append((phase * hph + ky // stride) * wph + kx // stride)
    rows_needed = max(tap_bases) + m_rows
    if rows_needed > x2.shape[1]:
        x2 = jnp.pad(x2, ((0, 0), (0, rows_needed - x2.shape[1]), (0, 0)))
    rows = x2.shape[1]

    in_specs = [
        pl.BlockSpec((1, rows, cin), lambda b: (b, 0, 0)),    # per-image activation slab
        _spec_resident((kh * kw, cin, cout)),                 # weights, resident across steps
        _spec_resident((1, cout)),                            # bn scale, resident
        _spec_resident((1, cout)),                            # bn shift, resident
    ]
    args = [x2, w_taps, scale, shift]
    if residual is not None:
        res2 = _to_overlapped_rows(residual, ho, wo, wph, m_rows)
        in_specs.append(pl.BlockSpec((1, m_rows, cout), lambda b: (b, 0, 0)))
        args.append(res2)

    kernel = _make_conv_bn_act_kernel(tuple(tap_bases), m_rows, relu, residual is not None)

    bytes_accessed = (
        x2.size * x2.dtype.itemsize
        + w_taps.size * w_taps.dtype.itemsize
        + 2 * cout * 4
        + (0 if residual is None else residual.size * residual.dtype.itemsize)
        + B * m_rows * cout * 2
    )
    cost = pl.CostEstimate(
        flops=2 * B * m_rows * kh * kw * cin * cout,
        transcendentals=0,
        bytes_accessed=int(bytes_accessed),
    )

    # TODO(synk): for very large late-stage layers on v7x (64 MiB VMEM), add a Cin/Cout-tiling grid
    #             axis (marked "arbitrary") with a pl.when-guarded accumulator instead of keeping the
    #             full (kh*kw, Cin, Cout) weight resident.
    # TODO(synk): B == 1 leaves one v7x TensorCore idle; split the grid over output rows (haloed
    #             manual DMA) in that case.
    out = pl.pallas_call(
        kernel,
        out_shape=jax.ShapeDtypeStruct((B, m_rows, cout), x.dtype),
        grid=(B,),
        in_specs=in_specs,
        out_specs=pl.BlockSpec((1, m_rows, cout), lambda b: (b, 0, 0)),
        compiler_params=pltpu.CompilerParams(
            dimension_semantics=("parallel",),     # images are independent (megacore on v7x)
            vmem_limit_bytes=_VMEM_LIMIT,
        ),
        cost_estimate=cost,
    )(*args)
    return _from_overlapped_rows(out, ho, wo, wph)


# ---------------------------------------- BlockGroup ----------------------------------------


def residual_block_forward(x, p):
    # left branch: conv3x3(stride) -> bn -> relu   (one fused kernel)
    h = conv_bn_act_pallas(x, p["w1"], p["s1"], p["t1"],
                           kh=3, kw=3, stride=p["stride"], padding=1, relu=True)
    # right branch: 1x1-conv(stride) + bn when first_stride > 1, else identity
    if p["stride"] > 1:
        skip = conv_bn_act_pallas(x, p["wd"], p["sd"], p["td"],
                                  kh=1, kw=1, stride=p["stride"], padding=0, relu=False)
    else:
        skip = x
    # second conv fuses bn2 + residual add + final relu
    return conv_bn_act_pallas(h, p["w2"], p["s2"], p["t2"],
                              kh=3, kw=3, stride=1, padding=1, residual=skip, relu=True)


def block_group_forward(x_nchw, prepared):
    """x: (B, in_feats, H, W) f32 -> (B, out_feats, H/first_stride, W/first_stride) f32."""
    x = jnp.transpose(x_nchw, (0, 2, 3, 1))                      # NCHW -> NHWC (channels on lanes)
    pad_c = prepared["cin_pad"] - x.shape[-1]
    x = jnp.pad(x, ((0, 0), (0, 0), (0, 0), (0, pad_c))).astype(_ACT_DTYPE)
    for p in prepared["blocks"]:
        x = residual_block_forward(x, p)
    x = x[..., : prepared["out_feats"]].astype(jnp.float32)      # strip channel padding
    return jnp.transpose(x, (0, 3, 1, 2))                        # back to NCHW


# ---------------------------------- params / preparation ----------------------------------


def _fold_bn(gamma, beta, mean, var, eps=_EPS):
    scale = gamma / jnp.sqrt(var + eps)
    shift = beta - mean * scale
    return scale.reshape(1, -1), shift.reshape(1, -1)


def _prep_conv_bn(w, bn, lane, dtype):
    """torch-layout (Cout,Cin,kh,kw) weights + raw BN -> per-tap bf16 weights + padded f32 scale/shift."""
    cout, cin, kh, kw = w.shape
    cin_p, cout_p = _round_up(cin, lane), _round_up(cout, lane)
    wt = jnp.transpose(w, (2, 3, 1, 0)).reshape(kh * kw, cin, cout)
    wt = jnp.pad(wt, ((0, 0), (0, cin_p - cin), (0, cout_p - cout))).astype(dtype)
    scale, shift = _fold_bn(*bn)
    scale = jnp.pad(scale, ((0, 0), (0, cout_p - cout)), constant_values=1.0).astype(jnp.float32)
    shift = jnp.pad(shift, ((0, 0), (0, cout_p - cout))).astype(jnp.float32)
    return wt, scale, shift


def prepare_block_group_params(params, dtype=_ACT_DTYPE):
    """One-time prep: fold BN, transpose/pad/cast weights (no per-forward transposes or BN folds)."""
    _resident_pipeline_mode()      # run the pl.Buffered(1) probe eagerly (outside any jit trace)
    lane = _lane_pad_target()
    blocks = []
    for p in params:
        q = {"stride": p["stride"]}
        q["w1"], q["s1"], q["t1"] = _prep_conv_bn(p["w1"], p["bn1"], lane, dtype)
        q["w2"], q["s2"], q["t2"] = _prep_conv_bn(p["w2"], p["bn2"], lane, dtype)
        if p["stride"] > 1:
            q["wd"], q["sd"], q["td"] = _prep_conv_bn(p["wd"], p["bnd"], lane, dtype)
        blocks.append(q)
    in_feats = params[0]["w1"].shape[1]
    out_feats = params[0]["w1"].shape[0]
    return {
        "blocks": blocks,
        "out_feats": out_feats,
        "cin_pad": _round_up(in_feats, lane),
    }


def init_block_group_params(key, n_blocks, in_feats, out_feats, first_stride):
    def conv_w(k, co, ci, ks):
        lim = 1.0 / float(ci * ks * ks) ** 0.5
        return jax.random.uniform(k, (co, ci, ks, ks), jnp.float32, minval=-lim, maxval=lim)

    def bn_raw(k, c):
        k1, k2, k3, k4 = jax.random.split(k, 4)
        gamma = jax.random.uniform(k1, (c,), jnp.float32, minval=0.5, maxval=1.5)
        beta = 0.1 * jax.random.normal(k2, (c,), jnp.float32)
        mean = 0.1 * jax.random.normal(k3, (c,), jnp.float32)
        var = jax.random.uniform(k4, (c,), jnp.float32, minval=0.5, maxval=1.5)
        return gamma, beta, mean, var

    params = []
    for i in range(n_blocks):
        cin = in_feats if i == 0 else out_feats
        stride = first_stride if i == 0 else 1
        key, k1, k2, k3, k4, k5, k6 = jax.random.split(key, 7)
        p = {"stride": stride}
        p["w1"] = conv_w(k1, out_feats, cin, 3)
        p["bn1"] = bn_raw(k2, out_feats)
        p["w2"] = conv_w(k3, out_feats, out_feats, 3)
        p["bn2"] = bn_raw(k4, out_feats)
        if stride > 1:
            p["wd"] = conv_w(k5, out_feats, cin, 1)
            p["bnd"] = bn_raw(k6, out_feats)
        params.append(p)
    return params


# --------------------------------------- reference ---------------------------------------


def block_group_reference(x_nchw, params, act_dtype=jnp.float32):
    """Plain-JAX reference (eval-mode BN).  act_dtype=bfloat16 mirrors the kernel's bf16
    activation/weight storage with f32 accumulation; act_dtype=float32 is the exact reference."""

    def conv(y, w, stride, padding):
        return lax.conv_general_dilated(
            y.astype(act_dtype), jnp.transpose(w, (2, 3, 1, 0)).astype(act_dtype),
            (stride, stride), ((padding, padding), (padding, padding)),
            dimension_numbers=("NHWC", "HWIO", "NHWC"),
            preferred_element_type=jnp.float32)

    def bn(y, bnp):
        g, b, m, v = bnp
        return (y - m) / jnp.sqrt(v + _EPS) * g + b

    x = jnp.transpose(x_nchw, (0, 2, 3, 1)).astype(act_dtype)
    for p in params:
        h = jnp.maximum(bn(conv(x, p["w1"], p["stride"], 1), p["bn1"]), 0.0).astype(act_dtype)
        if p["stride"] > 1:
            skip = bn(conv(x, p["wd"], p["stride"], 0), p["bnd"]).astype(act_dtype)
        else:
            skip = x
        h2 = bn(conv(h, p["w2"], 1, 1), p["bn2"])
        x = jnp.maximum(h2 + skip.astype(jnp.float32), 0.0).astype(act_dtype)
    return jnp.transpose(x.astype(jnp.float32), (0, 3, 1, 2))


# ------------------------------------------ main ------------------------------------------


if __name__ == "__main__":
    key = jax.random.PRNGKey(0)
    kx, kp = jax.random.split(key)

    B, Cin, H, W = 2, 4, 16, 16
    n_blocks, Cout, first_stride = 2, 8, 2

    x = jax.random.normal(kx, (B, Cin, H, W), jnp.float32)
    params = init_block_group_params(kp, n_blocks, Cin, Cout, first_stride)
    prepared = prepare_block_group_params(params)

    fwd = jax.jit(lambda xx: block_group_forward(xx, prepared))
    out = jax.block_until_ready(fwd(x))

    assert out.shape == (B, Cout, H // first_stride, W // first_stride), out.shape

    # bf16-matched reference (same cast points as the kernel pipeline) -> tight tolerance.
    ref_bf16 = block_group_reference(x, params, act_dtype=jnp.bfloat16)
    err_b = float(jnp.max(jnp.abs(out - ref_bf16)))
    assert err_b < 5e-2, f"mismatch vs bf16-matched reference: {err_b}"

    # full-f32 reference -> loose sanity bound (difference is the bf16 activation quantization).
    ref_f32 = block_group_reference(x, params, act_dtype=jnp.float32)
    err_f = float(jnp.max(jnp.abs(out - ref_f32)))
    assert err_f < 2e-1, f"mismatch vs f32 reference: {err_f}"

    print("KERNEL_OK")
</pallas_src>

<mosaic_0001>
module attributes {stable_mosaic.version = 11 : i64} {
  func.func @_probe_copy_kernel(%arg0: i32, %arg1: memref<8x128xf32, #tpu.memory_space<vmem>>, %arg2: memref<8x128xf32, #tpu.memory_space<vmem>>) attributes {dimension_semantics = [#tpu.dimension_semantics<arbitrary>], iteration_bounds = array<i64: 2>, scalar_prefetch = 0 : i64, scratch_operands = 0 : i64, tpu.core_type = #tpu.core_type<tc>, window_params = [{pipeline_mode = #tpu.pipeline_mode<synchronous>, transform_indices = @transform_0, window_bounds = array<i64: 8, 128>}, {pipeline_mode = #tpu.pipeline_mode<synchronous>, transform_indices = @transform_1, window_bounds = array<i64: 8, 128>}]} {
    %c0 = arith.constant 0 : index
    %c0_0 = arith.constant 0 : index
    %0 = vector.load %arg1[%c0, %c0_0] : memref<8x128xf32, #tpu.memory_space<vmem>>, vector<8x128xf32>
    %c0_1 = arith.constant 0 : index
    %c0_2 = arith.constant 0 : index
    %1 = vector.load %arg2[%c0_1, %c0_2] : memref<8x128xf32, #tpu.memory_space<vmem>>, vector<8x128xf32>
    tpu.vector_store %arg2[%c0_1, %c0_2], %0 {strides = array<i32>} : memref<8x128xf32, #tpu.memory_space<vmem>>, vector<8x128xf32>,
    return
  }
  func.func @transform_0(%arg0: i32) -> (i32, i32) {
    %c0_i32 = arith.constant 0 : i32
    %c0_i32_0 = arith.constant 0 : i32
    %c0_i32_1 = arith.constant 0 : i32
    return %c0_i32, %c0_i32_0 : i32, i32
  }
  func.func @transform_1(%arg0: i32) -> (i32, i32) {
    %c0_i32 = arith.constant 0 : i32
    %c0_i32_0 = arith.constant 0 : i32
    %c0_i32_1 = arith.constant 0 : i32
    return %c0_i32, %c0_i32_0 : i32, i32
  }
}

module attributes {stable_mosaic.version = 11 : i64} {
  func.func @kernel(%arg0: i32, %arg1: memref<1x324x128xbf16, #tpu.memory_space<vmem>>, %arg2: memref<9x128x128xbf16, #tpu.memory_space<vmem>>, %arg3: memref<1x128xf32, #tpu.memory_space<vmem>>, %arg4: memref<1x128xf32, #tpu.memory_space<vmem>>, %arg5: memref<1x72x128xbf16, #tpu.memory_space<vmem>>) attributes {dimension_semantics = [#tpu.dimension_semantics<parallel>], iteration_bounds = array<i64: 2>, scalar_prefetch = 0 : i64, scratch_operands = 0 : i64, tpu.core_type = #tpu.core_type<tc>, window_params = [{transform_indices = @transform_0, window_bounds = array<i64: 1, 324, 128>}, {pipeline_mode = #tpu.pipeline_mode<synchronous>, transform_indices = @transform_1, window_bounds = array<i64: 9, 128, 128>}, {pipeline_mode = #tpu.pipeline_mode<synchronous>, transform_indices = @transform_2, window_bounds = array<i64: 1, 128>}, {pipeline_mode = #tpu.pipeline_mode<synchronous>, transform_indices = @transform_3, window_bounds = array<i64: 1, 128>}, {transform_indices = @transform_4, window_bounds = array<i64: 1, 72, 128>}]} {
    %cst = arith.constant 0.000000e+00 : f32
    %0 = vector.broadcast %cst : f32 to vector<72x128xf32>
    %c0 = arith.constant 0 : index
    %c0_0 = arith.constant 0 : index
    %c0_1 = arith.constant 0 : index
    %1 = vector.load %arg1[%c0, %c0_0, %c0_1] : memref<1x324x128xbf16, #tpu.memory_space<vmem>>, vector<1x72x128xbf16>
    %2 = vector.shape_cast %1 : vector<1x72x128xbf16> to vector<72x128xbf16>
    %c0_2 = arith.constant 0 : index
    %c0_3 = arith.constant 0 : index
    %c0_4 = arith.constant 0 : index
    %3 = vector.load %arg2[%c0_2, %c0_3, %c0_4] : memref<9x128x128xbf16, #tpu.memory_space<vmem>>, vector<1x128x128xbf16>
    %4 = vector.shape_cast %3 : vector<1x128x128xbf16> to vector<128x128xbf16>
    %cst_5 = arith.constant dense<0.000000e+00> : vector<72x128xf32>
    %5 = tpu.matmul %2, %4, %cst_5 {dimension_numbers = #tpu.dot_dimension_numbers<[1], [0], [0], [1], [0, 0, 1, 1], [], []>} : vector<72x128xbf16>, vector<128x128xbf16>, vector<72x128xf32> -> vector<72x128xf32>
    %6 = arith.addf %0, %5 : vector<72x128xf32>
    %c0_6 = arith.constant 0 : index
    %c81 = arith.constant 81 : index
    %c0_7 = arith.constant 0 : index
    %7 = vector.load %arg1[%c0_6, %c81, %c0_7] : memref<1x324x128xbf16, #tpu.memory_space<vmem>>, vector<1x72x128xbf16>
    %8 = vector.shape_cast %7 : vector<1x72x128xbf16> to vector<72x128xbf16>
    %c1 = arith.constant 1 : index
    %c0_8 = arith.constant 0 : index
    %c0_9 = arith.constant 0 : index
    %9 = vector.load %arg2[%c1, %c0_8, %c0_9] : memref<9x128x128xbf16, #tpu.memory_space<vmem>>, vector<1x128x128xbf16>
    %10 = vector.shape_cast %9 : vector<1x128x128xbf16> to vector<128x128xbf16>
    %cst_10 = arith.constant dense<0.000000e+00> : vector<72x128xf32>
    %11 = tpu.matmul %8, %10, %cst_10 {dimension_numbers = #tpu.dot_dimension_numbers<[1], [0], [0], [1], [0, 0, 1, 1], [], []>} : vector<72x128xbf16>, vector<128x128xbf16>, vector<72x128xf32> -> vector<72x128xf32>
    %12 = arith.addf %6, %11 : vector<72x128xf32>
    %c0_11 = arith.constant 0 : index
    %c1_12 = arith.constant 1 : index
    %c0_13 = arith.constant 0 : index
    %13 = vector.load %arg1[%c0_11, %c1_12, %c0_13] : memref<1x324x128xbf16, #tpu.memory_space<vmem>>, vector<1x72x128xbf16>
    %14 = vector.shape_cast %13 : vector<1x72x128xbf16> to vector<72x128xbf16>
    %c2 = arith.constant 2 : index
    %c0_14 = arith.constant 0 : index
    %c0_15 = arith.constant 0 : index
    %15 = vector.load %arg2[%c2, %c0_14, %c0_15] : memref<9x128x128xbf16, #tpu.memory_space<vmem>>, vector<1x128x128xbf16>
    %16 = vector.shape_cast %15 : vector<1x128x128xbf16> to vector<128x128xbf16>
    %cst_16 = arith.constant dense<0.000000e+00> : vector<72x128xf32>
    %17 = tpu.matmul %14, %16, %cst_16 {dimension_numbers = #tpu.dot_dimension_numbers<[1], [0], [0], [1], [0, 0, 1, 1], [], []>} : vector<72x128xbf16>, vector<128x128xbf16>, vector<72x128xf32> -> vector<72x128xf32>
    %18 = arith.addf %12, %17 : vector<72x128xf32>
    %c0_17 = arith.constant 0 : index
    %c162 = arith.constant 162 : index
    %c0_18 = arith.constant 0 : index
    %19 = vector.load %arg1[%c0_17, %c162, %c0_18] : memref<1x324x128xbf16, #tpu.memory_space<vmem>>, vector<1x72x128xbf16>
    %20 = vector.shape_cast %19 : vector<1x72x128xbf16> to vector<72x128xbf16>
    %c3 = arith.constant 3 : index
    %c0_19 = arith.constant 0 : index
    %c0_20 = arith.constant 0 : index
    %21 = vector.load %arg2[%c3, %c0_19, %c0_20] : memref<9x128x128xbf16, #tpu.memory_space<vmem>>, vector<1x128x128xbf16>
    %22 = vector.shape_cast %21 : vector<1x128x128xbf16> to vector<128x128xbf16>
    %cst_21 = arith.constant dense<0.000000e+00> : vector<72x128xf32>
    %23 = tpu.matmul %20, %22, %cst_21 {dimension_numbers = #tpu.dot_dimension_numbers<[1], [0], [0], [1], [0, 0, 1, 1], [], []>} : vector<72x128xbf16>, vector<128x128xbf16>, vector<72x128xf32> -> vector<72x128xf32>
    %24 = arith.addf %18, %23 : vector<72x128xf32>
    %c0_22 = arith.constant 0 : index
    %c243 = arith.constant 243 : index
    %c0_23 = arith.constant 0 : index
    %25 = vector.load %arg1[%c0_22, %c243, %c0_23] : memref<1x324x128xbf16, #tpu.memory_space<vmem>>, vector<1x72x128xbf16>
    %26 = vector.shape_cast %25 : vector<1x72x128xbf16> to vector<72x128xbf16>
    %c4 = arith.constant 4 : index
    %c0_24 = arith.constant 0 : index
    %c0_25 = arith.constant 0 : index
    %27 = vector.load %arg2[%c4, %c0_24, %c0_25] : memref<9x128x128xbf16, #tpu.memory_space<vmem>>, vector<1x128x128xbf16>
    %28 = vector.shape_cast %27 : vector<1x128x128xbf16> to vector<128x128xbf16>
    %cst_26 = arith.constant dense<0.000000e+00> : vector<72x128xf32>
    %29 = tpu.matmul %26, %28, %cst_26 {dimension_numbers = #tpu.dot_dimension_numbers<[1], [0], [0], [1], [0, 0, 1, 1], [], []>} : vector<72x128xbf16>, vector<128x128xbf16>, vector<72x128xf32> -> vector<72x128xf32>
    %30 = arith.addf %24, %29 : vector<72x128xf32>
    %c0_27 = arith.constant 0 : index
    %c163 = arith.constant 163 : index
    %c0_28 = arith.constant 0 : index
    %31 = vector.load %arg1[%c0_27, %c163, %c0_28] : memref<1x324x128xbf16, #tpu.memory_space<vmem>>, vector<1x72x128xbf16>
    %32 = vector.shape_cast %31 : vector<1x72x128xbf16> to vector<72x128xbf16>
    %c5 = arith.constant 5 : index
    %c0_29 = arith.constant 0 : index
    %c0_30 = arith.constant 0 : index
    %33 = vector.load %arg2[%c5, %c0_29, %c0_30] : memref<9x128x128xbf16, #tpu.memory_space<vmem>>, vector<1x128x128xbf16>
    %34 = vector.shape_cast %33 : vector<1x128x128xbf16> to vector<128x128xbf16>
    %cst_31 = arith.constant dense<0.000000e+00> : vector<72x128xf32>
    %35 = tpu.matmul %32, %34, %cst_31 {dimension_numbers = #tpu.dot_dimension_numbers<[1], [0], [0], [1], [0, 0, 1, 1], [], []>} : vector<72x128xbf16>, vector<128x128xbf16>, vector<72x128xf32> -> vector<72x128xf32>
    %36 = arith.addf %30, %35 : vector<72x128xf32>
    %c0_32 = arith.constant 0 : index
    %c9 = arith.constant 9 : index
    %c0_33 = arith.constant 0 : index
    %37 = vector.load %arg1[%c0_32, %c9, %c0_33] : memref<1x324x128xbf16, #tpu.memory_space<vmem>>, vector<1x72x128xbf16>
    %38 = vector.shape_cast %37 : vector<1x72x128xbf16> to vector<72x128xbf16>
    %c6 = arith.constant 6 : index
    %c0_34 = arith.constant 0 : index
    %c0_35 = arith.constant 0 : index
    %39 = vector.load %arg2[%c6, %c0_34, %c0_35] : memref<9x128x128xbf16, #tpu.memory_space<vmem>>, vector<1x128x128xbf16>
    %40 = vector.shape_cast %39 : vector<1x128x128xbf16> to vector<128x128xbf16>
    %cst_36 = arith.constant dense<0.000000e+00> : vector<72x128xf32>
    %41 = tpu.matmul %38, %40, %cst_36 {dimension_numbers = #tpu.dot_dimension_numbers<[1], [0], [0], [1], [0, 0, 1, 1], [], []>} : vector<72x128xbf16>, vector<128x128xbf16>, vector<72x128xf32> -> vector<72x128xf32>
    %42 = arith.addf %36, %41 : vector<72x128xf32>
    %c0_37 = arith.constant 0 : index
    %c90 = arith.constant 90 : index
    %c0_38 = arith.constant 0 : index
    %43 = vector.load %arg1[%c0_37, %c90, %c0_38] : memref<1x324x128xbf16, #tpu.memory_space<vmem>>, vector<1x72x128xbf16>
    %44 = vector.shape_cast %43 : vector<1x72x128xbf16> to vector<72x128xbf16>
    %c7 = arith.constant 7 : index
    %c0_39 = arith.constant 0 : index
    %c0_40 = arith.constant 0 : index
    %45 = vector.load %arg2[%c7, %c0_39, %c0_40] : memref<9x128x128xbf16, #tpu.memory_space<vmem>>, vector<1x128x128xbf16>
    %46 = vector.shape_cast %45 : vector<1x128x128xbf16> to vector<128x128xbf16>
    %cst_41 = arith.constant dense<0.000000e+00> : vector<72x128xf32>
    %47 = tpu.matmul %44, %46, %cst_41 {dimension_numbers = #tpu.dot_dimension_numbers<[1], [0], [0], [1], [0, 0, 1, 1], [], []>} : vector<72x128xbf16>, vector<128x128xbf16>, vector<72x128xf32> -> vector<72x128xf32>
    %48 = arith.addf %42, %47 : vector<72x128xf32>
    %c0_42 = arith.constant 0 : index
    %c10 = arith.constant 10 : index
    %c0_43 = arith.constant 0 : index
    %49 = vector.load %arg1[%c0_42, %c10, %c0_43] : memref<1x324x128xbf16, #tpu.memory_space<vmem>>, vector<1x72x128xbf16>
    %50 = vector.shape_cast %49 : vector<1x72x128xbf16> to vector<72x128xbf16>
    %c8 = arith.constant 8 : index
    %c0_44 = arith.constant 0 : index
    %c0_45 = arith.constant 0 : index
    %51 = vector.load %arg2[%c8, %c0_44, %c0_45] : memref<9x128x128xbf16, #tpu.memory_space<vmem>>, vector<1x128x128xbf16>
    %52 = vector.shape_cast %51 : vector<1x128x128xbf16> to vector<128x128xbf16>
    %cst_46 = arith.constant dense<0.000000e+00> : vector<72x128xf32>
    %53 = tpu.matmul %50, %52, %cst_46 {dimension_numbers = #tpu.dot_dimension_numbers<[1], [0], [0], [1], [0, 0, 1, 1], [], []>} : vector<72x128xbf16>, vector<128x128xbf16>, vector<72x128xf32> -> vector<72x128xf32>
    %54 = arith.addf %48, %53 : vector<72x128xf32>
    %c0_47 = arith.constant 0 : index
    %c0_48 = arith.constant 0 : index
    %55 = vector.load %arg3[%c0_47, %c0_48] : memref<1x128xf32, #tpu.memory_space<vmem>>, vector<1x128xf32>
    %56 = vector.broadcast %55 : vector<1x128xf32> to vector<72x128xf32>
    %57 = arith.mulf %54, %56 : vector<72x128xf32>
    %c0_49 = arith.constant 0 : index
    %c0_50 = arith.constant 0 : index
    %58 = vector.load %arg4[%c0_49, %c0_50] : memref<1x128xf32, #tpu.memory_space<vmem>>, vector<1x128xf32>
    %59 = vector.broadcast %58 : vector<1x128xf32> to vector<72x128xf32>
    %60 = arith.addf %57, %59 : vector<72x128xf32>
    %cst_51 = arith.constant 0.000000e+00 : f32
    %61 = vector.broadcast %cst_51 : f32 to vector<72x128xf32>
    %62 = arith.maximumf %60, %61 : vector<72x128xf32>
    %63 = arith.truncf %62 : vector<72x128xf32> to vector<72x128xbf16>
    %c0_52 = arith.constant 0 : index
    %c0_53 = arith.constant 0 : index
    %c0_54 = arith.constant 0 : index
    %64 = vector.load %arg5[%c0_52, %c0_53, %c0_54] : memref<1x72x128xbf16, #tpu.memory_space<vmem>>, vector<1x72x128xbf16>
    %65 = vector.shape_cast %64 : vector<1x72x128xbf16> to vector<72x128xbf16>
    %66 = vector.shape_cast %63 : vector<72x128xbf16> to vector<1x72x128xbf16>
    tpu.vector_store %arg5[%c0_52, %c0_53, %c0_54], %66 {strides = array<i32>} : memref<1x72x128xbf16, #tpu.memory_space<vmem>>, vector<1x72x128xbf16>,
    return
  }
  func.func @transform_0(%arg0: i32) -> (i32, i32, i32) {
    %c0_i32 = arith.constant 0 : i32
    %c0_i32_0 = arith.constant 0 : i32
    %c0_i32_1 = arith.constant 0 : i32
    return %arg0, %c0_i32, %c0_i32_0 : i32, i32, i32
  }
  func.func @transform_1(%arg0: i32) -> (i32, i32, i32) {
    %c0_i32 = arith.constant 0 : i32
    %c0_i32_0 = arith.constant 0 : i32
    %c0_i32_1 = arith.constant 0 : i32
    %c0_i32_2 = arith.constant 0 : i32
    return %c0_i32, %c0_i32_0, %c0_i32_1 : i32, i32, i32
  }
  func.func @transform_2(%arg0: i32) -> (i32, i32) {
    %c0_i32 = arith.constant 0 : i32
    %c0_i32_0 = arith.constant 0 : i32
    %c0_i32_1 = arith.constant 0 : i32
    return %c0_i32, %c0_i32_0 : i32, i32
  }
  func.func @transform_3(%arg0: i32) -> (i32, i32) {
    %c0_i32 = arith.constant 0 : i32
    %c0_i32_0 = arith.constant 0 : i32
    %c0_i32_1 = arith.constant 0 : i32
    return %c0_i32, %c0_i32_0 : i32, i32
  }
  func.func @transform_4(%arg0: i32) -> (i32, i32, i32) {
    %c0_i32 = arith.constant 0 : i32
    %c0_i32_0 = arith.constant 0 : i32
    %c0_i32_1 = arith.constant 0 : i32
    return %arg0, %c0_i32, %c0_i32_0 : i32, i32, i32
  }
}

module attributes {stable_mosaic.version = 11 : i64} {
  func.func @kernel(%arg0: i32, %arg1: memref<1x64x128xbf16, #tpu.memory_space<vmem>>, %arg2: memref<1x128x128xbf16, #tpu.memory_space<vmem>>, %arg3: memref<1x128xf32, #tpu.memory_space<vmem>>, %arg4: memref<1x128xf32, #tpu.memory_space<vmem>>, %arg5: memref<1x64x128xbf16, #tpu.memory_space<vmem>>) attributes {dimension_semantics = [#tpu.dimension_semantics<parallel>], iteration_bounds = array<i64: 2>, scalar_prefetch = 0 : i64, scratch_operands = 0 : i64, tpu.core_type = #tpu.core_type<tc>, window_params = [{transform_indices = @transform_0, window_bounds = array<i64: 1, 64, 128>}, {pipeline_mode = #tpu.pipeline_mode<synchronous>, transform_indices = @transform_1, window_bounds = array<i64: 1, 128, 128>}, {pipeline_mode = #tpu.pipeline_mode<synchronous>, transform_indices = @transform_2, window_bounds = array<i64: 1, 128>}, {pipeline_mode = #tpu.pipeline_mode<synchronous>, transform_indices = @transform_3, window_bounds = array<i64: 1, 128>}, {transform_indices = @transform_4, window_bounds = array<i64: 1, 64, 128>}]} {
    %cst = arith.constant 0.000000e+00 : f32
    %0 = vector.broadcast %cst : f32 to vector<64x128xf32>
    %c0 = arith.constant 0 : index
    %c0_0 = arith.constant 0 : index
    %c0_1 = arith.constant 0 : index
    %1 = vector.load %arg1[%c0, %c0_0, %c0_1] : memref<1x64x128xbf16, #tpu.memory_space<vmem>>, vector<1x64x128xbf16>
    %2 = vector.shape_cast %1 : vector<1x64x128xbf16> to vector<64x128xbf16>
    %c0_2 = arith.constant 0 : index
    %c0_3 = arith.constant 0 : index
    %c0_4 = arith.constant 0 : index
    %3 = vector.load %arg2[%c0_2, %c0_3, %c0_4] : memref<1x128x128xbf16, #tpu.memory_space<vmem>>, vector<1x128x128xbf16>
    %4 = vector.shape_cast %3 : vector<1x128x128xbf16> to vector<128x128xbf16>
    %cst_5 = arith.constant dense<0.000000e+00> : vector<64x128xf32>
    %5 = tpu.matmul %2, %4, %cst_5 {dimension_numbers = #tpu.dot_dimension_numbers<[1], [0], [0], [1], [0, 0, 1, 1], [], []>} : vector<64x128xbf16>, vector<128x128xbf16>, vector<64x128xf32> -> vector<64x128xf32>
    %6 = arith.addf %0, %5 : vector<64x128xf32>
    %c0_6 = arith.constant 0 : index
    %c0_7 = arith.constant 0 : index
    %7 = vector.load %arg3[%c0_6, %c0_7] : memref<1x128xf32, #tpu.memory_space<vmem>>, vector<1x128xf32>
    %8 = vector.broadcast %7 : vector<1x128xf32> to vector<64x128xf32>
    %9 = arith.mulf %6, %8 : vector<64x128xf32>
    %c0_8 = arith.constant 0 : index
    %c0_9 = arith.constant 0 : index
    %10 = vector.load %arg4[%c0_8, %c0_9] : memref<1x128xf32, #tpu.memory_space<vmem>>, vector<1x128xf32>
    %11 = vector.broadcast %10 : vector<1x128xf32> to vector<64x128xf32>
    %12 = arith.addf %9, %11 : vector<64x128xf32>
    %13 = arith.truncf %12 : vector<64x128xf32> to vector<64x128xbf16>
    %c0_10 = arith.constant 0 : index
    %c0_11 = arith.constant 0 : index
    %c0_12 = arith.constant 0 : index
    %14 = vector.load %arg5[%c0_10, %c0_11, %c0_12] : memref<1x64x128xbf16, #tpu.memory_space<vmem>>, vector<1x64x128xbf16>
    %15 = vector.shape_cast %14 : vector<1x64x128xbf16> to vector<64x128xbf16>
    %16 = vector.shape_cast %13 : vector<64x128xbf16> to vector<1x64x128xbf16>
    tpu.vector_store %arg5[%c0_10, %c0_11, %c0_12], %16 {strides = array<i32>} : memref<1x64x128xbf16, #tpu.memory_space<vmem>>, vector<1x64x128xbf16>,
    return
  }
  func.func @transform_0(%arg0: i32) -> (i32, i32, i32) {
    %c0_i32 = arith.constant 0 : i32
    %c0_i32_0 = arith.constant 0 : i32
    %c0_i32_1 = arith.constant 0 : i32
    return %arg0, %c0_i32, %c0_i32_0 : i32, i32, i32
  }
  func.func @transform_1(%arg0: i32) -> (i32, i32, i32) {
    %c0_i32 = arith.constant 0 : i32
    %c0_i32_0 = arith.constant 0 : i32
    %c0_i32_1 = arith.constant 0 : i32
    %c0_i32_2 = arith.constant 0 : i32
    return %c0_i32, %c0_i32_0, %c0_i32_1 : i32, i32, i32
  }
  func.func @transform_2(%arg0: i32) -> (i32, i32) {
    %c0_i32 = arith.constant 0 : i32
    %c0_i32_0 = arith.constant 0 : i32
    %c0_i32_1 = arith.constant 0 : i32
    return %c0_i32, %c0_i32_0 : i32, i32
  }
  func.func @transform_3(%arg0: i32) -> (i32, i32) {
    %c0_i32 = arith.constant 0 : i32
    %c0_i32_0 = arith.constant 0 : i32
    %c0_i32_1 = arith.constant 0 : i32
    return %c0_i32, %c0_i32_0 : i32, i32
  }
  func.func @transform_4(%arg0: i32) -> (i32, i32, i32) {
    %c0_i32 = arith.constant 0 : i32
    %c0_i32_0 = arith.constant 0 : i32
    %c0_i32_1 = arith.constant 0 : i32
    return %arg0, %c0_i32, %c0_i32_0 : i32, i32, i32
  }
}

module attributes {stable_mosaic.version = 11 : i64} {
  func.func @kernel(%arg0: i32, %arg1: memref<1x102x128xbf16, #tpu.memory_space<vmem>>, %arg2: memref<9x128x128xbf16, #tpu.memory_space<vmem>>, %arg3: memref<1x128xf32, #tpu.memory_space<vmem>>, %arg4: memref<1x128xf32, #tpu.memory_space<vmem>>, %arg5: memref<1x80x128xbf16, #tpu.memory_space<vmem>>, %arg6: memref<1x80x128xbf16, #tpu.memory_space<vmem>>) attributes {dimension_semantics = [#tpu.dimension_semantics<parallel>], iteration_bounds = array<i64: 2>, scalar_prefetch = 0 : i64, scratch_operands = 0 : i64, tpu.core_type = #tpu.core_type<tc>, window_params = [{transform_indices = @transform_0, window_bounds = array<i64: 1, 102, 128>}, {pipeline_mode = #tpu.pipeline_mode<synchronous>, transform_indices = @transform_1, window_bounds = array<i64: 9, 128, 128>}, {pipeline_mode = #tpu.pipeline_mode<synchronous>, transform_indices = @transform_2, window_bounds = array<i64: 1, 128>}, {pipeline_mode = #tpu.pipeline_mode<synchronous>, transform_indices = @transform_3, window_bounds = array<i64: 1, 128>}, {transform_indices = @transform_4, window_bounds = array<i64: 1, 80, 128>}, {transform_indices = @transform_5, window_bounds = array<i64: 1, 80, 128>}]} {
    %cst = arith.constant 0.000000e+00 : f32
    %0 = vector.broadcast %cst : f32 to vector<80x128xf32>
    %c0 = arith.constant 0 : index
    %c0_0 = arith.constant 0 : index
    %c0_1 = arith.constant 0 : index
    %1 = vector.load %arg1[%c0, %c0_0, %c0_1] : memref<1x102x128xbf16, #tpu.memory_space<vmem>>, vector<1x80x128xbf16>
    %2 = vector.shape_cast %1 : vector<1x80x128xbf16> to vector<80x128xbf16>
    %c0_2 = arith.constant 0 : index
    %c0_3 = arith.constant 0 : index
    %c0_4 = arith.constant 0 : index
    %3 = vector.load %arg2[%c0_2, %c0_3, %c0_4] : memref<9x128x128xbf16, #tpu.memory_space<vmem>>, vector<1x128x128xbf16>
    %4 = vector.shape_cast %3 : vector<1x128x128xbf16> to vector<128x128xbf16>
    %cst_5 = arith.constant dense<0.000000e+00> : vector<80x128xf32>
    %5 = tpu.matmul %2, %4, %cst_5 {dimension_numbers = #tpu.dot_dimension_numbers<[1], [0], [0], [1], [0, 0, 1, 1], [], []>} : vector<80x128xbf16>, vector<128x128xbf16>, vector<80x128xf32> -> vector<80x128xf32>
    %6 = arith.addf %0, %5 : vector<80x128xf32>
    %c0_6 = arith.constant 0 : index
    %c1 = arith.constant 1 : index
    %c0_7 = arith.constant 0 : index
    %7 = vector.load %arg1[%c0_6, %c1, %c0_7] : memref<1x102x128xbf16, #tpu.memory_space<vmem>>, vector<1x80x128xbf16>
    %8 = vector.shape_cast %7 : vector<1x80x128xbf16> to vector<80x128xbf16>
    %c1_8 = arith.constant 1 : index
    %c0_9 = arith.constant 0 : index
    %c0_10 = arith.constant 0 : index
    %9 = vector.load %arg2[%c1_8, %c0_9, %c0_10] : memref<9x128x128xbf16, #tpu.memory_space<vmem>>, vector<1x128x128xbf16>
    %10 = vector.shape_cast %9 : vector<1x128x128xbf16> to vector<128x128xbf16>
    %cst_11 = arith.constant dense<0.000000e+00> : vector<80x128xf32>
    %11 = tpu.matmul %8, %10, %cst_11 {dimension_numbers = #tpu.dot_dimension_numbers<[1], [0], [0], [1], [0, 0, 1, 1], [], []>} : vector<80x128xbf16>, vector<128x128xbf16>, vector<80x128xf32> -> vector<80x128xf32>
    %12 = arith.addf %6, %11 : vector<80x128xf32>
    %c0_12 = arith.constant 0 : index
    %c2 = arith.constant 2 : index
    %c0_13 = arith.constant 0 : index
    %13 = vector.load %arg1[%c0_12, %c2, %c0_13] : memref<1x102x128xbf16, #tpu.memory_space<vmem>>, vector<1x80x128xbf16>
    %14 = vector.shape_cast %13 : vector<1x80x128xbf16> to vector<80x128xbf16>
    %c2_14 = arith.constant 2 : index
    %c0_15 = arith.constant 0 : index
    %c0_16 = arith.constant 0 : index
    %15 = vector.load %arg2[%c2_14, %c0_15, %c0_16] : memref<9x128x128xbf16, #tpu.memory_space<vmem>>, vector<1x128x128xbf16>
    %16 = vector.shape_cast %15 : vector<1x128x128xbf16> to vector<128x128xbf16>
    %cst_17 = arith.constant dense<0.000000e+00> : vector<80x128xf32>
    %17 = tpu.matmul %14, %16, %cst_17 {dimension_numbers = #tpu.dot_dimension_numbers<[1], [0], [0], [1], [0, 0, 1, 1], [], []>} : vector<80x128xbf16>, vector<128x128xbf16>, vector<80x128xf32> -> vector<80x128xf32>
    %18 = arith.addf %12, %17 : vector<80x128xf32>
    %c0_18 = arith.constant 0 : index
    %c10 = arith.constant 10 : index
    %c0_19 = arith.constant 0 : index
    %19 = vector.load %arg1[%c0_18, %c10, %c0_19] : memref<1x102x128xbf16, #tpu.memory_space<vmem>>, vector<1x80x128xbf16>
    %20 = vector.shape_cast %19 : vector<1x80x128xbf16> to vector<80x128xbf16>
    %c3 = arith.constant 3 : index
    %c0_20 = arith.constant 0 : index
    %c0_21 = arith.constant 0 : index
    %21 = vector.load %arg2[%c3, %c0_20, %c0_21] : memref<9x128x128xbf16, #tpu.memory_space<vmem>>, vector<1x128x128xbf16>
    %22 = vector.shape_cast %21 : vector<1x128x128xbf16> to vector<128x128xbf16>
    %cst_22 = arith.constant dense<0.000000e+00> : vector<80x128xf32>
    %23 = tpu.matmul %20, %22, %cst_22 {dimension_numbers = #tpu.dot_dimension_numbers<[1], [0], [0], [1], [0, 0, 1, 1], [], []>} : vector<80x128xbf16>, vector<128x128xbf16>, vector<80x128xf32> -> vector<80x128xf32>
    %24 = arith.addf %18, %23 : vector<80x128xf32>
    %c0_23 = arith.constant 0 : index
    %c11 = arith.constant 11 : index
    %c0_24 = arith.constant 0 : index
    %25 = vector.load %arg1[%c0_23, %c11, %c0_24] : memref<1x102x128xbf16, #tpu.memory_space<vmem>>, vector<1x80x128xbf16>
    %26 = vector.shape_cast %25 : vector<1x80x128xbf16> to vector<80x128xbf16>
    %c4 = arith.constant 4 : index
    %c0_25 = arith.constant 0 : index
    %c0_26 = arith.constant 0 : index
    %27 = vector.load %arg2[%c4, %c0_25, %c0_26] : memref<9x128x128xbf16, #tpu.memory_space<vmem>>, vector<1x128x128xbf16>
    %28 = vector.shape_cast %27 : vector<1x128x128xbf16> to vector<128x128xbf16>
    %cst_27 = arith.constant dense<0.000000e+00> : vector<80x128xf32>
    %29 = tpu.matmul %26, %28, %cst_27 {dimension_numbers = #tpu.dot_dimension_numbers<[1], [0], [0], [1], [0, 0, 1, 1], [], []>} : vector<80x128xbf16>, vector<128x128xbf16>, vector<80x128xf32> -> vector<80x128xf32>
    %30 = arith.addf %24, %29 : vector<80x128xf32>
    %c0_28 = arith.constant 0 : index
    %c12 = arith.constant 12 : index
    %c0_29 = arith.constant 0 : index
    %31 = vector.load %arg1[%c0_28, %c12, %c0_29] : memref<1x102x128xbf16, #tpu.memory_space<vmem>>, vector<1x80x128xbf16>
    %32 = vector.shape_cast %31 : vector<1x80x128xbf16> to vector<80x128xbf16>
    %c5 = arith.constant 5 : index
    %c0_30 = arith.constant 0 : index
    %c0_31 = arith.constant 0 : index
    %33 = vector.load %arg2[%c5, %c0_30, %c0_31] : memref<9x128x128xbf16, #tpu.memory_space<vmem>>, vector<1x128x128xbf16>
    %34 = vector.shape_cast %33 : vector<1x128x128xbf16> to vector<128x128xbf16>
    %cst_32 = arith.constant dense<0.000000e+00> : vector<80x128xf32>
    %35 = tpu.matmul %32, %34, %cst_32 {dimension_numbers = #tpu.dot_dimension_numbers<[1], [0], [0], [1], [0, 0, 1, 1], [], []>} : vector<80x128xbf16>, vector<128x128xbf16>, vector<80x128xf32> -> vector<80x128xf32>
    %36 = arith.addf %30, %35 : vector<80x128xf32>
    %c0_33 = arith.constant 0 : index
    %c20 = arith.constant 20 : index
    %c0_34 = arith.constant 0 : index
    %37 = vector.load %arg1[%c0_33, %c20, %c0_34] : memref<1x102x128xbf16, #tpu.memory_space<vmem>>, vector<1x80x128xbf16>
    %38 = vector.shape_cast %37 : vector<1x80x128xbf16> to vector<80x128xbf16>
    %c6 = arith.constant 6 : index
    %c0_35 = arith.constant 0 : index
    %c0_36 = arith.constant 0 : index
    %39 = vector.load %arg2[%c6, %c0_35, %c0_36] : memref<9x128x128xbf16, #tpu.memory_space<vmem>>, vector<1x128x128xbf16>
    %40 = vector.shape_cast %39 : vector<1x128x128xbf16> to vector<128x128xbf16>
    %cst_37 = arith.constant dense<0.000000e+00> : vector<80x128xf32>
    %41 = tpu.matmul %38, %40, %cst_37 {dimension_numbers = #tpu.dot_dimension_numbers<[1], [0], [0], [1], [0, 0, 1, 1], [], []>} : vector<80x128xbf16>, vector<128x128xbf16>, vector<80x128xf32> -> vector<80x128xf32>
    %42 = arith.addf %36, %41 : vector<80x128xf32>
    %c0_38 = arith.constant 0 : index
    %c21 = arith.constant 21 : index
    %c0_39 = arith.constant 0 : index
    %43 = vector.load %arg1[%c0_38, %c21, %c0_39] : memref<1x102x128xbf16, #tpu.memory_space<vmem>>, vector<1x80x128xbf16>
    %44 = vector.shape_cast %43 : vector<1x80x128xbf16> to vector<80x128xbf16>
    %c7 = arith.constant 7 : index
    %c0_40 = arith.constant 0 : index
    %c0_41 = arith.constant 0 : index
    %45 = vector.load %arg2[%c7, %c0_40, %c0_41] : memref<9x128x128xbf16, #tpu.memory_space<vmem>>, vector<1x128x128xbf16>
    %46 = vector.shape_cast %45 : vector<1x128x128xbf16> to vector<128x128xbf16>
    %cst_42 = arith.constant dense<0.000000e+00> : vector<80x128xf32>
    %47 = tpu.matmul %44, %46, %cst_42 {dimension_numbers = #tpu.dot_dimension_numbers<[1], [0], [0], [1], [0, 0, 1, 1], [], []>} : vector<80x128xbf16>, vector<128x128xbf16>, vector<80x128xf32> -> vector<80x128xf32>
    %48 = arith.addf %42, %47 : vector<80x128xf32>
    %c0_43 = arith.constant 0 : index
    %c22 = arith.constant 22 : index
    %c0_44 = arith.constant 0 : index
    %49 = vector.load %arg1[%c0_43, %c22, %c0_44] : memref<1x102x128xbf16, #tpu.memory_space<vmem>>, vector<1x80x128xbf16>
    %50 = vector.shape_cast %49 : vector<1x80x128xbf16> to vector<80x128xbf16>
    %c8 = arith.constant 8 : index
    %c0_45 = arith.constant 0 : index
    %c0_46 = arith.constant 0 : index
    %51 = vector.load %arg2[%c8, %c0_45, %c0_46] : memref<9x128x128xbf16, #tpu.memory_space<vmem>>, vector<1x128x128xbf16>
    %52 = vector.shape_cast %51 : vector<1x128x128xbf16> to vector<128x128xbf16>
    %cst_47 = arith.constant dense<0.000000e+00> : vector<80x128xf32>
    %53 = tpu.matmul %50, %52, %cst_47 {dimension_numbers = #tpu.dot_dimension_numbers<[1], [0], [0], [1], [0, 0, 1, 1], [], []>} : vector<80x128xbf16>, vector<128x128xbf16>, vector<80x128xf32> -> vector<80x128xf32>
    %54 = arith.addf %48, %53 : vector<80x128xf32>
    %c0_48 = arith.constant 0 : index
    %c0_49 = arith.constant 0 : index
    %55 = vector.load %arg3[%c0_48, %c0_49] : memref<1x128xf32, #tpu.memory_space<vmem>>, vector<1x128xf32>
    %56 = vector.broadcast %55 : vector<1x128xf32> to vector<80x128xf32>
    %57 = arith.mulf %54, %56 : vector<80x128xf32>
    %c0_50 = arith.constant 0 : index
    %c0_51 = arith.constant 0 : index
    %58 = vector.load %arg4[%c0_50, %c0_51] : memref<1x128xf32, #tpu.memory_space<vmem>>, vector<1x128xf32>
    %59 = vector.broadcast %58 : vector<1x128xf32> to vector<80x128xf32>
    %60 = arith.addf %57, %59 : vector<80x128xf32>
    %c0_52 = arith.constant 0 : index
    %c0_53 = arith.constant 0 : index
    %c0_54 = arith.constant 0 : index
    %61 = vector.load %arg5[%c0_52, %c0_53, %c0_54] : memref<1x80x128xbf16, #tpu.memory_space<vmem>>, vector<1x80x128xbf16>
    %62 = vector.shape_cast %61 : vector<1x80x128xbf16> to vector<80x128xbf16>
    %63 = arith.extf %62 : vector<80x128xbf16> to vector<80x128xf32>
    %64 = arith.addf %60, %63 : vector<80x128xf32>
    %cst_55 = arith.constant 0.000000e+00 : f32
    %65 = vector.broadcast %cst_55 : f32 to vector<80x128xf32>
    %66 = arith.maximumf %64, %65 : vector<80x128xf32>
    %67 = arith.truncf %66 : vector<80x128xf32> to vector<80x128xbf16>
    %c0_56 = arith.constant 0 : index
    %c0_57 = arith.constant 0 : index
    %c0_58 = arith.constant 0 : index
    %68 = vector.load %arg6[%c0_56, %c0_57, %c0_58] : memref<1x80x128xbf16, #tpu.memory_space<vmem>>, vector<1x80x128xbf16>
    %69 = vector.shape_cast %68 : vector<1x80x128xbf16> to vector<80x128xbf16>
    %70 = vector.shape_cast %67 : vector<80x128xbf16> to vector<1x80x128xbf16>
    tpu.vector_store %arg6[%c0_56, %c0_57, %c0_58], %70 {strides = array<i32>} : memref<1x80x128xbf16, #tpu.memory_space<vmem>>, vector<1x80x128xbf16>,
    return
  }
  func.func @transform_0(%arg0: i32) -> (i32, i32, i32) {
    %c0_i32 = arith.constant 0 : i32
    %c0_i32_0 = arith.constant 0 : i32
    %c0_i32_1 = arith.constant 0 : i32
    return %arg0, %c0_i32, %c0_i32_0 : i32, i32, i32
  }
  func.func @transform_1(%arg0: i32) -> (i32, i32, i32) {
    %c0_i32 = arith.constant 0 : i32
    %c0_i32_0 = arith.constant 0 : i32
    %c0_i32_1 = arith.constant 0 : i32
    %c0_i32_2 = arith.constant 0 : i32
    return %c0_i32, %c0_i32_0, %c0_i32_1 : i32, i32, i32
  }
  func.func @transform_2(%arg0: i32) -> (i32, i32) {
    %c0_i32 = arith.constant 0 : i32
    %c0_i32_0 = arith.constant 0 : i32
    %c0_i32_1 = arith.constant 0 : i32
    return %c0_i32, %c0_i32_0 : i32, i32
  }
  func.func @transform_3(%arg0: i32) -> (i32, i32) {
    %c0_i32 = arith.constant 0 : i32
    %c0_i32_0 = arith.constant 0 : i32
    %c0_i32_1 = arith.constant 0 : i32
    return %c0_i32, %c0_i32_0 : i32, i32
  }
  func.func @transform_4(%arg0: i32) -> (i32, i32, i32) {
    %c0_i32 = arith.constant 0 : i32
    %c0_i32_0 = arith.constant 0 : i32
    %c0_i32_1 = arith.constant 0 : i32
    return %arg0, %c0_i32, %c0_i32_0 : i32, i32, i32
  }
  func.func @transform_5(%arg0: i32) -> (i32, i32, i32) {
    %c0_i32 = arith.constant 0 : i32
    %c0_i32_0 = arith.constant 0 : i32
    %c0_i32_1 = arith.constant 0 : i32
    return %arg0, %c0_i32, %c0_i32_0 : i32, i32, i32
  }
}

module attributes {stable_mosaic.version = 11 : i64} {
  func.func @kernel(%arg0: i32, %arg1: memref<1x102x128xbf16, #tpu.memory_space<vmem>>, %arg2: memref<9x128x128xbf16, #tpu.memory_space<vmem>>, %arg3: memref<1x128xf32, #tpu.memory_space<vmem>>, %arg4: memref<1x128xf32, #tpu.memory_space<vmem>>, %arg5: memref<1x80x128xbf16, #tpu.memory_space<vmem>>) attributes {dimension_semantics = [#tpu.dimension_semantics<parallel>], iteration_bounds = array<i64: 2>, scalar_prefetch = 0 : i64, scratch_operands = 0 : i64, tpu.core_type = #tpu.core_type<tc>, window_params = [{transform_indices = @transform_0, window_bounds = array<i64: 1, 102, 128>}, {pipeline_mode = #tpu.pipeline_mode<synchronous>, transform_indices = @transform_1, window_bounds = array<i64: 9, 128, 128>}, {pipeline_mode = #tpu.pipeline_mode<synchronous>, transform_indices = @transform_2, window_bounds = array<i64: 1, 128>}, {pipeline_mode = #tpu.pipeline_mode<synchronous>, transform_indices = @transform_3, window_bounds = array<i64: 1, 128>}, {transform_indices = @transform_4, window_bounds = array<i64: 1, 80, 128>}]} {
    %cst = arith.constant 0.000000e+00 : f32
    %0 = vector.broadcast %cst : f32 to vector<80x128xf32>
    %c0 = arith.constant 0 : index
    %c0_0 = arith.constant 0 : index
    %c0_1 = arith.constant 0 : index
    %1 = vector.load %arg1[%c0, %c0_0, %c0_1] : memref<1x102x128xbf16, #tpu.memory_space<vmem>>, vector<1x80x128xbf16>
    %2 = vector.shape_cast %1 : vector<1x80x128xbf16> to vector<80x128xbf16>
    %c0_2 = arith.constant 0 : index
    %c0_3 = arith.constant 0 : index
    %c0_4 = arith.constant 0 : index
    %3 = vector.load %arg2[%c0_2, %c0_3, %c0_4] : memref<9x128x128xbf16, #tpu.memory_space<vmem>>, vector<1x128x128xbf16>
    %4 = vector.shape_cast %3 : vector<1x128x128xbf16> to vector<128x128xbf16>
    %cst_5 = arith.constant dense<0.000000e+00> : vector<80x128xf32>
    %5 = tpu.matmul %2, %4, %cst_5 {dimension_numbers = #tpu.dot_dimension_numbers<[1], [0], [0], [1], [0, 0, 1, 1], [], []>} : vector<80x128xbf16>, vector<128x128xbf16>, vector<80x128xf32> -> vector<80x128xf32>
    %6 = arith.addf %0, %5 : vector<80x128xf32>
    %c0_6 = arith.constant 0 : index
    %c1 = arith.constant 1 : index
    %c0_7 = arith.constant 0 : index
    %7 = vector.load %arg1[%c0_6, %c1, %c0_7] : memref<1x102x128xbf16, #tpu.memory_space<vmem>>, vector<1x80x128xbf16>
    %8 = vector.shape_cast %7 : vector<1x80x128xbf16> to vector<80x128xbf16>
    %c1_8 = arith.constant 1 : index
    %c0_9 = arith.constant 0 : index
    %c0_10 = arith.constant 0 : index
    %9 = vector.load %arg2[%c1_8, %c0_9, %c0_10] : memref<9x128x128xbf16, #tpu.memory_space<vmem>>, vector<1x128x128xbf16>
    %10 = vector.shape_cast %9 : vector<1x128x128xbf16> to vector<128x128xbf16>
    %cst_11 = arith.constant dense<0.000000e+00> : vector<80x128xf32>
    %11 = tpu.matmul %8, %10, %cst_11 {dimension_numbers = #tpu.dot_dimension_numbers<[1], [0], [0], [1], [0, 0, 1, 1], [], []>} : vector<80x128xbf16>, vector<128x128xbf16>, vector<80x128xf32> -> vector<80x128xf32>
    %12 = arith.addf %6, %11 : vector<80x128xf32>
    %c0_12 = arith.constant 0 : index
    %c2 = arith.constant 2 : index
    %c0_13 = arith.constant 0 : index
    %13 = vector.load %arg1[%c0_12, %c2, %c0_13] : memref<1x102x128xbf16, #tpu.memory_space<vmem>>, vector<1x80x128xbf16>
    %14 = vector.shape_cast %13 : vector<1x80x128xbf16> to vector<80x128xbf16>
    %c2_14 = arith.constant 2 : index
    %c0_15 = arith.constant 0 : index
    %c0_16 = arith.constant 0 : index
    %15 = vector.load %arg2[%c2_14, %c0_15, %c0_16] : memref<9x128x128xbf16, #tpu.memory_space<vmem>>, vector<1x128x128xbf16>
    %16 = vector.shape_cast %15 : vector<1x128x128xbf16> to vector<128x128xbf16>
    %cst_17 = arith.constant dense<0.000000e+00> : vector<80x128xf32>
    %17 = tpu.matmul %14, %16, %cst_17 {dimension_numbers = #tpu.dot_dimension_numbers<[1], [0], [0], [1], [0, 0, 1, 1], [], []>} : vector<80x128xbf16>, vector<128x128xbf16>, vector<80x128xf32> -> vector<80x128xf32>
    %18 = arith.addf %12, %17 : vector<80x128xf32>
    %c0_18 = arith.constant 0 : index
    %c10 = arith.constant 10 : index
    %c0_19 = arith.constant 0 : index
    %19 = vector.load %arg1[%c0_18, %c10, %c0_19] : memref<1x102x128xbf16, #tpu.memory_space<vmem>>, vector<1x80x128xbf16>
    %20 = vector.shape_cast %19 : vector<1x80x128xbf16> to vector<80x128xbf16>
    %c3 = arith.constant 3 : index
    %c0_20 = arith.constant 0 : index
    %c0_21 = arith.constant 0 : index
    %21 = vector.load %arg2[%c3, %c0_20, %c0_21] : memref<9x128x128xbf16, #tpu.memory_space<vmem>>, vector<1x128x128xbf16>
    %22 = vector.shape_cast %21 : vector<1x128x128xbf16> to vector<128x128xbf16>
    %cst_22 = arith.constant dense<0.000000e+00> : vector<80x128xf32>
    %23 = tpu.matmul %20, %22, %cst_22 {dimension_numbers = #tpu.dot_dimension_numbers<[1], [0], [0], [1], [0, 0, 1, 1], [], []>} : vector<80x128xbf16>, vector<128x128xbf16>, vector<80x128xf32> -> vector<80x128xf32>
    %24 = arith.addf %18, %23 : vector<80x128xf32>
    %c0_23 = arith.constant 0 : index
    %c11 = arith.constant 11 : index
    %c0_24 = arith.constant 0 : index
    %25 = vector.load %arg1[%c0_23, %c11, %c0_24] : memref<1x102x128xbf16, #tpu.memory_space<vmem>>, vector<1x80x128xbf16>
    %26 = vector.shape_cast %25 : vector<1x80x128xbf16> to vector<80x128xbf16>
    %c4 = arith.constant 4 : index
    %c0_25 = arith.constant 0 : index
    %c0_26 = arith.constant 0 : index
    %27 = vector.load %arg2[%c4, %c0_25, %c0_26] : memref<9x128x128xbf16, #tpu.memory_space<vmem>>, vector<1x128x128xbf16>
    %28 = vector.shape_cast %27 : vector<1x128x128xbf16> to vector<128x128xbf16>
    %cst_27 = arith.constant dense<0.000000e+00> : vector<80x128xf32>
    %29 = tpu.matmul %26, %28, %cst_27 {dimension_numbers = #tpu.dot_dimension_numbers<[1], [0], [0], [1], [0, 0, 1, 1], [], []>} : vector<80x128xbf16>, vector<128x128xbf16>, vector<80x128xf32> -> vector<80x128xf32>
    %30 = arith.addf %24, %29 : vector<80x128xf32>
    %c0_28 = arith.constant 0 : index
    %c12 = arith.constant 12 : index
    %c0_29 = arith.constant 0 : index
    %31 = vector.load %arg1[%c0_28, %c12, %c0_29] : memref<1x102x128xbf16, #tpu.memory_space<vmem>>, vector<1x80x128xbf16>
    %32 = vector.shape_cast %31 : vector<1x80x128xbf16> to vector<80x128xbf16>
    %c5 = arith.constant 5 : index
    %c0_30 = arith.constant 0 : index
    %c0_31 = arith.constant 0 : index
    %33 = vector.load %arg2[%c5, %c0_30, %c0_31] : memref<9x128x128xbf16, #tpu.memory_space<vmem>>, vector<1x128x128xbf16>
    %34 = vector.shape_cast %33 : vector<1x128x128xbf16> to vector<128x128xbf16>
    %cst_32 = arith.constant dense<0.000000e+00> : vector<80x128xf32>
    %35 = tpu.matmul %32, %34, %cst_32 {dimension_numbers = #tpu.dot_dimension_numbers<[1], [0], [0], [1], [0, 0, 1, 1], [], []>} : vector<80x128xbf16>, vector<128x128xbf16>, vector<80x128xf32> -> vector<80x128xf32>
    %36 = arith.addf %30, %35 : vector<80x128xf32>
    %c0_33 = arith.constant 0 : index
    %c20 = arith.constant 20 : index
    %c0_34 = arith.constant 0 : index
    %37 = vector.load %arg1[%c0_33, %c20, %c0_34] : memref<1x102x128xbf16, #tpu.memory_space<vmem>>, vector<1x80x128xbf16>
    %38 = vector.shape_cast %37 : vector<1x80x128xbf16> to vector<80x128xbf16>
    %c6 = arith.constant 6 : index
    %c0_35 = arith.constant 0 : index
    %c0_36 = arith.constant 0 : index
    %39 = vector.load %arg2[%c6, %c0_35, %c0_36] : memref<9x128x128xbf16, #tpu.memory_space<vmem>>, vector<1x128x128xbf16>
    %40 = vector.shape_cast %39 : vector<1x128x128xbf16> to vector<128x128xbf16>
    %cst_37 = arith.constant dense<0.000000e+00> : vector<80x128xf32>
    %41 = tpu.matmul %38, %40, %cst_37 {dimension_numbers = #tpu.dot_dimension_numbers<[1], [0], [0], [1], [0, 0, 1, 1], [], []>} : vector<80x128xbf16>, vector<128x128xbf16>, vector<80x128xf32> -> vector<80x128xf32>
    %42 = arith.addf %36, %41 : vector<80x128xf32>
    %c0_38 = arith.constant 0 : index
    %c21 = arith.constant 21 : index
    %c0_39 = arith.constant 0 : index
    %43 = vector.load %arg1[%c0_38, %c21, %c0_39] : memref<1x102x128xbf16, #tpu.memory_space<vmem>>, vector<1x80x128xbf16>
    %44 = vector.shape_cast %43 : vector<1x80x128xbf16> to vector<80x128xbf16>
    %c7 = arith.constant 7 : index
    %c0_40 = arith.constant 0 : index
    %c0_41 = arith.constant 0 : index
    %45 = vector.load %arg2[%c7, %c0_40, %c0_41] : memref<9x128x128xbf16, #tpu.memory_space<vmem>>, vector<1x128x128xbf16>
    %46 = vector.shape_cast %45 : vector<1x128x128xbf16> to vector<128x128xbf16>
    %cst_42 = arith.constant dense<0.000000e+00> : vector<80x128xf32>
    %47 = tpu.matmul %44, %46, %cst_42 {dimension_numbers = #tpu.dot_dimension_numbers<[1], [0], [0], [1], [0, 0, 1, 1], [], []>} : vector<80x128xbf16>, vector<128x128xbf16>, vector<80x128xf32> -> vector<80x128xf32>
    %48 = arith.addf %42, %47 : vector<80x128xf32>
    %c0_43 = arith.constant 0 : index
    %c22 = arith.constant 22 : index
    %c0_44 = arith.constant 0 : index
    %49 = vector.load %arg1[%c0_43, %c22, %c0_44] : memref<1x102x128xbf16, #tpu.memory_space<vmem>>, vector<1x80x128xbf16>
    %50 = vector.shape_cast %49 : vector<1x80x128xbf16> to vector<80x128xbf16>
    %c8 = arith.constant 8 : index
    %c0_45 = arith.constant 0 : index
    %c0_46 = arith.constant 0 : index
    %51 = vector.load %arg2[%c8, %c0_45, %c0_46] : memref<9x128x128xbf16, #tpu.memory_space<vmem>>, vector<1x128x128xbf16>
    %52 = vector.shape_cast %51 : vector<1x128x128xbf16> to vector<128x128xbf16>
    %cst_47 = arith.constant dense<0.000000e+00> : vector<80x128xf32>
    %53 = tpu.matmul %50, %52, %cst_47 {dimension_numbers = #tpu.dot_dimension_numbers<[1], [0], [0], [1], [0, 0, 1, 1], [], []>} : vector<80x128xbf16>, vector<128x128xbf16>, vector<80x128xf32> -> vector<80x128xf32>
    %54 = arith.addf %48, %53 : vector<80x128xf32>
    %c0_48 = arith.constant 0 : index
    %c0_49 = arith.constant 0 : index
    %55 = vector.load %arg3[%c0_48, %c0_49] : memref<1x128xf32, #tpu.memory_space<vmem>>, vector<1x128xf32>
    %56 = vector.broadcast %55 : vector<1x128xf32> to vector<80x128xf32>
    %57 = arith.mulf %54, %56 : vector<80x128xf32>
    %c0_50 = arith.constant 0 : index
    %c0_51 = arith.constant 0 : index
    %58 = vector.load %arg4[%c0_50, %c0_51] : memref<1x128xf32, #tpu.memory_space<vmem>>, vector<1x128xf32>
    %59 = vector.broadcast %58 : vector<1x128xf32> to vector<80x128xf32>
    %60 = arith.addf %57, %59 : vector<80x128xf32>
    %cst_52 = arith.constant 0.000000e+00 : f32
    %61 = vector.broadcast %cst_52 : f32 to vector<80x128xf32>
    %62 = arith.maximumf %60, %61 : vector<80x128xf32>
    %63 = arith.truncf %62 : vector<80x128xf32> to vector<80x128xbf16>
    %c0_53 = arith.constant 0 : index
    %c0_54 = arith.constant 0 : index
    %c0_55 = arith.constant 0 : index
    %64 = vector.load %arg5[%c0_53, %c0_54, %c0_55] : memref<1x80x128xbf16, #tpu.memory_space<vmem>>, vector<1x80x128xbf16>
    %65 = vector.shape_cast %64 : vector<1x80x128xbf16> to vector<80x128xbf16>
    %66 = vector.shape_cast %63 : vector<80x128xbf16> to vector<1x80x128xbf16>
    tpu.vector_store %arg5[%c0_53, %c0_54, %c0_55], %66 {strides = array<i32>} : memref<1x80x128xbf16, #tpu.memory_space<vmem>>, vector<1x80x128xbf16>,
    return
  }
  func.func @transform_0(%arg0: i32) -> (i32, i32, i32) {
    %c0_i32 = arith.constant 0 : i32
    %c0_i32_0 = arith.constant 0 : i32
    %c0_i32_1 = arith.constant 0 : i32
    return %arg0, %c0_i32, %c0_i32_0 : i32, i32, i32
  }
  func.func @transform_1(%arg0: i32) -> (i32, i32, i32) {
    %c0_i32 = arith.constant 0 : i32
    %c0_i32_0 = arith.constant 0 : i32
    %c0_i32_1 = arith.constant 0 : i32
    %c0_i32_2 = arith.constant 0 : i32
    return %c0_i32, %c0_i32_0, %c0_i32_1 : i32, i32, i32
  }
  func.func @transform_2(%arg0: i32) -> (i32, i32) {
    %c0_i32 = arith.constant 0 : i32
    %c0_i32_0 = arith.constant 0 : i32
    %c0_i32_1 = arith.constant 0 : i32
    return %c0_i32, %c0_i32_0 : i32, i32
  }
  func.func @transform_3(%arg0: i32) -> (i32, i32) {
    %c0_i32 = arith.constant 0 : i32
    %c0_i32_0 = arith.constant 0 : i32
    %c0_i32_1 = arith.constant 0 : i32
    return %c0_i32, %c0_i32_0 : i32, i32
  }
  func.func @transform_4(%arg0: i32) -> (i32, i32, i32) {
    %c0_i32 = arith.constant 0 : i32
    %c0_i32_0 = arith.constant 0 : i32
    %c0_i32_1 = arith.constant 0 : i32
    return %arg0, %c0_i32, %c0_i32_0 : i32, i32, i32
  }
}

</mosaic_0001>

<bundles_post_ra>
// kernel: tpu_custom_call.1
= control target key start
LH: loop header
LB: loop body
LE: loop exit
PB: predicated region body
PF: predicated region fallthrough
CT: control target
= control target key end

     0   :  { %6 = vsyncpa [#allocation3], 0  ;;  %s340_s0 = inlined_call_operand.hbm [shape: f32[8,128], index: 0, kind: input, shape index: {}]   ;;  %s341_s1 = inlined_call_operand.hbm [shape: f32[8,128], index: 1, kind: output, shape index: {}]  }
   0x1   :  { %7 = vsyncpa [#allocation4], 0  ;;  %s261_s6 = smov 0  }
   0x2 LB: > { %s144_s7 = sadd.s32 4294967295, %s247_s6   ;;  %p145_p0 = scmp.ge.s32.totalorder %s247_s6, 1  ;;  %s247_s6 = sphi %s261_s6, %s13_s6  }
   0x3   : > { %p60_p1 = scmp.lt.s32.totalorder %s247_s6, 3  ;;  %p275_p3 = scmp.eq.s32.totalorder %s144_s7, 0 }
   0x4   : > { %s249_s10 = smov [#allocation2]   ;;  %s179_s15 = scalar_lea.hbm %s340_s0, 128 }
   0x5   : > { %p269_p2 = pnand %p145_p0, %p60_p1  ;;  %s73_s11 = sshll.u32 %s249_s10, 4  ;;  %s74_s11 = int_to_ptr.vmem [resolvable:$true] %s73_s11 }
   0x6   : > { %s346_s9 = scalar_select %p275_p3, 1, 0 }
   0x7   : > { %s345_s8 = scalar_select %p269_p2, 1, 0 }
   0x8   : > { %p161_p4 = pneg %p269_p2  ;;  %p180_p6 = scmp.ne.s32.totalorder %s340_s0, %s179_s15 }
   0x9   : > { %p186_p10 = scmp.lt.u32.totalorder %s179_s15, %s340_s0 }
   0xa   : > { %p283_p5 = pnand %p275_p3, %p161_p4 }
   0xc   : > { %p181_p7 = pneg %p283_p5 }
   0xe   : > { %p182_p8 = pnand %p181_p7, %p180_p6 }
  0x10   : > { %p183_p9 = pneg %p182_p8 }
  0x12   : > { %p188_p11 = pnand %p186_p10, %p183_p9 }
  0x14   : > { %191 = shalt.err (!%p188_p11)
}
  0x15   : > { %s192_s20 = scalar_lea.vmem %s74_s11, 128  ;;  %p200_p1 = scmp.lt.s32.totalorder %s74_s11, %s74_s11 }
  0x16   : > { %p193_p12 = scmp.ne.s32.totalorder %s74_s11, %s192_s20  ;;  %p201_p4 = scmp.lt.s32.totalorder %s192_s20, %s192_s20 }
  0x18   : > { %p195_p13 = pnand %p193_p12, %p181_p7  ;;  %p202_p3 = por %p201_p4, %p200_p1 }
  0x1a   : > { %p196_p0 = pneg %p195_p13 }
  0x1c   : > { %p203_p2 = pnand %p202_p3, %p196_p0 }
  0x1e   : > { %206 = shalt.err (!%p203_p2)
}
  0x1f   : > { %164 = dma.hbm_to_vmem [thread:$0]  (!%p283_p5), %s340_s0, 128, %s74_s11, [#allocation3]  }
  0x20   : > { %p348_p6 = scmp.ne.s32.totalorder %s345_s8, 0 }
  0x21   : > { %p349_p8 = scmp.ne.s32.totalorder (!%p348_p6), %s346_s9, 0 }
  0x22   : > { %86 = sbr.rel (%p348_p6) target bundleno = 67 (0x43), region = 24 }
  0x29   : > { %238 = dma.done.wait (%p349_p8), [#allocation3], 128  }
  0x2a   : > { %240 = vsyncadd (%p349_p8), [#allocation3], 4294967168  ;;  %s250_s23 = smov [#allocation5]   ;;  %p311_p2 = scmp.eq.s32.totalorder %s144_s7, 1  ;;  %v96_v0 = vld [vmem:[#allocation2] sm:$0xff] }
  0x2b   : > { %s105_s24 = sshll.u32 %s250_s23, 4  ;;  %97 = vst [vmem:[#allocation5] sm:$0xff] %v96_v0  ;;  %s106_s24 = int_to_ptr.vmem [resolvable:$true] %s105_s24 }
  0x2c   : > { %s207_s26 = scalar_lea.vmem %s106_s24, 128  ;;  %p214_p9 = scmp.lt.s32.totalorder %s106_s24, %s106_s24 }
  0x2d   : > { %p208_p3 = scmp.ne.s32.totalorder %s106_s24, %s207_s26  ;;  %p215_p10 = scmp.lt.s32.totalorder %s207_s26, %s207_s26 }
  0x2f   : > { %p209_p5 = pnand %p208_p3, %p311_p2  ;;  %p216_p11 = por %p215_p10, %p214_p9 }
  0x31   : > { %p210_p7 = pneg %p209_p5 }
  0x33   : > { %p217_p12 = pnand %p216_p11, %p210_p7 }
  0x35   : > { %220 = shalt.err (!%p217_p12)
}
  0x36   : > { %s221_s29 = scalar_lea.hbm %s341_s1, 128 }
  0x37   : > { %p222_p13 = scmp.ne.s32.totalorder %s341_s1, %s221_s29  ;;  %p227_p4 = scmp.lt.u32.totalorder %s221_s29, %s341_s1 }
  0x39   : > { %p223_p0 = pnand %p222_p13, %p311_p2 }
  0x3b   : > { %p224_p1 = pneg %p223_p0 }
  0x3d   : > { %p229_p6 = pnand %p227_p4, %p224_p1 }
  0x3f   : > { %232 = shalt.err (!%p229_p6)
}
  0x40   : > { %158 = dma.vmem_to_hbm [thread:$0]  (%p311_p2), %s106_s24, 128, %s341_s1, [#allocation4]  }
  0x41   : > { %242 = dma.done.wait (%p311_p2), [#allocation4], 128  }
  0x42   : > { %244 = vsyncadd (%p311_p2), [#allocation4], 4294967168 }
  0x43 PF: > { %s13_s6 = sadd.s32 1, %s247_s6  }
  0x44   : > { %p10_p8 = scmp.ge.s32.totalorder %s13_s6, 4  }
  0x46   :  { %12 = sbr.rel (!%p10_p8) target bundleno = 2 (0x2), region = 53 }
  0x4d   :  { %118 = vsyncpa [#allocation3], 1 }
  0x4e   :  { %120 = vsyncpa [#allocation3 + $0x1], 1 }
  0x4f   :  { %121 = vsyncpa [#allocation4], 1 }
  0x50   :  { %123 = vsyncpa [#allocation4 + $0x1], 1 }

// kernel: _lambda_.5
= control target key start
LH: loop header
LB: loop body
LE: loop exit
PB: predicated region body
PF: predicated region fallthrough
CT: control target
= control target key end

     0   :  { %s3212_s15 = smov 0   ;;  %s3795_s0 = inlined_call_operand.vmem [shape: bf16[2,324,128], index: 0, kind: input, shape index: {}]   ;;  %s3796_s1 = inlined_call_operand.vmem [shape: bf16[9,128,128], index: 1, kind: input, shape index: {}]   ;;  %s3797_s2 = inlined_call_operand.vmem [shape: f32[1,128], index: 2, kind: input, shape index: {}]   ;;  %s3798_s3 = inlined_call_operand.vmem [shape: f32[1,128], index: 3, kind: input, shape index: {}]   ;;  %s3799_s4 = inlined_call_operand.vmem [shape: bf16[2,72,128], index: 4, kind: output, shape index: {}]  }
   0x1 LB: > { %s2166_s16 = sadd.s32 4294967295, %s3183_s15   ;;  %p2170_p0 = scmp.ge.s32.totalorder %s3183_s15, 1  ;;  %s3183_s15 = sphi %s3212_s15, %s14_s15  }
   0x2   : > { %p162_p1 = scmp.lt.s32.totalorder %s3183_s15, 3 }
   0x4   : > { %p163_p2 = pnand %p2170_p0, %p162_p1 }
   0x5   : > { %v3068_v0 = vld [vmem:[%s3796_s1 + $0x40] sm:$0xff] (!%p163_p2)   ;;  %v3185_v1 = vmov (!%p163_p2), 0.0   ;;  %v3070_v3 = vld [vmem:[%s3796_s1 + $0x48] sm:$0xff] (!%p163_p2)   ;;  %vm3186_vm0 = vmmov (!%p163_p2), 0   ;;  %p188_p3 = scmp.lt.s32.totalorder (!%p163_p2), %s2166_s16, 1  ;;  %v3072_v5 = vld [vmem:[%s3796_s1 + $0x50] sm:$0xff] (!%p163_p2)  }
   0x6   : > { %166 = sbr.rel (%p163_p2) target bundleno = 440 (0x1b8), region = 36  ;;  %2572 = vmatprep.subr.bf16.mxu1 (!%p163_p2), %v3185_v1  ;;  %2716 = vmatprep.subr.bf16.mxu0 (!%p163_p2), %v3185_v1  ;;  %v3069_v2 = vld [vmem:[%s3796_s1 + $0x100] sm:$0xff] (!%p163_p2)   ;;  %v3071_v4 = vld [vmem:[%s3796_s1 + $0x108] sm:$0xff] (!%p163_p2)   ;;  %v3073_v6 = vld [vmem:[%s3796_s1 + $0x110] sm:$0xff] (!%p163_p2)   ;;  %vm276_vm1 = vsmask.f32 (!%p163_p2), 7424 }
   0x7   : > { %2573 = vmatpush3.bf16.msra.mxu1 (!%p163_p2), %v3068_v0  ;;  %2588 = vmatprep.mubr.msk.bf16.mxu1 (!%p163_p2), %vm3186_vm0, %v3185_v1  ;;  %v3074_v7 = vld [vmem:[%s3796_s1 + $0x58] sm:$0xff] (!%p163_p2)   ;;  %v3076_v9 = vld [vmem:[%s3796_s1 + $0x60] sm:$0xff] (!%p163_p2)   ;;  %v3078_v11 = vld [vmem:[%s3796_s1 + $0x68] sm:$0xff] (!%p163_p2)   ;;  %vm1062_vm2 = vsmask.f32 (!%p163_p2), 6400  ;;  %vm866_vm3 = vcmask (!%p163_p2), 1046528  }
   0x8   : > { %2717 = vmatpush3.bf16.msra.mxu0 (!%p163_p2), %v3069_v2  ;;  %2574 = vmatprep.subr.bf16.mxu1 (!%p163_p2), %v3185_v1  ;;  %v3075_v8 = vld [vmem:[%s3796_s1 + $0x118] sm:$0xff] (!%p163_p2)   ;;  %v3077_v10 = vld [vmem:[%s3796_s1 + $0x120] sm:$0xff] (!%p163_p2)   ;;  %v3079_v14 = vld [vmem:[%s3796_s1 + $0x128] sm:$0xff] (!%p163_p2)  }
   0x9   : > { %2718 = vmatprep.subr.bf16.mxu0 (!%p163_p2), %v3185_v1  ;;  %2732 = vmatprep.mubr.msk.bf16.mxu0 (!%p163_p2), %vm3186_vm0, %v3185_v1  ;;  %v3080_v17 = vld [vmem:[%s3796_s1 + $0x70] sm:$0xff] (!%p163_p2)   ;;  %v3082_v29 = vld [vmem:[%s3796_s1 + $0x78] sm:$0xff] (!%p163_p2)   ;;  %v3088_v41 = vld [vmem:[%s3796_s1 + $0x140] sm:$0xff] (!%p163_p2)  }
   0xa   : > { %v3081_v19 = vld [vmem:[%s3796_s1 + $0x130] sm:$0xff] (!%p163_p2)   ;;  %v3083_v32 = vld [vmem:[%s3796_s1 + $0x138] sm:$0xff] (!%p163_p2)   ;;  %v3092_v49 = vld [vmem:[%s3796_s1] sm:$0xff] (!%p163_p2)  }
   0xb   : > { %2575 = vmatpush3.bf16.msra.mxu1 (!%p163_p2), %v3070_v3  ;;  %v3089_v51 = vld [vmem:[%s3796_s1 + $0x148] sm:$0xff] (!%p163_p2)   ;;  %v3093_v58 = vld [vmem:[%s3796_s1 + $0x150] sm:$0xff] (!%p163_p2)  }
   0xc   : > { %2719 = vmatpush3.bf16.msra.mxu0 (!%p163_p2), %v3071_v4  ;;  %2576 = vmatprep.subr.bf16.mxu1 (!%p163_p2), %v3185_v1  ;;  %v3094_v57 = vld [vmem:[%s3796_s1 + $0x8] sm:$0xff] (!%p163_p2)   ;;  %v3098_v3 = vld [vmem:[%s3796_s1 + $0x10] sm:$0xff] (!%p163_p2)  }
   0xd   : > { %s3801_s16 = smov (!%p188_p3, %s2166_s16), 1  ;;  %2720 = vmatprep.subr.bf16.mxu0 %v3185_v1 }
   0xe   : > { %s3056_s5 = smul.u32 164, %s3801_s16 }
   0xf   : > { %2577 = vmatpush3.bf16.msra.mxu1 %v3072_v5  ;;  %v3097_v5 = vld [vmem:[%s3796_s1 + $0x158] sm:$0xff]   ;;  %s3057_s29 = smul.u32 36, %s3801_s16 }
  0x10   : > { %2721 = vmatpush3.bf16.msra.mxu0 %v3073_v6  ;;  %2578 = vmatprep.subr.bf16.mxu1 %v3185_v1  ;;  %s3265_s12 = scalar_lea.vmem %s3795_s0, %s3056_s5 }
  0x11   : > { %2722 = vmatprep.subr.bf16.mxu0 %v3185_v1  ;;  %v3084_v12 = vld [vmem:[%s3265_s12 + $0x28] sm:$0xff]   ;;  %v3085_v13 = vld [vmem:[%s3265_s12 + $0x30] sm:$0xff]   ;;  %v3087_v16 = vld [vmem:[%s3265_s12 + $0x80] sm:$0xff]   ;;  %s3777_s6 = scalar_lea.vmem %s3799_s4, %s3057_s29 }
  0x12   : > { %v280_v15 = vshll.u32 %v3084_v12, 16  ;;  %v3086_v18 = vld [vmem:[%s3265_s12 + $0x78] sm:$0xfe]   ;;  %v278_v20 = vshrl.u32 %v3084_v12, 16  ;;  %v1072_v21 = vshrl.u32 %v3087_v16, 16  ;;  %v1075_v22 = vshll.u32 %v3087_v16, 16 }
  0x13   : > { %2579 = vmatpush3.bf16.msra.mxu1 %v3074_v7  ;;  %v285_v24 = vshll.u32 %v3085_v13, 16  ;;  %v1064_v25 = vshrl.u32 %v3086_v18, 16  ;;  %v1067_v26 = vshll.u32 %v3086_v18, 16  ;;  %v3091_v33 = vld [vmem:[%s3265_s12 + $0x88] sm:$0xff]   ;;  %v3090_v36 = vld [vmem:[%s3265_s12 + $0x38] sm:$0xff]   ;;  %v289_v42 = vshrl.u32 %v3085_v13, 16 }
  0x14   : > { %2723 = vmatpush3.bf16.msra.mxu0 %v3075_v8  ;;  %2580 = vmatprep.subr.bf16.mxu1 %v3185_v1  ;;  %v282_v23 = vrot.slane %v280_v15, 1  ;;  %v1074_v27 = vrot.slane %v1072_v21, 1  ;;  %v1077_v28 = vrot.slane %v1075_v22, 2  ;;  %v1081_v39 = vshrl.u32 %v3091_v33, 16  ;;  %v3096_v45 = vld [vmem:[%s3265_s12 + $0x90] sm:$0xff]   ;;  %v3095_v50 = vld [vmem:[%s3265_s12 + $0x40] sm:$0xff]  }
  0x15   : > { %2724 = vmatprep.subr.bf16.mxu0 %v3185_v1  ;;  %v1066_v30 = vrot.slane %v1064_v25, 1  ;;  %v1069_v31 = vrot.slane %v1067_v26, 2  ;;  %v287_v35 = vrot.slane %v285_v24, 1  ;;  %v1084_v40 = vshll.u32 %v3091_v33, 16  ;;  %v3102_v2 = vld [vmem:[%s3265_s12 + $0x98] sm:$0x3f]  }
  0x16   : > { %v283_v34 = vor.u32 %v282_v23, %v278_v20  ;;  %v1078_v38 = vor.u32 %v1077_v28, %v1074_v27  ;;  %v293_v44 = vshll.u32 %v3090_v36, 16  ;;  %v1083_v47 = vrot.slane %v1081_v39, 1  ;;  %v3343_v7 = vld [vmem:[%s3265_s12 + $0x48] sm:$0x1f]   ;;  %v3100_v12 = vld [vmem:[%s3796_s1 + $0x160] sm:$0xff]   ;;  %v3106_v25 = vld [vmem:[%s3796_s1 + $0x170] sm:$0xff]  }
  0x17   : > { %2581 = vmatpush3.bf16.msra.mxu1 %v3076_v9  ;;  %v1070_v37 = vor.u32 %v1069_v31, %v1066_v30  ;;  %v1086_v48 = vrot.slane %v1084_v40, 2  ;;  %v291_v52 = vor.u32 %v289_v42, %v287_v35  ;;  %v1090_v54 = vshrl.u32 %v3096_v45, 16  ;;  %v3104_v23 = vld [vmem:[%s3796_s1 + $0x168] sm:$0xff]   ;;  %v3111_v26 = vld [vmem:[%s3265_s12 + $0x50] sm:$0xfe]   ;;  %v3112_v31 = vld [vmem:[%s3265_s12 + $0x58] sm:$0xff]  }
  0x18   : > { %2725 = vmatpush3.bf16.msra.mxu0 %v3077_v10  ;;  %2582 = vmatprep.subr.bf16.mxu1 %v3185_v1  ;;  %v288_v43 = vsel %vm276_vm1, %v283_v34, %v287_v35  ;;  %v295_v53 = vrot.slane %v293_v44, 1  ;;  %v1093_v55 = vshll.u32 %v3096_v45, 16  ;;  %v297_v59 = vshrl.u32 %v3090_v36, 16  ;;  %v3105_v24 = vld [vmem:[%s3796_s1 + $0x28] sm:$0xff]   ;;  %v3107_v28 = vld [vmem:[%s3796_s1 + $0x30] sm:$0xff]   ;;  %v3108_v34 = vld [vmem:[%s3796_s1 + $0x178] sm:$0xff]  }
  0x19   : > { %2726 = vmatprep.subr.bf16.mxu0 %v3185_v1  ;;  %v1079_v46 = vsel %vm1062_vm2, %v1070_v37, %v1078_v38  ;;  %v1087_v56 = vor.u32 %v1086_v48, %v1083_v47  ;;  %v301_v60 = vshll.u32 %v3095_v50, 16  ;;  %v1092_v62 = vrot.slane %v1090_v54, 1  ;;  %v3109_v42 = vld [vmem:[%s3796_s1 + $0x38] sm:$0xff]   ;;  %v3408_v45 = vld [vmem:[%s3265_s12 + $0x68] sm:$0xff]  }
  0x1a   : > { %v296_v61 = vsel %vm276_vm1, %v291_v52, %v295_v53  ;;  %v1095_v63 = vrot.slane %v1093_v55, 2  ;;  %v299_v6 = vor.u32 %v297_v59, %v295_v53  ;;  %v1099_v9 = vshrl.u32 %v3102_v2, 16 }
  0x1b   : > { %2583 = vmatpush3.bf16.msra.mxu1 %v3078_v11  ;;  %v1088_v0 = vsel %vm1062_vm2, %v1078_v38, %v1087_v56  ;;  %v303_v4 = vrot.slane %v301_v60, 1  ;;  %v1102_v10 = vshll.u32 %v3102_v2, 16  ;;  %v3099_v11 = vld [vmem:[%s3796_s1 + $0x18] sm:$0xff]   ;;  %v309_v15 = vshll.u32 %v3343_v7, 16 }
  0x1c   : > { %2727 = vmatpush3.bf16.msra.mxu0 %v3079_v14  ;;  %2584 = vmatprep.subr.bf16.mxu1 %v3185_v1  ;;  %v1096_v8 = vor.u32 %v1095_v63, %v1092_v62  ;;  %v305_v14 = vshrl.u32 %v3095_v50, 16  ;;  %v313_v30 = vshrl.u32 %v3343_v7, 16  ;;  %v867_v33 = vrot.slane %v3111_v26, 1  ;;  %v3114_v62 = vld [vmem:[%s3796_s1 + $0x188] sm:$0xff]   ;;  %v3118_v7 = vld [vmem:[%s3796_s1 + $0x190] sm:$0xff]  }
  0x1d   : > { %2728 = vmatprep.subr.bf16.mxu0 %v3185_v1  ;;  %v304_v13 = vsel %vm276_vm1, %v299_v6, %v303_v4  ;;  %v1104_v18 = vrot.slane %v1102_v10, 2  ;;  %v311_v21 = vrot.slane %v309_v15, 1  ;;  %v1263_v35 = vshrl.u32 %v3111_v26, 16  ;;  %v3119_v63 = vld [vmem:[%s3796_s1 + $0x88] sm:$0xff]  }
  0x1e   : > { %v1097_v16 = vsel %vm1062_vm2, %v1087_v56, %v1096_v8  ;;  %v307_v20 = vor.u32 %v305_v14, %v303_v4  ;;  %v868_v36 = vrot.slane %v3112_v31, 1  ;;  %v1266_v37 = vshll.u32 %v3111_v26, 16  ;;  %v3110_v56 = vld [vmem:[%s3265_s12] sm:$0xff]   ;;  %v3443_v4 = vld [vmem:[%s3265_s12 + $0x70] sm:$0xf]  ;;  %v3115_v6 = vld [vmem:[%s3265_s12 + $0x8] sm:$0xff]  }
  0x1f   : > { %2585 = vmatpush3.bf16.msra.mxu1 %v3080_v17  ;;  %v1101_v17 = vrot.slane %v1099_v9, 1  ;;  %v1271_v39 = vshrl.u32 %v3112_v31, 16  ;;  %v1274_v40 = vshll.u32 %v3112_v31, 16  ;;  %v315_v44 = vor.u32 %v313_v30, %v311_v21  ;;  %v3136_v30 = vld [vmem:[%s3265_s12] sm:$0xff]  }
  0x20   : > { %2729 = vmatpush3.bf16.msra.mxu0 %v3081_v19  ;;  %2586 = vmatprep.subr.bf16.mxu1 %v3185_v1  ;;  %v3103_v19 = vld [vmem:[%s3796_s1 + $0x20] sm:$0xff]   ;;  %v312_v27 = vsel %vm276_vm1, %v307_v20, %v311_v21  ;;  %v1268_v47 = vrot.slane %v1266_v37, 2  ;;  %v872_v50 = vrot.slane %v3408_v45, 1  ;;  %v1289_v2 = vshrl.u32 %v3408_v45, 16 }
  0x21   : > { %2730 = vmatprep.subr.bf16.mxu0 %v3185_v1  ;;  %v1105_v22 = vor.u32 %v1104_v18, %v1101_v17  ;;  %v1273_v48 = vrot.slane %v1271_v39, 1  ;;  %v3124_v17 = vld [vmem:[%s3796_s1 + $0x98] sm:$0xff]   ;;  %v3120_v18 = vld [vmem:[%s3265_s12 + $0x10] sm:$0xff]   ;;  %v642_v37 = vshrl.u32 %v3136_v30, 16 }
  0x22   : > { %v1291_v9 = vrot.slane %v1289_v2, 1  ;;  %v3135_v39 = vld [vmem:[%s3796_s1 + $0xb8] sm:$0xff]   ;;  %v823_v2 = vld [vmem:[%s3265_s12 + $0x74] sm:$0x1] }
  0x23   : > { %2587 = vmatpush3.bf16.msra.mxu1 %v3082_v29  ;;  %v1106_v29 = vsel %vm1062_vm2, %v1096_v8, %v1105_v22 }
  0x24   : > { %2731 = vmatpush3.bf16.msra.mxu0 %v3083_v32  ;;  %2608 = vmatprep.subr.bf16.mxu1 %v3185_v1  ;;  %v3116_v32 = vld [vmem:[%s3265_s12 + $0x60] sm:$0xff]  }
  0x25   : > { %2752 = vmatprep.subr.bf16.mxu0 %v3185_v1  ;;  %v870_v38 = vrot.slane %v3116_v32, 1  ;;  %v1280_v54 = vshrl.u32 %v3116_v32, 16  ;;  %v1283_v55 = vshll.u32 %v3116_v32, 16  ;;  %v3131_v32 = vld [vmem:[%s3796_s1 + $0x1b0] sm:$0xff]  }
  0x26   : > { %2589 = vmatmul.mubr.bf16.vlgmr.msra.gmra.mrb[0].mxu1 %v288_v43 }
  0x27   : > { %2733 = vmatmul.mubr.bf16.vlgmr.msra.gmra.mrb[0].mxu0 %v1079_v46  ;;  %2592 = vmatprep.mubr.msk.bf16.mxu1 %vm3186_vm0, %v3185_v1  ;;  %v3404_v43 = vsel %vm866_vm3, %v868_v36, %v870_v38  ;;  %v1265_v46 = vrot.slane %v1263_v35, 1  ;;  %v1282_v60 = vrot.slane %v1280_v54, 1  ;;  %v3137_v35 = vld [vmem:[%s3265_s12 + $0x8] sm:$0xff]  }
  0x28   : > { %2753 = vmatpush3.bf16.msra.mxu0 %v3088_v41  ;;  %2736 = vmatprep.mubr.msk.bf16.mxu0 %vm3186_vm0, %v3185_v1  ;;  %v3397_v41 = vsel %vm866_vm3, %v867_v33, %v868_v36  ;;  %v3134_v36 = vld [vmem:[%s3796_s1 + $0x1b8] sm:$0xff]  }
  0x29   : > { %2754 = vmatprep.subr.bf16.mxu0 %v3185_v1  ;;  %2609 = vmatpush3.bf16.msra.mxu1 %v3092_v49  ;;  %v1276_v49 = vrot.slane %v1274_v40, 2  ;;  %v1269_v52 = vor.u32 %v1268_v47, %v1265_v46  ;;  %v644_v40 = vshll.u32 %v3136_v30, 16  ;;  %v3528_v47 = vld [vmem:[%s3265_s12 + $0x1c] sm:$0xff]   ;;  %v3150_v30 = vld [vmem:[%s3796_s1 + $0xd0] sm:$0xff]  }
  0x2a   : > { %2610 = vmatprep.subr.bf16.mxu1 %v3185_v1 }
  0x2b   : > { %v1277_v53 = vor.u32 %v1276_v49, %v1273_v48  ;;  %v649_v48 = vshll.u32 %v3137_v35, 16  ;;  %v646_v54 = vrot.slane %v644_v40, 1 }
  0x2c   : > { %2755 = vmatpush3.bf16.msra.mxu0 %v3089_v51  ;;  %v3418_v51 = vsel %vm866_vm3, %v870_v38, %v872_v50  ;;  %v3514_v38 = vld [vmem:[%s3265_s12 + $0xc] sm:$0xff]  }
  0x2d   : > { %2756 = vmatprep.subr.bf16.mxu0 %v3185_v1  ;;  %2611 = vmatpush3.bf16.msra.mxu1 %v3094_v57  ;;  %v3113_v57 = vld [vmem:[%s3796_s1 + $0x180] sm:$0xff]   ;;  %v1278_v59 = vsel %vm1062_vm2, %v1269_v52, %v1277_v53  ;;  %v1882_v49 = vrot.slane %v3514_v38, 1  ;;  %v1886_v52 = vrot.slane %v3528_v47, 1 }
  0x2e   : > { %2593 = vmatmul.mubr.bf16.gmra.mrb[4].mxu1 %v296_v61  ;;  %2612 = vmatprep.subr.bf16.mxu1 %v3185_v1  ;;  %v1285_v61 = vrot.slane %v1283_v55, 2 }
  0x2f   : > { %2737 = vmatmul.mubr.bf16.gmra.mrb[4].mxu0 %v1088_v0  ;;  %2596 = vmatprep.mubr.msk.bf16.mxu1 %vm3186_vm0, %v3185_v1 }
  0x30   : > { %2757 = vmatpush3.bf16.msra.mxu0 %v3093_v58  ;;  %2740 = vmatprep.mubr.msk.bf16.mxu0 %vm3186_vm0, %v3185_v1  ;;  %v3117_v58 = vld [vmem:[%s3796_s1 + $0x80] sm:$0xff]   ;;  %v1286_v0 = vor.u32 %v1285_v61, %v1282_v60  ;;  %v647_v60 = vor.u32 %v646_v54, %v642_v37  ;;  %v651_v61 = vrot.slane %v649_v48, 1  ;;  %v1520_v48 = vshrl.u32 %v3528_v47, 16 }
  0x31   : > { %2758 = vmatprep.subr.bf16.mxu0 %v3185_v1  ;;  %2613 = vmatpush3.bf16.msra.mxu1 %v3098_v3  ;;  %v1292_v3 = vshll.u32 %v3408_v45, 16  ;;  %v3610_v37 = vld [vmem:[%s3265_s12 + $0x24] sm:$0x1f]  }
  0x32   : > { %2614 = vmatprep.subr.bf16.mxu1 %v3185_v1  ;;  %v1287_v8 = vsel %vm1062_vm2, %v1277_v53, %v1286_v0 }
  0x33   : > { %v1294_v10 = vrot.slane %v1292_v3, 2  ;;  %v3140_v3 = vld [vmem:[%s3796_s1 + $0x1c0] sm:$0xff]  }
  0x34   : > { %2759 = vmatpush3.bf16.msra.mxu0 %v3097_v5  ;;  %v1241_v5 = vld [vmem:[%s3265_s12 + $0x74] sm:$0x3] }
  0x35   : > { %2760 = vmatprep.subr.bf16.mxu0 %v3185_v1  ;;  %2615 = vmatpush3.bf16.msra.mxu1 %v3099_v11  ;;  %v2318_v11 = vcombine.low %v3443_v4, %v1241_v5  ;;  %v1295_v14 = vor.u32 %v1294_v10, %v1291_v9  ;;  %v653_v5 = vshrl.u32 %v3137_v35, 16  ;;  %v1504_v9 = vshrl.u32 %v3514_v38, 16 }
  0x36   : > { %2597 = vmatmul.mubr.bf16.gmra.mrb[8].mxu1 %v304_v13  ;;  %2616 = vmatprep.subr.bf16.mxu1 %v3185_v1  ;;  %v3122_v13 = vld [vmem:[%s3796_s1 + $0x198] sm:$0xff]  }
  0x37   : > { %2741 = vmatmul.mubr.bf16.gmra.mrb[8].mxu0 %v1097_v16  ;;  %2600 = vmatprep.mubr.msk.bf16.mxu1 %vm3186_vm0, %v3185_v1  ;;  %v1298_v15 = vshrl.u32 %v2318_v11, 16  ;;  %v1301_v16 = vshll.u32 %v2318_v11, 16  ;;  %v1296_v20 = vsel %vm1062_vm2, %v1286_v0, %v1295_v14 }
  0x38   : > { %2761 = vmatpush3.bf16.msra.mxu0 %v3100_v12  ;;  %2744 = vmatprep.mubr.msk.bf16.mxu0 %vm3186_vm0, %v3185_v1  ;;  %v3123_v12 = vld [vmem:[%s3796_s1 + $0x90] sm:$0xff]  }
  0x39   : > { %2617 = vmatpush3.bf16.msra.mxu1 %v3103_v19  ;;  %2762 = vmatprep.subr.bf16.mxu0 %v3185_v1  ;;  %v3125_v19 = vld [vmem:[%s3796_s1 + $0x1a0] sm:$0xff]   ;;  %v1300_v21 = vrot.slane %v1298_v15, 1  ;;  %v655_v15 = vor.u32 %v653_v5, %v651_v61  ;;  %v1528_v5 = vshrl.u32 %v3610_v37, 16 }
  0x3a   : > { %2618 = vmatprep.subr.bf16.mxu1 %v3185_v1 }
  0x3c   : > { %2763 = vmatpush3.bf16.msra.mxu0 %v3104_v23  ;;  %v3128_v23 = vld [vmem:[%s3796_s1 + $0xa0] sm:$0xff]  }
  0x3d   : > { %2619 = vmatpush3.bf16.msra.mxu1 %v3105_v24  ;;  %2764 = vmatprep.subr.bf16.mxu0 %v3185_v1  ;;  %v3129_v24 = vld [vmem:[%s3796_s1 + $0x1a8] sm:$0xff]  }
  0x3e   : > { %2601 = vmatmul.mubr.bf16.gmra.mrb[12].mxu1 %v312_v27  ;;  %2620 = vmatprep.subr.bf16.mxu1 %v3185_v1  ;;  %v1440_v27 = vld [vmem:[%s3265_s12 + $0x4] sm:$0xf] }
  0x3f   : > { %2745 = vmatmul.mubr.bf16.gmra.mrb[12].mxu0 %v1106_v29  ;;  %2604 = vmatprep.mubr.msk.bf16.mxu1 %vm3186_vm0, %v3185_v1  ;;  %v3126_v29 = vld [vmem:[%s3265_s12 + $0x18] sm:$0xff]  }
  0x40   : > { %2748 = vmatprep.mubr.msk.bf16.mxu0 %vm3186_vm0, %v3185_v1  ;;  %2765 = vmatpush3.bf16.msra.mxu0 %v3106_v25  ;;  %v3130_v25 = vld [vmem:[%s3796_s1 + $0xa8] sm:$0xff]  }
  0x41   : > { %2621 = vmatpush3.bf16.msra.mxu1 %v3107_v28  ;;  %2766 = vmatprep.subr.bf16.mxu0 %v3185_v1  ;;  %v3494_v28 = vld [vmem:[%s3265_s12 + $0x8] sm:$0xf] }
  0x42   : > { %2622 = vmatprep.subr.bf16.mxu1 %v3185_v1  ;;  %v2343_v33 = vcombine.low %v1440_v27, %v3494_v28  ;;  %v3145_v27 = vld [vmem:[%s3796_s1 + $0x1d0] sm:$0xff]  }
  0x44   : > { %2767 = vmatpush3.bf16.msra.mxu0 %v3108_v34  ;;  %v3133_v34 = vld [vmem:[%s3796_s1 + $0xb0] sm:$0xff]   ;;  %v1495_v46 = vshll.u32 %v2343_v33, 16  ;;  %v1493_v55 = vshrl.u32 %v2343_v33, 16  ;;  %v3153_v33 = vld [vmem:[%s3265_s12 + $0x20] sm:$0x1f]  }
  0x45   : > { %2623 = vmatpush3.bf16.msra.mxu1 %v3109_v42  ;;  %2788 = vmatprep.subr.bf16.mxu0 %v3185_v1  ;;  %v3522_v42 = vld [vmem:[%s3265_s12 + $0x14] sm:$0xff]  }
  0x46   : > { %2605 = vmatmul.mubr.bf16.gmra.mrb[16].mxu1 %v315_v44  ;;  %2644 = vmatprep.subr.bf16.mxu1 %v3185_v1  ;;  %v3132_v44 = vld [vmem:[%s3265_s12 + $0x20] ss:$0 sps:$4 sm:$0xff]   ;;  %v1884_v53 = vrot.slane %v3522_v42, 1  ;;  %v1508_v11 = vshll.u32 %v3522_v42, 16 }
  0x47   : > { %2749 = vmatmul.mubr.bf16.gmra.mrb[16].mxu0 %v1105_v22  ;;  %2624 = vmatprep.mubr.msk.bf16.mxu1 %vm3186_vm0, %v3185_v1  ;;  %v1303_v22 = vrot.slane %v1301_v16, 2 }
  0x48   : > { %2768 = vmatprep.mubr.msk.bf16.mxu0 %vm3186_vm0, %v3185_v1 }
  0x49   : > { %v1304_v26 = vor.u32 %v1303_v22, %v1300_v21 }
  0x4b   : > { %v1305_v31 = vsel %vm1062_vm2, %v1295_v14, %v1304_v26  ;;  %v1860_v14 = vld [vmem:[%s3265_s12 + $0x4] sm:$0xe] }
  0x4e   : > { %2625 = vmatmul.mubr.bf16.vlgmr.msra.gmra.mrb[0].mxu1 %v3110_v56  ;;  %v1497_v56 = vrot.slane %v1495_v46, 1  ;;  %v3152_v46 = vld [vmem:[%s3796_s1 + $0x1e0] sm:$0xff]  }
  0x4f   : > { %2769 = vmatmul.mubr.bf16.vlgmr.msra.gmra.mrb[0].mxu0 %v1278_v59  ;;  %2628 = vmatprep.mubr.msk.bf16.mxu1 %vm3186_vm0, %v3185_v1  ;;  %v3542_v59 = vsel %vm866_vm3, %v1884_v53, %v1886_v52 }
  0x50   : > { %2789 = vmatpush3.bf16.msra.mxu0 %v3113_v57  ;;  %2772 = vmatprep.mubr.msk.bf16.mxu0 %vm3186_vm0, %v3185_v1  ;;  %v1500_v57 = vshll.u32 %v3514_v38, 16  ;;  %v3151_v38 = vld [vmem:[%s3796_s1 + $0xd8] sm:$0xff]  }
  0x51   : > { %2790 = vmatprep.subr.bf16.mxu0 %v3185_v1  ;;  %2645 = vmatpush3.bf16.msra.mxu1 %v3117_v58  ;;  %v3537_v58 = vsel %vm866_vm3, %v1882_v49, %v1884_v53  ;;  %v3155_v53 = vld [vmem:[%s3796_s1 + $0xe0] sm:$0xff]  }
  0x52   : > { %2646 = vmatprep.subr.bf16.mxu1 %v3185_v1  ;;  %v1502_v0 = vrot.slane %v1500_v57, 1 }
  0x54   : > { %2791 = vmatpush3.bf16.msra.mxu0 %v3114_v62  ;;  %v3142_v62 = vld [vmem:[%s3265_s12 + $0x10] sm:$0xff]   ;;  %v1506_v45 = vor.u32 %v1504_v9, %v1502_v0 }
  0x55   : > { %2792 = vmatprep.subr.bf16.mxu0 %v3185_v1  ;;  %2647 = vmatpush3.bf16.msra.mxu1 %v3119_v63  ;;  %v1498_v63 = vor.u32 %v1497_v56, %v1493_v55 }
  0x56   : > { %2629 = vmatmul.mubr.bf16.gmra.mrb[4].mxu1 %v3115_v6  ;;  %2648 = vmatprep.subr.bf16.mxu1 %v3185_v1  ;;  %v2264_v6 = vcombine.low %v3443_v4, %v823_v2  ;;  %v3159_v2 = vld [vmem:[%s3796_s1 + $0xf0] sm:$0xff]  }
  0x57   : > { %2773 = vmatmul.mubr.bf16.gmra.mrb[4].mxu0 %v1287_v8  ;;  %2632 = vmatprep.mubr.msk.bf16.mxu1 %vm3186_vm0, %v3185_v1  ;;  %v657_v8 = vshll.u32 %v3142_v62, 16  ;;  %v1503_v10 = vsel %vm276_vm1, %v1498_v63, %v1502_v0  ;;  %v3158_v0 = vld [vmem:[%s3796_s1 + $0x1f0] sm:$0xff]  }
  0x58   : > { %2793 = vmatpush3.bf16.msra.mxu0 %v3118_v7  ;;  %2776 = vmatprep.mubr.msk.bf16.mxu0 %vm3186_vm0, %v3185_v1  ;;  %v652_v7 = vsel %vm276_vm1, %v647_v60, %v651_v61  ;;  %v3156_v60 = vld [vmem:[%s3796_s1 + $0x1e8] sm:$0xff]  }
  0x59   : > { %2794 = vmatprep.subr.bf16.mxu0 %v3185_v1  ;;  %2649 = vmatpush3.bf16.msra.mxu1 %v3123_v12  ;;  %v3560_v12 = vrot.slane %v2264_v6, 1  ;;  %v659_v16 = vrot.slane %v657_v8, 1  ;;  %v3157_v61 = vld [vmem:[%s3796_s1 + $0xe8] sm:$0xff]   ;;  %v3160_v6 = vld [vmem:[%s3796_s1 + $0x1f8] sm:$0xff]  }
  0x5a   : > { %2650 = vmatprep.subr.bf16.mxu1 %v3185_v1 }
  0x5b   : > { %v3569_v4 = vsel %vm866_vm3, %v872_v50, %v3560_v12  ;;  %v1510_v50 = vrot.slane %v1508_v11, 1  ;;  %v660_v22 = vsel %vm276_vm1, %v655_v15, %v659_v16  ;;  %v3163_v11 = vld [vmem:[%s3265_s12 + $0x34] sm:$0xff]  }
  0x5c   : > { %2795 = vmatpush3.bf16.msra.mxu0 %v3122_v13  ;;  %v3144_v13 = vld [vmem:[%s3796_s1 + $0xc0] sm:$0xff]  }
  0x5d   : > { %2796 = vmatprep.subr.bf16.mxu0 %v3185_v1  ;;  %2651 = vmatpush3.bf16.msra.mxu1 %v3124_v17  ;;  %v3147_v17 = vld [vmem:[%s3265_s12 + $0x18] sm:$0xff]  }
  0x5e   : > { %2633 = vmatmul.mubr.bf16.gmra.mrb[8].mxu1 %v3120_v18  ;;  %2652 = vmatprep.subr.bf16.mxu1 %v3185_v1  ;;  %v2401_v18 = vcombine.low %v1860_v14, %v3494_v28  ;;  %v1512_v28 = vshrl.u32 %v3522_v42, 16  ;;  %v669_v40 = vshrl.u32 %v3147_v17, 16  ;;  %v673_v42 = vshll.u32 %v3153_v33, 16 }
  0x5f   : > { %2777 = vmatmul.mubr.bf16.gmra.mrb[8].mxu0 %v1296_v20  ;;  %2636 = vmatprep.mubr.msk.bf16.mxu1 %vm3186_vm0, %v3185_v1  ;;  %v3146_v20 = vld [vmem:[%s3796_s1 + $0xc8] sm:$0xff]   ;;  %v1718_v14 = vrot.slane %v3163_v11, 1 }
  0x60   : > { %2797 = vmatpush3.bf16.msra.mxu0 %v3125_v19  ;;  %2780 = vmatprep.mubr.msk.bf16.mxu0 %vm3186_vm0, %v3185_v1  ;;  %v3141_v19 = vld [vmem:[%s3796_s1 + $0x1c8] sm:$0xff]   ;;  %v1881_v21 = vrot.slane %v2401_v18, 1  ;;  %v675_v55 = vrot.slane %v673_v42, 1 }
  0x61   : > { %2653 = vmatpush3.bf16.msra.mxu1 %v3128_v23  ;;  %2798 = vmatprep.subr.bf16.mxu0 %v3185_v1  ;;  %v661_v23 = vshrl.u32 %v3142_v62, 16  ;;  %v3165_v18 = vld [vmem:[%s3796_s1 + $0x208] sm:$0xff]  }
  0x62   : > { %2654 = vmatprep.subr.bf16.mxu1 %v3185_v1 }
  0x64   : > { %2799 = vmatpush3.bf16.msra.mxu0 %v3129_v24  ;;  %v665_v24 = vshll.u32 %v3147_v17, 16  ;;  %v3166_v17 = vld [vmem:[%s3265_s12 + $0x3c] sm:$0xff]  }
  0x65   : > { %2655 = vmatpush3.bf16.msra.mxu1 %v3130_v25  ;;  %2800 = vmatprep.subr.bf16.mxu0 %v3185_v1  ;;  %v3588_v25 = vsel %vm866_vm3, %v1881_v21, %v1882_v49  ;;  %v1524_v49 = vshll.u32 %v3610_v37, 16  ;;  %v3169_v21 = vld [vmem:[%s3796_s1 + $0x218] sm:$0xff]  }
  0x66   : > { %2637 = vmatmul.mubr.bf16.gmra.mrb[12].mxu1 %v3126_v29  ;;  %2656 = vmatprep.subr.bf16.mxu1 %v3185_v1  ;;  %v1516_v29 = vshll.u32 %v3528_v47, 16 }
  0x67   : > { %2781 = vmatmul.mubr.bf16.gmra.mrb[12].mxu0 %v1305_v31  ;;  %2640 = vmatprep.mubr.msk.bf16.mxu1 %vm3186_vm0, %v3185_v1  ;;  %v663_v31 = vor.u32 %v661_v23, %v659_v16  ;;  %v1526_v57 = vrot.slane %v1524_v49, 1  ;;  %v3164_v16 = vld [vmem:[%s3796_s1 + $0x200] sm:$0xff]   ;;  %v3172_v23 = vld [vmem:[%s3265_s12 + $0x4c] sm:$0x1f]  }
  0x68   : > { %2784 = vmatprep.mubr.msk.bf16.mxu0 %vm3186_vm0, %v3185_v1  ;;  %2801 = vmatpush3.bf16.msra.mxu0 %v3131_v32  ;;  %v667_v32 = vrot.slane %v665_v24, 1  ;;  %v1518_v35 = vrot.slane %v1516_v29, 1  ;;  %v1724_v24 = vrot.slane %v3172_v23, 1 }
  0x69   : > { %2657 = vmatpush3.bf16.msra.mxu1 %v3133_v34  ;;  %2802 = vmatprep.subr.bf16.mxu0 %v3185_v1  ;;  %v1514_v34 = vor.u32 %v1512_v28, %v1510_v50  ;;  %v1530_v9 = vor.u32 %v1528_v5, %v1526_v57  ;;  %v3175_v28 = vld [vmem:[%s3796_s1 + $0x238] sm:$0xff]  }
  0x6a   : > { %2658 = vmatprep.subr.bf16.mxu1 %v3185_v1  ;;  %v671_v54 = vor.u32 %v669_v40, %v667_v32  ;;  %v1522_v56 = vor.u32 %v1520_v48, %v1518_v35 }
  0x6c   : > { %2803 = vmatpush3.bf16.msra.mxu0 %v3134_v36  ;;  %v3149_v36 = vld [vmem:[%s3796_s1 + $0x1d8] sm:$0xff]   ;;  %v676_v62 = vsel %vm276_vm1, %v671_v54, %v675_v55  ;;  %v1527_v63 = vsel %vm276_vm1, %v1522_v56, %v1526_v57 }
  0x6d   : > { %2659 = vmatpush3.bf16.msra.mxu1 %v3135_v39  ;;  %2824 = vmatprep.subr.bf16.mxu0 %v3185_v1  ;;  %v668_v39 = vsel %vm276_vm1, %v663_v31, %v667_v32 }
  0x6e   : > { %2641 = vmatmul.mubr.bf16.gmra.mrb[16].mxu1 %v3132_v44  ;;  %2680 = vmatprep.subr.bf16.mxu1 %v3185_v1  ;;  %v1519_v44 = vsel %vm276_vm1, %v1514_v34, %v1518_v35 }
  0x6f   : > { %2785 = vmatmul.mubr.bf16.gmra.mrb[16].mxu0 %v1304_v26  ;;  %2660 = vmatprep.mubr.msk.bf16.mxu1 %vm3186_vm0, %v3185_v1  ;;  %v1511_v26 = vsel %vm276_vm1, %v1506_v45, %v1510_v50  ;;  %v3167_v45 = vld [vmem:[%s3796_s1 + $0x210] sm:$0xff]   ;;  %v3168_v50 = vld [vmem:[%s3265_s12 + $0x44] sm:$0xff]  }
  0x70   : > { %2804 = vmatprep.mubr.msk.bf16.mxu0 %vm3186_vm0, %v3185_v1 }
  0x76   : > { %2661 = vmatmul.mubr.bf16.vlgmr.msra.gmra.mrb[0].mxu1 %v652_v7  ;;  %v3161_v7 = vld [vmem:[%s3796_s1 + $0xf8] sm:$0xff]  }
  0x77   : > { %2805 = vmatmul.mubr.bf16.vlgmr.msra.gmra.mrb[0].mxu0 %v1503_v10  ;;  %2664 = vmatprep.mubr.msk.bf16.mxu1 %vm3186_vm0, %v3185_v1  ;;  %v3162_v10 = vld [vmem:[%s3265_s12 + $0x2c] sm:$0xfe]  }
  0x78   : > { %2825 = vmatpush3.bf16.msra.mxu0 %v3140_v3  ;;  %2808 = vmatprep.mubr.msk.bf16.mxu0 %vm3186_vm0, %v3185_v1  ;;  %v677_v3 = vshrl.u32 %v3153_v33, 16 }
  0x79   : > { %2826 = vmatprep.subr.bf16.mxu0 %v3185_v1  ;;  %2681 = vmatpush3.bf16.msra.mxu1 %v3144_v13  ;;  %v1717_v13 = vrot.slane %v3162_v10, 1 }
  0x7a   : > { %2682 = vmatprep.subr.bf16.mxu1 %v3185_v1  ;;  %v679_v8 = vor.u32 %v677_v3, %v675_v55 }
  0x7b   : > { %v1719_v15 = vsel %vm866_vm3, %v1717_v13, %v1718_v14 }
  0x7c   : > { %2827 = vmatpush3.bf16.msra.mxu0 %v3141_v19  ;;  %v1720_v19 = vrot.slane %v3166_v17, 1 }
  0x7d   : > { %2828 = vmatprep.subr.bf16.mxu0 %v3185_v1  ;;  %2683 = vmatpush3.bf16.msra.mxu1 %v3146_v20  ;;  %v1722_v20 = vrot.slane %v3168_v50, 1 }
  0x7e   : > { %2665 = vmatmul.mubr.bf16.gmra.mrb[4].mxu1 %v660_v22  ;;  %2684 = vmatprep.subr.bf16.mxu1 %v3185_v1  ;;  %v3170_v22 = vld [vmem:[%s3796_s1 + $0x220] sm:$0xff]  }
  0x7f   : > { %2809 = vmatmul.mubr.bf16.gmra.mrb[4].mxu0 %v1511_v26  ;;  %2668 = vmatprep.mubr.msk.bf16.mxu1 %vm3186_vm0, %v3185_v1  ;;  %v3173_v26 = vld [vmem:[%s3796_s1 + $0x228] sm:$0xff]  }
  0x80   : > { %2829 = vmatpush3.bf16.msra.mxu0 %v3145_v27  ;;  %2812 = vmatprep.mubr.msk.bf16.mxu0 %vm3186_vm0, %v3185_v1  ;;  %v3174_v27 = vld [vmem:[%s3796_s1 + $0x230] sm:$0xff]  }
  0x81   : > { %2830 = vmatprep.subr.bf16.mxu0 %v3185_v1  ;;  %2685 = vmatpush3.bf16.msra.mxu1 %v3150_v30 }
  0x82   : > { %2686 = vmatprep.subr.bf16.mxu1 %v3185_v1 }
  0x84   : > { %2831 = vmatpush3.bf16.msra.mxu0 %v3149_v36 }
  0x85   : > { %2832 = vmatprep.subr.bf16.mxu0 %v3185_v1  ;;  %2687 = vmatpush3.bf16.msra.mxu1 %v3151_v38 }
  0x86   : > { %2669 = vmatmul.mubr.bf16.gmra.mrb[8].mxu1 %v668_v39  ;;  %2688 = vmatprep.subr.bf16.mxu1 %v3185_v1 }
  0x87   : > { %2813 = vmatmul.mubr.bf16.gmra.mrb[8].mxu0 %v1519_v44  ;;  %2672 = vmatprep.mubr.msk.bf16.mxu1 %vm3186_vm0, %v3185_v1 }
  0x88   : > { %2833 = vmatpush3.bf16.msra.mxu0 %v3152_v46  ;;  %2816 = vmatprep.mubr.msk.bf16.mxu0 %vm3186_vm0, %v3185_v1 }
  0x89   : > { %2689 = vmatpush3.bf16.msra.mxu1 %v3155_v53  ;;  %2834 = vmatprep.subr.bf16.mxu0 %v3185_v1 }
  0x8a   : > { %2690 = vmatprep.subr.bf16.mxu1 %v3185_v1 }
  0x8c   : > { %2835 = vmatpush3.bf16.msra.mxu0 %v3156_v60 }
  0x8d   : > { %2691 = vmatpush3.bf16.msra.mxu1 %v3157_v61  ;;  %2836 = vmatprep.subr.bf16.mxu0 %v3185_v1 }
  0x8e   : > { %2673 = vmatmul.mubr.bf16.gmra.mrb[12].mxu1 %v676_v62  ;;  %2692 = vmatprep.subr.bf16.mxu1 %v3185_v1 }
  0x8f   : > { %2817 = vmatmul.mubr.bf16.gmra.mrb[12].mxu0 %v1527_v63  ;;  %2676 = vmatprep.mubr.msk.bf16.mxu1 %vm3186_vm0, %v3185_v1  ;;  %v3764_v63 = vld [vmem:[%s3797_s2] ss:$0 sm:$0xff] }
  0x90   : > { %2820 = vmatprep.mubr.msk.bf16.mxu0 %vm3186_vm0, %v3185_v1  ;;  %2837 = vmatpush3.bf16.msra.mxu0 %v3158_v0 }
  0x91   : > { %2693 = vmatpush3.bf16.msra.mxu1 %v3159_v2  ;;  %2838 = vmatprep.subr.bf16.mxu0 %v3185_v1 }
  0x92   : > { %2694 = vmatprep.subr.bf16.mxu1 %v3185_v1 }
  0x94   : > { %2839 = vmatpush3.bf16.msra.mxu0 %v3160_v6 }
  0x95   : > { %2695 = vmatpush3.bf16.msra.mxu1 %v3161_v7  ;;  %2860 = vmatprep.subr.bf16.mxu0 %v3185_v1  ;;  %v2411_v7 = vld [vmem:[%s3798_s3] ss:$0 sm:$0xff] }
  0x96   : > { %2677 = vmatmul.mubr.bf16.gmra.mrb[16].mxu1 %v679_v8  ;;  %2896 = vmatprep.subr.bf16.mxu1 %v3185_v1 }
  0x97   : > { %2821 = vmatmul.mubr.bf16.gmra.mrb[16].mxu0 %v1530_v9  ;;  %2696 = vmatprep.mubr.msk.bf16.mxu1 %vm3186_vm0, %v3185_v1 }
  0x98   : > { %2840 = vmatprep.mubr.msk.bf16.mxu0 %vm3186_vm0, %v3185_v1 }
  0x9e   : > { %2697 = vmatmul.mubr.bf16.vlgmr.msra.gmra.mrb[0].mxu1 %v3397_v41  ;;  %v1721_v41 = vsel %vm866_vm3, %v1718_v14, %v1720_v19 }
  0x9f   : > { %2841 = vmatmul.mubr.bf16.vlgmr.msra.gmra.mrb[0].mxu0 %v1719_v15  ;;  %2700 = vmatprep.mubr.msk.bf16.mxu1 %vm3186_vm0, %v3185_v1 }
  0xa0   : > { %2861 = vmatpush3.bf16.msra.mxu0 %v3164_v16  ;;  %2844 = vmatprep.mubr.msk.bf16.mxu0 %vm3186_vm0, %v3185_v1 }
  0xa1   : > { %2862 = vmatprep.subr.bf16.mxu0 %v3185_v1  ;;  %2904 = vmatpush3.bf16.msra.mxu1 %v3164_v16 }
  0xa2   : > { %2897 = vmatprep.subr.bf16.mxu1 %v3185_v1 }
  0xa4   : > { %2863 = vmatpush3.bf16.msra.mxu0 %v3165_v18 }
  0xa5   : > { %2864 = vmatprep.subr.bf16.mxu0 %v3185_v1  ;;  %2905 = vmatpush3.bf16.msra.mxu1 %v3165_v18 }
  0xa6   : > { %2701 = vmatmul.mubr.bf16.gmra.mrb[4].mxu1 %v3404_v43  ;;  %2898 = vmatprep.subr.bf16.mxu1 %v3185_v1  ;;  %v1723_v43 = vsel %vm866_vm3, %v1720_v19, %v1722_v20 }
  0xa7   : > { %2845 = vmatmul.mubr.bf16.gmra.mrb[4].mxu0 %v1721_v41  ;;  %2704 = vmatprep.mubr.msk.bf16.mxu1 %vm3186_vm0, %v3185_v1 }
  0xa8   : > { %2865 = vmatpush3.bf16.msra.mxu0 %v3167_v45  ;;  %2848 = vmatprep.mubr.msk.bf16.mxu0 %vm3186_vm0, %v3185_v1 }
  0xa9   : > { %2866 = vmatprep.subr.bf16.mxu0 %v3185_v1  ;;  %2906 = vmatpush3.bf16.msra.mxu1 %v3167_v45 }
  0xaa   : > { %2899 = vmatprep.subr.bf16.mxu1 %v3185_v1 }
  0xac   : > { %2867 = vmatpush3.bf16.msra.mxu0 %v3169_v21 }
  0xad   : > { %2868 = vmatprep.subr.bf16.mxu0 %v3185_v1  ;;  %2907 = vmatpush3.bf16.msra.mxu1 %v3169_v21 }
  0xae   : > { %2705 = vmatmul.mubr.bf16.gmra.mrb[8].mxu1 %v3418_v51  ;;  %2900 = vmatprep.subr.bf16.mxu1 %v3185_v1  ;;  %v1725_v51 = vsel %vm866_vm3, %v1722_v20, %v1724_v24 }
  0xaf   : > { %2849 = vmatmul.mubr.bf16.gmra.mrb[8].mxu0 %v1723_v43  ;;  %2708 = vmatprep.mubr.msk.bf16.mxu1 %vm3186_vm0, %v3185_v1 }
  0xb0   : > { %2869 = vmatpush3.bf16.msra.mxu0 %v3170_v22  ;;  %2852 = vmatprep.mubr.msk.bf16.mxu0 %vm3186_vm0, %v3185_v1 }
  0xb1   : > { %2908 = vmatpush3.bf16.msra.mxu1 %v3170_v22  ;;  %2870 = vmatprep.subr.bf16.mxu0 %v3185_v1 }
  0xb2   : > { %2901 = vmatprep.subr.bf16.mxu1 %v3185_v1 }
  0xb4   : > { %2871 = vmatpush3.bf16.msra.mxu0 %v3173_v26 }
  0xb5   : > { %2909 = vmatpush3.bf16.msra.mxu1 %v3173_v26  ;;  %2872 = vmatprep.subr.bf16.mxu0 %v3185_v1 }
  0xb6   : > { %2709 = vmatmul.mubr.bf16.gmra.mrb[12].mxu1 %v3569_v4  ;;  %2902 = vmatprep.subr.bf16.mxu1 %v3185_v1  ;;  %v1888_v4 = vrot.slane %v3610_v37, 1 }
  0xb7   : > { %2853 = vmatmul.mubr.bf16.gmra.mrb[12].mxu0 %v1725_v51  ;;  %2712 = vmatprep.mubr.msk.bf16.mxu1 %vm3186_vm0, %v3185_v1 }
  0xb8   : > { %2856 = vmatprep.mubr.msk.bf16.mxu0 %vm3186_vm0, %v3185_v1  ;;  %2873 = vmatpush3.bf16.msra.mxu0 %v3174_v27  ;;  %v1889_v29 = vsel %vm866_vm3, %v1886_v52, %v1888_v4 }
  0xb9   : > { %2910 = vmatpush3.bf16.msra.mxu1 %v3174_v27  ;;  %2874 = vmatprep.subr.bf16.mxu0 %v3185_v1 }
  0xba   : > { %2903 = vmatprep.subr.bf16.mxu1 %v3185_v1 }
  0xbc   : > { %2875 = vmatpush3.bf16.msra.mxu0 %v3175_v28 }
  0xbd   : > { %2911 = vmatpush3.bf16.msra.mxu1 %v3175_v28 }
  0xbe   : > { %2713 = vmatmul.mubr.bf16.gmra.mrb[16].mxu1 %v3560_v12 }
  0xbf   : > { %2857 = vmatmul.mubr.bf16.gmra.mrb[16].mxu0 %v1724_v24  ;;  %2888 = vmatprep.mubr.msk.bf16.mxu1 %vm3186_vm0, %v3185_v1 }
  0xc0   : > { %2876 = vmatprep.mubr.msk.bf16.mxu0 %vm3186_vm0, %v3185_v1 }
  0xc6   : > { %2889 = vmatmul.mubr.bf16.vlgmr.msra.gmra.mrb[20].mxu1 %v1889_v29 }
  0xc7   : > { %2877 = vmatmul.mubr.bf16.vlgmr.msra.gmra.mrb[0].mxu0 %v3588_v25  ;;  %2892 = vmatprep.mubr.msk.bf16.mxu1 %vm3186_vm0, %v3185_v1 }
  0xc8   : > { %2880 = vmatprep.mubr.msk.bf16.mxu0 %vm3186_vm0, %v3185_v1 }
  0xce   : > { %2893 = vmatmul.mubr.bf16.gmra.mrb[24].mxu1 %v1888_v4 }
  0xcf   : > { %2881 = vmatmul.mubr.bf16.gmra.mrb[4].mxu0 %v3537_v58 }
  0xd0   : > { %2884 = vmatprep.mubr.msk.bf16.mxu0 %vm3186_vm0, %v3185_v1 }
  0xd7   : > { %2885 = vmatmul.mubr.bf16.gmra.mrb[8].mxu0 %v3542_v59 }
 0x171   : > { %v963_v47 = vpop.f32.mrb[0].mxu1 }
 0x172   : > { %v2698_v12 = vpop.f32.mrb[1].mxu1 }
 0x173   : > { %v966_v52 = vpop.f32.mrb[2].mxu1 }
 0x174   : > { %v2699_v30 = vpop.f32.mrb[3].mxu1 }
 0x179   : > { %v971_v31 = vpop.f32.mrb[4].mxu1 }
 0x17a   : > { %v2702_v25 = vpop.f32.mrb[5].mxu1 }
 0x17b   : > { %v3755_v32 = vpop.f32.mrb[6].mxu1 }
 0x17c   : > { %v2703_v33 = vpop.f32.mrb[7].mxu1 }
 0x181   : > { %v3757_v34 = vpop.f32.mrb[8].mxu1 }
 0x182   : > { %v2706_v35 = vpop.f32.mrb[9].mxu1 }
 0x183   : > { %v3759_v36 = vpop.f32.mrb[10].mxu1 }
 0x184   : > { %v2707_v58 = vpop.f32.mrb[11].mxu1 }
 0x189   : > { %v987_v37 = vpop.f32.mrb[12].mxu1 }
 0x18a   : > { %v1837_v38 = vpop.f32.mrb[12].mxu0  ;;  %v2710_v1 = vpop.f32.mrb[13].mxu1 }
 0x18b   : > { %v2918_v39 = vadd.f32 %v1837_v38, %v987_v37  ;;  %v2854_v59 = vpop.f32.mrb[13].mxu0  ;;  %v990_v40 = vpop.f32.mrb[14].mxu1 }
 0x18c   : > { %v1840_v42 = vpop.f32.mrb[14].mxu0  ;;  %v2711_v44 = vpop.f32.mrb[15].mxu1 }
 0x18d   : > { %v2920_v46 = vadd.f32 %v1840_v42, %v990_v40  ;;  %v2855_v48 = vpop.f32.mrb[15].mxu0 }
 0x191   : > { %v995_v49 = vpop.f32.mrb[16].mxu1 }
 0x192   : > { %v1845_v53 = vpop.f32.mrb[16].mxu0  ;;  %v2714_v54 = vpop.f32.mrb[17].mxu1 }
 0x193   : > { %v2922_v55 = vadd.f32 %v1845_v53, %v995_v49  ;;  %v2858_v56 = vpop.f32.mrb[17].mxu0  ;;  %v998_v57 = vpop.f32.mrb[18].mxu1 }
 0x194   : > { %v1848_v60 = vpop.f32.mrb[18].mxu0  ;;  %v2715_v61 = vpop.f32.mrb[19].mxu1 }
 0x195   : > { %v2859_v62 = vpop.f32.mrb[19].mxu0 }
 0x199   : > { %v2001_v0 = vpop.f32.mrb[20].mxu1 }
 0x19a   : > { %v1977_v2 = vpop.f32.mrb[0].mxu0  ;;  %v2919_v3 = vadd.f32 %v2918_v39, %v2001_v0  ;;  %v2890_v5 = vpop.f32.mrb[21].mxu1 }
 0x19b   : > { %v2912_v6 = vadd.f32 %v1977_v2, %v963_v47  ;;  %v2878_v8 = vpop.f32.mrb[1].mxu0  ;;  %v2004_v9 = vpop.f32.mrb[22].mxu1 }
 0x19c   : > { %v2037_v10 = vmul.f32 %v2919_v3, %v3764_v63  ;;  %v1980_v11 = vpop.f32.mrb[2].mxu0  ;;  %v2921_v13 = vadd.f32 %v2920_v46, %v2004_v9  ;;  %v2891_v14 = vpop.f32.mrb[23].mxu1 }
 0x19d   : > { %v2031_v15 = vmul.f32 %v2912_v6, %v3764_v63  ;;  %v2913_v16 = vadd.f32 %v1980_v11, %v966_v52  ;;  %v2879_v17 = vpop.f32.mrb[3].mxu0 }
 0x19e   : > { %v2053_v18 = vadd.f32 %v2411_v7, %v2037_v10  ;;  %v2038_v19 = vmul.f32 %v2921_v13, %v3764_v63 }
 0x19f   : > { %v2047_v41 = vadd.f32 %v2411_v7, %v2031_v15  ;;  %v2032_v45 = vmul.f32 %v2913_v16, %v3764_v63 }
 0x1a0   : > { %v2054_v50 = vadd.f32 %v2411_v7, %v2038_v19  ;;  %v2062_v43 = vmax.f32 %v2053_v18, 0.0 }
 0x1a1   : > { %v2048_v20 = vadd.f32 %v2411_v7, %v2032_v45  ;;  %v2009_v21 = vpop.f32.mrb[24].mxu1  ;;  %v2056_v51 = vmax.f32 %v2047_v41, 0.0 }
 0x1a2   : > { %v2063_v22 = vmax.f32 %v2054_v50, 0.0  ;;  %v1985_v23 = vpop.f32.mrb[4].mxu0  ;;  %v2923_v24 = vadd.f32 %v2922_v55, %v2009_v21  ;;  %v2894_v26 = vpop.f32.mrb[25].mxu1 }
 0x1a3   : > { %v2057_v27 = vmax.f32 %v2048_v20, 0.0  ;;  %v2914_v28 = vadd.f32 %v1985_v23, %v971_v31  ;;  %v2882_v4 = vpop.f32.mrb[5].mxu0  ;;  %v2012_v29 = vpop.f32.mrb[26].mxu1 }
 0x1a4   : > { %v2450_v47 = vpack.c.bf16 %v2063_v22, %v2062_v43  ;;  %v2039_v12 = vmul.f32 %v2923_v24, %v3764_v63  ;;  %v1988_v52 = vpop.f32.mrb[6].mxu0  ;;  %v2895_v30 = vpop.f32.mrb[27].mxu1 }
 0x1a5   : > { %v2435_v25 = vpack.c.bf16 %v2057_v27, %v2056_v51  ;;  %v2033_v33 = vmul.f32 %v2914_v28, %v3764_v63  ;;  %v2915_v35 = vadd.f32 %v1988_v52, %v3755_v32  ;;  %v2883_v58 = vpop.f32.mrb[7].mxu0 }
 0x1a6   : > { %2454 = vst [vmem:[%s3777_s6 + $0x18] sm:$0xff] %v2450_v47   ;;  %v2055_v37 = vadd.f32 %v2411_v7, %v2039_v12 }
 0x1a7   : > { %2436 = vst [vmem:[%s3777_s6] sm:$0xff] %v2435_v25   ;;  %v2049_v38 = vadd.f32 %v2411_v7, %v2033_v33  ;;  %v2034_v31 = vmul.f32 %v2915_v35, %v3764_v63 }
 0x1a8   : > { %v2064_v1 = vmax.f32 %v2055_v37, 0.0 }
 0x1a9   : > { %v2050_v39 = vadd.f32 %v2411_v7, %v2034_v31  ;;  %v2058_v42 = vmax.f32 %v2049_v38, 0.0 }
 0x1aa   : > { %v2431_v59 = vpack.c.bf16 %v2064_v1, %v2064_v1  ;;  %v1993_v40 = vpop.f32.mrb[8].mxu0 }
 0x1ab   : > { %v2059_v44 = vmax.f32 %v2050_v39, 0.0  ;;  %v2916_v46 = vadd.f32 %v1993_v40, %v3757_v34  ;;  %v2886_v48 = vpop.f32.mrb[9].mxu0 }
 0x1ac   : > { %2110 = vst [vmem:[%s3777_s6 + $0x20] sm:$0xf] %v2431_v59  ;;  %v1996_v32 = vpop.f32.mrb[10].mxu0 }
 0x1ad   : > { %v2440_v49 = vpack.c.bf16 %v2059_v44, %v2058_v42  ;;  %v2035_v53 = vmul.f32 %v2916_v46, %v3764_v63  ;;  %v2917_v54 = vadd.f32 %v1996_v32, %v3759_v36  ;;  %v2887_v55 = vpop.f32.mrb[11].mxu0 }
 0x1af   : > { %2452 = vst [vmem:[%s3777_s6 + $0x8] sm:$0xff] %v2440_v49   ;;  %v2051_v56 = vadd.f32 %v2411_v7, %v2035_v53  ;;  %v2036_v57 = vmul.f32 %v2917_v54, %v3764_v63 }
 0x1b1   : > { %v2052_v60 = vadd.f32 %v2411_v7, %v2036_v57  ;;  %v2060_v61 = vmax.f32 %v2051_v56, 0.0 }
 0x1b3   : > { %v2061_v62 = vmax.f32 %v2052_v60, 0.0 }
 0x1b5   : > { %v2445_v0 = vpack.c.bf16 %v2061_v62, %v2060_v61 }
 0x1b7   : > { %2453 = vst [vmem:[%s3777_s6 + $0x10] sm:$0xff] %v2445_v0  }
 0x1b8 PF: > { %s14_s15 = sadd.s32 1, %s3183_s15  }
 0x1b9   : > { %p11_p4 = scmp.ge.s32.totalorder %s14_s15, 4  }
 0x1bb   :  { %13 = sbr.rel (!%p11_p4) target bundleno = 1 (0x1), region = 74 }

// kernel: _lambda_.6
= control target key start
LH: loop header
LB: loop body
LE: loop exit
PB: predicated region body
PF: predicated region fallthrough
CT: control target
= control target key end

     0   :  { %s656_s15 = smov 0   ;;  %s716_s0 = inlined_call_operand.vmem [shape: bf16[2,64,128], index: 0, kind: input, shape index: {}]   ;;  %s717_s1 = inlined_call_operand.vmem [shape: bf16[1,128,128], index: 1, kind: input, shape index: {}]   ;;  %s718_s2 = inlined_call_operand.vmem [shape: f32[1,128], index: 2, kind: input, shape index: {}]   ;;  %s719_s3 = inlined_call_operand.vmem [shape: f32[1,128], index: 3, kind: input, shape index: {}]   ;;  %s720_s4 = inlined_call_operand.vmem [shape: bf16[2,64,128], index: 4, kind: output, shape index: {}]  }
   0x1 LB: > { %s485_s16 = sadd.s32 4294967295, %s629_s15   ;;  %p489_p0 = scmp.ge.s32.totalorder %s629_s15, 1  ;;  %s629_s15 = sphi %s656_s15, %s14_s15  }
   0x2   : > { %p162_p1 = scmp.lt.s32.totalorder %s629_s15, 3 }
   0x4   : > { %p163_p2 = pnand %p489_p0, %p162_p1 }
   0x5   : > { %v611_v0 = vld [vmem:[%s717_s1] sm:$0xff] (!%p163_p2)   ;;  %p188_p3 = scmp.lt.s32.totalorder (!%p163_p2), %s485_s16, 1  ;;  %v612_v1 = vld [vmem:[%s717_s1 + $0x8] sm:$0xff] (!%p163_p2)   ;;  %v613_v2 = vld [vmem:[%s717_s1 + $0x10] sm:$0xff] (!%p163_p2)  }
   0x6   : > { %166 = sbr.rel (%p163_p2) target bundleno = 260 (0x104), region = 36  ;;  %563 = vmatprep.subr.bf16.mxu0 (!%p163_p2), %v611_v0  ;;  %587 = vmatprep.subr.bf16.mxu1 (!%p163_p2), %v611_v0  ;;  %v614_v3 = vld [vmem:[%s717_s1 + $0x18] sm:$0xff] (!%p163_p2)   ;;  %v615_v6 = vld [vmem:[%s717_s1 + $0x20] sm:$0xff] (!%p163_p2)   ;;  %v616_v7 = vld [vmem:[%s717_s1 + $0x28] sm:$0xff] (!%p163_p2)  }
   0x7   : > { %564 = vmatpush3.bf16.msra.mxu0 (!%p163_p2), %v611_v0  ;;  %595 = vmatpush3.bf16.msra.mxu1 (!%p163_p2), %v611_v0  ;;  %v617_v8 = vld [vmem:[%s717_s1 + $0x30] sm:$0xff] (!%p163_p2)   ;;  %v618_v9 = vld [vmem:[%s717_s1 + $0x38] sm:$0xff] (!%p163_p2)   ;;  %v506_v12 = vld [vmem:[%s718_s2] ss:$0 sm:$0xff] (!%p163_p2) }
   0x8   : > { %565 = vmatprep.subr.bf16.mxu0 (!%p163_p2), %v612_v1  ;;  %588 = vmatprep.subr.bf16.mxu1 (!%p163_p2), %v612_v1  ;;  %v507_v19 = vld [vmem:[%s719_s3] ss:$0 sm:$0xff] (!%p163_p2) }
   0xb   : > { %566 = vmatpush3.bf16.msra.mxu0 (!%p163_p2), %v612_v1  ;;  %596 = vmatpush3.bf16.msra.mxu1 (!%p163_p2), %v612_v1 }
   0xc   : > { %567 = vmatprep.subr.bf16.mxu0 (!%p163_p2), %v613_v2  ;;  %589 = vmatprep.subr.bf16.mxu1 (!%p163_p2), %v613_v2 }
   0xd   : > { %s722_s16 = smov (!%p188_p3, %s485_s16), 1 }
   0xe   : > { %s518_s23 = sshll.u32 %s722_s16, 5 }
   0xf   : > { %s681_s26 = scalar_lea.vmem %s716_s0, %s518_s23  ;;  %568 = vmatpush3.bf16.msra.mxu0 %v613_v2  ;;  %597 = vmatpush3.bf16.msra.mxu1 %v613_v2  ;;  %s197_s19 = scalar_lea.vmem %s720_s4, %s518_s23 }
  0x10   : > { %v619_v4 = vld [vmem:[%s681_s26] sm:$0xff]   ;;  %v620_v5 = vld [vmem:[%s681_s26 + $0x10] sm:$0xff]   ;;  %569 = vmatprep.subr.bf16.mxu0 %v614_v3  ;;  %590 = vmatprep.subr.bf16.mxu1 %v614_v3  ;;  %v621_v10 = vld [vmem:[%s681_s26 + $0x8] sm:$0xff]  }
  0x11   : > { %579 = vmatprep.mubr.bf16.mxu0 %v619_v4  ;;  %583 = vmatprep.mubr.bf16.mxu1 %v620_v5  ;;  %v622_v11 = vld [vmem:[%s681_s26 + $0x18] sm:$0xff]  }
  0x13   : > { %570 = vmatpush3.bf16.msra.mxu0 %v614_v3  ;;  %598 = vmatpush3.bf16.msra.mxu1 %v614_v3 }
  0x14   : > { %571 = vmatprep.subr.bf16.mxu0 %v615_v6  ;;  %591 = vmatprep.subr.bf16.mxu1 %v615_v6 }
  0x17   : > { %572 = vmatpush3.bf16.msra.mxu0 %v615_v6  ;;  %599 = vmatpush3.bf16.msra.mxu1 %v615_v6 }
  0x18   : > { %573 = vmatprep.subr.bf16.mxu0 %v616_v7  ;;  %592 = vmatprep.subr.bf16.mxu1 %v616_v7 }
  0x1b   : > { %574 = vmatpush3.bf16.msra.mxu0 %v616_v7  ;;  %600 = vmatpush3.bf16.msra.mxu1 %v616_v7 }
  0x1c   : > { %575 = vmatprep.subr.bf16.mxu0 %v617_v8  ;;  %593 = vmatprep.subr.bf16.mxu1 %v617_v8 }
  0x1f   : > { %576 = vmatpush3.bf16.msra.mxu0 %v617_v8  ;;  %601 = vmatpush3.bf16.msra.mxu1 %v617_v8 }
  0x20   : > { %577 = vmatprep.subr.bf16.mxu0 %v618_v9  ;;  %594 = vmatprep.subr.bf16.mxu1 %v618_v9 }
  0x23   : > { %578 = vmatpush3.bf16.msra.mxu0 %v618_v9  ;;  %602 = vmatpush3.bf16.msra.mxu1 %v618_v9 }
  0x26   : > { %580 = vmatmul.mubr.bf16.vlgmr.msra.gmra.mrb[0].mxu0 %v621_v10  ;;  %584 = vmatmul.mubr.bf16.vlgmr.msra.gmra.mrb[0].mxu1 %v622_v11 }
  0xf9   : > { %v581_v13 = vpop.f32.mrb[0].mxu0  ;;  %v585_v14 = vpop.f32.mrb[0].mxu1 }
  0xfa   : > { %v369_v15 = vmul.f32 %v581_v13, %v506_v12  ;;  %v373_v16 = vmul.f32 %v585_v14, %v506_v12  ;;  %v329_v17 = vpop.f32.mrb[1].mxu0  ;;  %v345_v18 = vpop.f32.mrb[1].mxu1 }
  0xfb   : > { %v367_v20 = vmul.f32 %v506_v12, %v329_v17  ;;  %v371_v21 = vmul.f32 %v506_v12, %v345_v18  ;;  %v582_v22 = vpop.f32.mrb[2].mxu0  ;;  %v586_v23 = vpop.f32.mrb[2].mxu1 }
  0xfc   : > { %v370_v24 = vmul.f32 %v582_v22, %v506_v12  ;;  %v374_v25 = vmul.f32 %v586_v23, %v506_v12  ;;  %v332_v26 = vpop.f32.mrb[3].mxu0  ;;  %v348_v27 = vpop.f32.mrb[3].mxu1  ;;  %v384_v30 = vadd.f32 %v507_v19, %v369_v15  ;;  %v388_v31 = vadd.f32 %v507_v19, %v373_v16 }
  0xfd   : > { %v368_v28 = vmul.f32 %v506_v12, %v332_v26  ;;  %v372_v29 = vmul.f32 %v506_v12, %v348_v27  ;;  %v382_v34 = vadd.f32 %v507_v19, %v367_v20  ;;  %v386_v35 = vadd.f32 %v507_v19, %v371_v21 }
  0xfe   : > { %v385_v32 = vadd.f32 %v507_v19, %v370_v24  ;;  %v389_v33 = vadd.f32 %v507_v19, %v374_v25 }
  0xff   : > { %v383_v36 = vadd.f32 %v507_v19, %v368_v28  ;;  %v387_v37 = vadd.f32 %v507_v19, %v372_v29 }
 0x100   : > { %v536_v38 = vpack.c.bf16 %v385_v32, %v384_v30  ;;  %v546_v39 = vpack.c.bf16 %v389_v33, %v388_v31 }
 0x101   : > { %v531_v40 = vpack.c.bf16 %v383_v36, %v382_v34  ;;  %v541_v41 = vpack.c.bf16 %v387_v37, %v386_v35 }
 0x102   : > { %548 = vst [vmem:[%s197_s19 + $0x8] sm:$0xff] %v536_v38   ;;  %550 = vst [vmem:[%s197_s19 + $0x18] sm:$0xff] %v546_v39  }
 0x103   : > { %532 = vst [vmem:[%s197_s19] sm:$0xff] %v531_v40   ;;  %549 = vst [vmem:[%s197_s19 + $0x10] sm:$0xff] %v541_v41  }
 0x104 PF: > { %s14_s15 = sadd.s32 1, %s629_s15  }
 0x105   : > { %p11_p4 = scmp.ge.s32.totalorder %s14_s15, 4  }
 0x107   :  { %13 = sbr.rel (!%p11_p4) target bundleno = 1 (0x1), region = 66 }

// kernel: _lambda_.7
= control target key start
LH: loop header
LB: loop body
LE: loop exit
PB: predicated region body
PF: predicated region fallthrough
CT: control target
= control target key end

     0   :  { %s3199_s18 = smov 0   ;;  %s3883_s0 = inlined_call_operand.vmem [shape: bf16[2,102,128], index: 0, kind: input, shape index: {}]   ;;  %s3884_s1 = inlined_call_operand.vmem [shape: bf16[9,128,128], index: 1, kind: input, shape index: {}]   ;;  %s3885_s2 = inlined_call_operand.vmem [shape: f32[1,128], index: 2, kind: input, shape index: {}]   ;;  %s3886_s3 = inlined_call_operand.vmem [shape: f32[1,128], index: 3, kind: input, shape index: {}]   ;;  %s3887_s4 = inlined_call_operand.vmem [shape: bf16[2,80,128], index: 4, kind: input, shape index: {}]   ;;  %s3888_s5 = inlined_call_operand.vmem [shape: bf16[2,80,128], index: 5, kind: output, shape index: {}]  }
   0x1 LB: > { %s2141_s19 = sadd.s32 4294967295, %s3165_s18   ;;  %p2145_p0 = scmp.ge.s32.totalorder %s3165_s18, 1  ;;  %s3165_s18 = sphi %s3199_s18, %s15_s18  }
   0x2   : > { %p197_p1 = scmp.lt.s32.totalorder %s3165_s18, 3 }
   0x4   : > { %p198_p2 = pnand %p2145_p0, %p197_p1 }
   0x5   : > { %v3064_v0 = vld [vmem:[%s3884_s1 + $0x40] sm:$0xff] (!%p198_p2)   ;;  %v3167_v1 = vmov (!%p198_p2), 0.0   ;;  %v3066_v3 = vld [vmem:[%s3884_s1 + $0x48] sm:$0xff] (!%p198_p2)   ;;  %vm3168_vm0 = vmmov (!%p198_p2), 0   ;;  %p230_p3 = scmp.lt.s32.totalorder (!%p198_p2), %s2141_s19, 1  ;;  %v3068_v5 = vld [vmem:[%s3884_s1 + $0x50] sm:$0xff] (!%p198_p2)  }
   0x6   : > { %201 = sbr.rel (%p198_p2) target bundleno = 442 (0x1ba), region = 40  ;;  %2566 = vmatprep.subr.bf16.mxu1 (!%p198_p2), %v3167_v1  ;;  %2710 = vmatprep.subr.bf16.mxu0 (!%p198_p2), %v3167_v1  ;;  %v3065_v2 = vld [vmem:[%s3884_s1 + $0x100] sm:$0xff] (!%p198_p2)   ;;  %v3067_v4 = vld [vmem:[%s3884_s1 + $0x108] sm:$0xff] (!%p198_p2)   ;;  %v3069_v6 = vld [vmem:[%s3884_s1 + $0x110] sm:$0xff] (!%p198_p2)   ;;  %vm318_vm1 = vsmask.f32 (!%p198_p2), 7424 }
   0x7   : > { %2567 = vmatpush3.bf16.msra.mxu1 (!%p198_p2), %v3064_v0  ;;  %2582 = vmatprep.mubr.msk.bf16.mxu1 (!%p198_p2), %vm3168_vm0, %v3167_v1  ;;  %v3070_v7 = vld [vmem:[%s3884_s1 + $0x58] sm:$0xff] (!%p198_p2)   ;;  %v3072_v9 = vld [vmem:[%s3884_s1 + $0x60] sm:$0xff] (!%p198_p2)   ;;  %v3074_v11 = vld [vmem:[%s3884_s1 + $0x68] sm:$0xff] (!%p198_p2)   ;;  %vm1008_vm2 = vsmask.f32 (!%p198_p2), 6400  ;;  %vm636_vm3 = vcmask (!%p198_p2), 1046528  }
   0x8   : > { %2711 = vmatpush3.bf16.msra.mxu0 (!%p198_p2), %v3065_v2  ;;  %2568 = vmatprep.subr.bf16.mxu1 (!%p198_p2), %v3167_v1  ;;  %v3071_v8 = vld [vmem:[%s3884_s1 + $0x118] sm:$0xff] (!%p198_p2)   ;;  %v3073_v10 = vld [vmem:[%s3884_s1 + $0x120] sm:$0xff] (!%p198_p2)   ;;  %v3075_v19 = vld [vmem:[%s3884_s1 + $0x128] sm:$0xff] (!%p198_p2)   ;;  %vm1219_vm4 = vcmask (!%p198_p2), 1045504   ;;  %vm1802_vm5 = vcmask (!%p198_p2), 1044480  }
   0x9   : > { %2712 = vmatprep.subr.bf16.mxu0 (!%p198_p2), %v3167_v1  ;;  %2726 = vmatprep.mubr.msk.bf16.mxu0 (!%p198_p2), %vm3168_vm0, %v3167_v1  ;;  %v3076_v22 = vld [vmem:[%s3884_s1 + $0x70] sm:$0xff] (!%p198_p2)   ;;  %v3078_v36 = vld [vmem:[%s3884_s1 + $0x78] sm:$0xff] (!%p198_p2)   ;;  %v3084_v45 = vld [vmem:[%s3884_s1 + $0x140] sm:$0xff] (!%p198_p2)   ;;  %vm1591_vm6 = vsmask.f32 (!%p198_p2), 5376 }
   0xa   : > { %v3077_v25 = vld [vmem:[%s3884_s1 + $0x130] sm:$0xff] (!%p198_p2)   ;;  %v3079_v41 = vld [vmem:[%s3884_s1 + $0x138] sm:$0xff] (!%p198_p2)   ;;  %v3088_v53 = vld [vmem:[%s3884_s1] sm:$0xff] (!%p198_p2)  }
   0xb   : > { %2569 = vmatpush3.bf16.msra.mxu1 (!%p198_p2), %v3066_v3  ;;  %v3085_v54 = vld [vmem:[%s3884_s1 + $0x148] sm:$0xff] (!%p198_p2)   ;;  %v3089_v3 = vld [vmem:[%s3884_s1 + $0x150] sm:$0xff] (!%p198_p2)  }
   0xc   : > { %2713 = vmatpush3.bf16.msra.mxu0 (!%p198_p2), %v3067_v4  ;;  %2570 = vmatprep.subr.bf16.mxu1 (!%p198_p2), %v3167_v1  ;;  %v3090_v61 = vld [vmem:[%s3884_s1 + $0x8] sm:$0xff] (!%p198_p2)  }
   0xd   : > { %s3890_s19 = smov (!%p230_p3, %s2141_s19), 1  ;;  %2714 = vmatprep.subr.bf16.mxu0 %v3167_v1 }
   0xe   : > { %s3052_s7 = smul.u32 52, %s3890_s19 }
   0xf   : > { %2571 = vmatpush3.bf16.msra.mxu1 %v3068_v5  ;;  %s3053_s9 = smul.u32 40, %s3890_s19 }
  0x10   : > { %2715 = vmatpush3.bf16.msra.mxu0 %v3069_v6  ;;  %2572 = vmatprep.subr.bf16.mxu1 %v3167_v1  ;;  %s3249_s14 = scalar_lea.vmem %s3883_s0, %s3052_s7 }
  0x11   : > { %2716 = vmatprep.subr.bf16.mxu0 %v3167_v1  ;;  %v246_v12 = vld [vmem:[%s3249_s14] sm:$0xf]  ;;  %v3264_v13 = vld [vmem:[%s3249_s14 + $0x4] sm:$0xf]  ;;  %v3270_v15 = vld [vmem:[%s3249_s14 + $0x8] sm:$0xff]   ;;  %s3827_s12 = scalar_lea.vmem %s3887_s4, %s3053_s9  ;;  %s3858_s22 = scalar_lea.vmem %s3888_s5, %s3053_s9 }
  0x12   : > { %v3267_v14 = vcombine.low %v246_v12, %v3264_v13  ;;  %v3273_v16 = vld [vmem:[%s3249_s14 + $0xc] sm:$0xff]   ;;  %v784_v17 = vld [vmem:[%s3249_s14 + $0x4] sm:$0xe]  ;;  %v3277_v18 = vld [vmem:[%s3249_s14 + $0x8] sm:$0xf]  ;;  %v327_v26 = vshll.u32 %v3270_v15, 16 }
  0x13   : > { %2573 = vmatpush3.bf16.msra.mxu1 %v3070_v7  ;;  %v3285_v21 = vcombine.low %v784_v17, %v3277_v18  ;;  %v1018_v23 = vshrl.u32 %v3273_v16, 16  ;;  %v1021_v24 = vshll.u32 %v3273_v16, 16  ;;  %v3303_v35 = vld [vmem:[%s3249_s14 + $0x14] sm:$0xff]   ;;  %v331_v46 = vshrl.u32 %v3270_v15, 16  ;;  %v3327_v52 = vld [vmem:[%s3249_s14 + $0x1c] sm:$0xff]   ;;  %v3358_v6 = vld [vmem:[%s3249_s14 + $0x24] sm:$0xff]  }
  0x14   : > { %2717 = vmatpush3.bf16.msra.mxu0 %v3071_v8  ;;  %2574 = vmatprep.subr.bf16.mxu1 %v3167_v1  ;;  %v322_v20 = vshll.u32 %v3267_v14, 16  ;;  %v320_v29 = vshrl.u32 %v3267_v14, 16  ;;  %v329_v37 = vrot.slane %v327_v26, 1  ;;  %v3309_v39 = vld [vmem:[%s3249_s14 + $0x10] sm:$0xff]   ;;  %v1027_v40 = vshrl.u32 %v3303_v35, 16  ;;  %v3339_v57 = vld [vmem:[%s3249_s14 + $0x18] sm:$0xff]  }
  0x15   : > { %2718 = vmatprep.subr.bf16.mxu0 %v3167_v1  ;;  %v1010_v27 = vshrl.u32 %v3285_v21, 16  ;;  %v1013_v28 = vshll.u32 %v3285_v21, 16  ;;  %v1020_v33 = vrot.slane %v1018_v23, 1  ;;  %v1023_v34 = vrot.slane %v1021_v24, 2  ;;  %v3094_v7 = vld [vmem:[%s3884_s1 + $0x10] sm:$0xff]   ;;  %v3093_v12 = vld [vmem:[%s3884_s1 + $0x158] sm:$0xff]  }
  0x16   : > { %v324_v30 = vrot.slane %v322_v20, 1  ;;  %v1030_v44 = vshll.u32 %v3303_v35, 16  ;;  %v335_v48 = vshll.u32 %v3309_v39, 16  ;;  %v1029_v49 = vrot.slane %v1027_v40, 1  ;;  %v3095_v20 = vld [vmem:[%s3884_s1 + $0x18] sm:$0xff]  }
  0x17   : > { %2575 = vmatpush3.bf16.msra.mxu1 %v3072_v9  ;;  %v1012_v31 = vrot.slane %v1010_v27, 1  ;;  %v1015_v32 = vrot.slane %v1013_v28, 2  ;;  %v1024_v43 = vor.u32 %v1023_v34, %v1020_v33  ;;  %v333_v55 = vor.u32 %v331_v46, %v329_v37  ;;  %v3389_v26 = vld [vmem:[%s3249_s14 + $0x2c] ss:$0 sps:$4 sm:$0x33]  }
  0x18   : > { %2719 = vmatpush3.bf16.msra.mxu0 %v3073_v10  ;;  %2576 = vmatprep.subr.bf16.mxu1 %v3167_v1  ;;  %v325_v38 = vor.u32 %v324_v30, %v320_v29  ;;  %v1032_v51 = vrot.slane %v1030_v44, 2  ;;  %v337_v56 = vrot.slane %v335_v48, 1  ;;  %v1036_v59 = vshrl.u32 %v3327_v52, 16  ;;  %v3368_v10 = vld [vmem:[%s3249_s14 + $0x20] sm:$0xff]  }
  0x19   : > { %2720 = vmatprep.subr.bf16.mxu0 %v3167_v1  ;;  %v1016_v42 = vor.u32 %v1015_v32, %v1012_v31  ;;  %v1039_v60 = vshll.u32 %v3327_v52, 16  ;;  %v339_v63 = vshrl.u32 %v3309_v39, 16  ;;  %v343_v0 = vshll.u32 %v3339_v57, 16  ;;  %v3099_v30 = vld [vmem:[%s3884_s1 + $0x20] sm:$0xff]   ;;  %v3100_v32 = vld [vmem:[%s3884_s1 + $0x168] sm:$0xff]  }
  0x1a   : > { %v330_v47 = vsel %vm318_vm1, %v325_v38, %v329_v37  ;;  %v1033_v58 = vor.u32 %v1032_v51, %v1029_v49  ;;  %v338_v62 = vsel %vm318_vm1, %v333_v55, %v337_v56  ;;  %v1038_v4 = vrot.slane %v1036_v59, 1  ;;  %v3397_v31 = vld [vmem:[%s3249_s14 + $0x28] ss:$0 sps:$4 sm:$0x11]   ;;  %v3105_v51 = vld [vmem:[%s3884_s1 + $0x30] sm:$0xff]  }
  0x1b   : > { %2577 = vmatpush3.bf16.msra.mxu1 %v3074_v11  ;;  %v1025_v50 = vsel %vm1008_vm2, %v1016_v42, %v1024_v43  ;;  %v1041_v5 = vrot.slane %v1039_v60, 2  ;;  %v341_v8 = vor.u32 %v339_v63, %v337_v56  ;;  %v345_v9 = vrot.slane %v343_v0, 1  ;;  %v3107_v63 = vld [vmem:[%s3884_s1 + $0x38] sm:$0xff]  }
  0x1c   : > { %2721 = vmatpush3.bf16.msra.mxu0 %v3075_v19  ;;  %2578 = vmatprep.subr.bf16.mxu1 %v3167_v1  ;;  %v1034_v2 = vsel %vm1008_vm2, %v1024_v43, %v1033_v58  ;;  %v1045_v17 = vshrl.u32 %v3358_v6, 16  ;;  %v1048_v19 = vshll.u32 %v3358_v6, 16  ;;  %v347_v23 = vshrl.u32 %v3339_v57, 16  ;;  %v3102_v43 = vld [vmem:[%s3884_s1 + $0x170] sm:$0xff]  }
  0x1d   : > { %2722 = vmatprep.subr.bf16.mxu0 %v3167_v1  ;;  %v1042_v11 = vor.u32 %v1041_v5, %v1038_v4  ;;  %v346_v24 = vsel %vm318_vm1, %v341_v8, %v345_v9  ;;  %v1054_v38 = vshrl.u32 %v3389_v26, 16  ;;  %v1057_v40 = vshll.u32 %v3389_v26, 16 }
  0x1e   : > { %v1047_v28 = vrot.slane %v1045_v17, 1  ;;  %v1050_v29 = vrot.slane %v1048_v19, 2  ;;  %v349_v33 = vor.u32 %v347_v23, %v345_v9  ;;  %v640_v42 = vrot.slane %v3309_v39, 1  ;;  %v615_v9 = vld [vmem:[%s3249_s14] sm:$0xe] }
  0x1f   : > { %2579 = vmatpush3.bf16.msra.mxu1 %v3076_v22  ;;  %v3096_v22 = vld [vmem:[%s3884_s1 + $0x160] sm:$0xff]   ;;  %v1043_v27 = vsel %vm1008_vm2, %v1033_v58, %v1042_v11  ;;  %v359_v46 = vshll.u32 %v3397_v31, 16  ;;  %v1056_v49 = vrot.slane %v1054_v38, 1  ;;  %v843_v59 = vrot.slane %v3303_v35, 1  ;;  %v3554_v38 = vld [vmem:[%s3249_s14 + $0x18] sm:$0xff]  }
  0x20   : > { %2723 = vmatpush3.bf16.msra.mxu0 %v3077_v25  ;;  %2580 = vmatprep.subr.bf16.mxu1 %v3167_v1  ;;  %v351_v25 = vshll.u32 %v3368_v10, 16  ;;  %v1051_v37 = vor.u32 %v1050_v29, %v1047_v28  ;;  %v1198_v58 = vld [vmem:[%s3249_s14 + $0x4] sm:$0xc]  ;;  %v1223_v23 = vrot.slane %v3303_v35, 2  ;;  %v3115_v35 = vld [vmem:[%s3884_s1 + $0x90] sm:$0xff]   ;;  %v3114_v28 = vld [vmem:[%s3884_s1 + $0x198] sm:$0xff]  }
  0x21   : > { %2724 = vmatprep.subr.bf16.mxu0 %v3167_v1  ;;  %v361_v56 = vrot.slane %v359_v46, 1  ;;  %v2283_v8 = vcombine.low %v1198_v58, %v3277_v18  ;;  %v1221_v18 = vrot.slane %v3273_v16, 2  ;;  %v3123_v58 = vld [vmem:[%s3884_s1 + $0x1b8] sm:$0xff]  }
  0x22   : > { %v353_v34 = vrot.slane %v351_v25, 1  ;;  %v1052_v48 = vsel %vm1008_vm2, %v1042_v11, %v1051_v37  ;;  %v2203_v11 = vcombine.low %v615_v9, %v3264_v13  ;;  %v3112_v25 = vld [vmem:[%s3884_s1 + $0x190] sm:$0xff]   ;;  %v3131_v9 = vld [vmem:[%s3884_s1 + $0xc0] sm:$0xff]  }
  0x23   : > { %2581 = vmatpush3.bf16.msra.mxu1 %v3078_v36  ;;  %v3101_v36 = vld [vmem:[%s3884_s1 + $0x28] sm:$0xff]   ;;  %v1220_v17 = vrot.slane %v2283_v8, 2  ;;  %v3128_v8 = vld [vmem:[%s3884_s1 + $0x1c0] sm:$0xff]  }
  0x24   : > { %2725 = vmatpush3.bf16.msra.mxu0 %v3079_v41  ;;  %2602 = vmatprep.subr.bf16.mxu1 %v3167_v1  ;;  %v638_v41 = vrot.slane %v3270_v15, 1  ;;  %v354_v44 = vsel %vm318_vm1, %v349_v33, %v353_v34  ;;  %v3119_v33 = vld [vmem:[%s3884_s1 + $0x1a8] sm:$0xff]  }
  0x25   : > { %2746 = vmatprep.subr.bf16.mxu0 %v3167_v1  ;;  %v1222_v13 = vsel %vm1219_vm4, %v1220_v17, %v1221_v18  ;;  %v3133_v17 = vld [vmem:[%s3884_s1 + $0xc8] sm:$0xff]  }
  0x26   : > { %2583 = vmatmul.mubr.bf16.vlgmr.msra.gmra.mrb[0].mxu1 %v330_v47  ;;  %v3425_v47 = vsel %vm636_vm3, %v638_v41, %v640_v42 }
  0x27   : > { %2727 = vmatmul.mubr.bf16.vlgmr.msra.gmra.mrb[0].mxu0 %v1025_v50  ;;  %2586 = vmatprep.mubr.msk.bf16.mxu1 %vm3168_vm0, %v3167_v1  ;;  %v1059_v50 = vrot.slane %v1057_v40, 2  ;;  %v3155_v40 = vld [vmem:[%s3249_s14 + $0x2c] ss:$0 sps:$4 sm:$0x11]  }
  0x28   : > { %2747 = vmatpush3.bf16.msra.mxu0 %v3084_v45  ;;  %2730 = vmatprep.mubr.msk.bf16.mxu0 %vm3168_vm0, %v3167_v1  ;;  %v355_v45 = vshrl.u32 %v3368_v10, 16  ;;  %v849_v46 = vrot.slane %v3155_v40, 1 }
  0x29   : > { %2748 = vmatprep.subr.bf16.mxu0 %v3167_v1  ;;  %2603 = vmatpush3.bf16.msra.mxu1 %v3088_v53  ;;  %v840_v53 = vrot.slane %v3285_v21, 1  ;;  %v1060_v60 = vor.u32 %v1059_v50, %v1056_v49  ;;  %v3106_v21 = vld [vmem:[%s3884_s1 + $0x178] sm:$0xff]   ;;  %v1368_v49 = vld [vmem:[%s3249_s14 + $0xc] sm:$0xf]  ;;  %v1781_v50 = vld [vmem:[%s3249_s14 + $0x8] sm:$0x8] }
  0x2a   : > { %2604 = vmatprep.subr.bf16.mxu1 %v3167_v1  ;;  %v357_v55 = vor.u32 %v355_v45, %v353_v34  ;;  %v3120_v34 = vld [vmem:[%s3884_s1 + $0xa8] sm:$0xff]  }
  0x2c   : > { %2749 = vmatpush3.bf16.msra.mxu0 %v3085_v54  ;;  %v841_v54 = vrot.slane %v3273_v16, 1  ;;  %v362_v4 = vsel %vm318_vm1, %v357_v55, %v361_v56  ;;  %v3110_v16 = vld [vmem:[%s3884_s1 + $0x188] sm:$0xff]  }
  0x2d   : > { %2750 = vmatprep.subr.bf16.mxu0 %v3167_v1  ;;  %2605 = vmatpush3.bf16.msra.mxu1 %v3090_v61 }
  0x2e   : > { %2587 = vmatmul.mubr.bf16.gmra.mrb[4].mxu1 %v338_v62  ;;  %2606 = vmatprep.subr.bf16.mxu1 %v3167_v1  ;;  %v3445_v61 = vsel %vm636_vm3, %v840_v53, %v841_v54  ;;  %v845_v62 = vrot.slane %v3327_v52, 1  ;;  %v3453_v0 = vsel %vm636_vm3, %v841_v54, %v843_v59  ;;  %v2363_v54 = vcombine.low %v1781_v50, %v1368_v49 }
  0x2f   : > { %2731 = vmatmul.mubr.bf16.gmra.mrb[4].mxu0 %v1034_v2  ;;  %2590 = vmatprep.mubr.msk.bf16.mxu1 %vm3168_vm0, %v3167_v1  ;;  %v847_v2 = vrot.slane %v3358_v6, 1 }
  0x30   : > { %2751 = vmatpush3.bf16.msra.mxu0 %v3089_v3  ;;  %2734 = vmatprep.mubr.msk.bf16.mxu0 %vm3168_vm0, %v3167_v1  ;;  %v3458_v3 = vsel %vm636_vm3, %v843_v59, %v845_v62  ;;  %v1803_v59 = vrot.slane %v2363_v54, 3 }
  0x31   : > { %2752 = vmatprep.subr.bf16.mxu0 %v3167_v1  ;;  %2607 = vmatpush3.bf16.msra.mxu1 %v3094_v7  ;;  %v3464_v5 = vsel %vm636_vm3, %v845_v62, %v847_v2  ;;  %v1061_v7 = vsel %vm1008_vm2, %v1051_v37, %v1060_v60  ;;  %v3121_v37 = vld [vmem:[%s3884_s1 + $0x1b0] sm:$0xff]   ;;  %v3575_v53 = vsel %vm636_vm3, %v847_v2, %v849_v46  ;;  %v3124_v60 = vld [vmem:[%s3884_s1 + $0xb8] sm:$0xff]  }
  0x32   : > { %2608 = vmatprep.subr.bf16.mxu1 %v3167_v1 }
  0x34   : > { %2753 = vmatpush3.bf16.msra.mxu0 %v3093_v12  ;;  %v637_v12 = vrot.slane %v2203_v11, 1  ;;  %v3129_v11 = vld [vmem:[%s3884_s1 + $0x1c8] sm:$0xff]  }
  0x35   : > { %2754 = vmatprep.subr.bf16.mxu0 %v3167_v1  ;;  %2609 = vmatpush3.bf16.msra.mxu1 %v3095_v20  ;;  %v3109_v20 = vld [vmem:[%s3884_s1 + $0x180] sm:$0xff]  }
  0x36   : > { %2591 = vmatmul.mubr.bf16.gmra.mrb[8].mxu1 %v346_v24  ;;  %2610 = vmatprep.subr.bf16.mxu1 %v3167_v1  ;;  %v3478_v19 = vsel %vm636_vm3, %v637_v12, %v638_v41  ;;  %v1224_v24 = vsel %vm1219_vm4, %v1221_v18, %v1223_v23  ;;  %v3122_v41 = vld [vmem:[%s3884_s1 + $0xb0] sm:$0xff]   ;;  %v1426_v12 = vrot.slane %v3554_v38, 2 }
  0x37   : > { %2735 = vmatmul.mubr.bf16.gmra.mrb[8].mxu0 %v1043_v27  ;;  %2594 = vmatprep.mubr.msk.bf16.mxu1 %vm3168_vm0, %v3167_v1  ;;  %v1225_v27 = vrot.slane %v3327_v52, 2  ;;  %v3117_v52 = vld [vmem:[%s3884_s1 + $0x1a0] sm:$0xff]  }
  0x38   : > { %2755 = vmatpush3.bf16.msra.mxu0 %v3096_v22  ;;  %2738 = vmatprep.mubr.msk.bf16.mxu0 %vm3168_vm0, %v3167_v1  ;;  %v3111_v22 = vld [vmem:[%s3884_s1 + $0x80] sm:$0xff]  }
  0x39   : > { %2611 = vmatpush3.bf16.msra.mxu1 %v3099_v30  ;;  %2756 = vmatprep.subr.bf16.mxu0 %v3167_v1  ;;  %v1226_v29 = vsel %vm1219_vm4, %v1223_v23, %v1225_v27  ;;  %v3118_v30 = vld [vmem:[%s3884_s1 + $0xa0] sm:$0xff]  }
  0x3a   : > { %2612 = vmatprep.subr.bf16.mxu1 %v3167_v1 }
  0x3c   : > { %2757 = vmatpush3.bf16.msra.mxu0 %v3100_v32  ;;  %v1227_v32 = vrot.slane %v3358_v6, 2  ;;  %v1229_v6 = vrot.slane %v3389_v26, 2 }
  0x3d   : > { %2613 = vmatpush3.bf16.msra.mxu1 %v3101_v36  ;;  %2758 = vmatprep.subr.bf16.mxu0 %v3167_v1  ;;  %v3547_v36 = vld [vmem:[%s3249_s14 + $0x10] sm:$0xff]  }
  0x3e   : > { %2595 = vmatmul.mubr.bf16.gmra.mrb[12].mxu1 %v354_v44  ;;  %2614 = vmatprep.subr.bf16.mxu1 %v3167_v1  ;;  %v1804_v44 = vrot.slane %v3547_v36, 3  ;;  %v1228_v45 = vsel %vm1219_vm4, %v1225_v27, %v1227_v32  ;;  %v1230_v26 = vsel %vm1219_vm4, %v1227_v32, %v1229_v6  ;;  %v3142_v27 = vld [vmem:[%s3884_s1 + $0xe8] sm:$0xff]   ;;  %v1601_v40 = vshrl.u32 %v3547_v36, 16 }
  0x3f   : > { %2739 = vmatmul.mubr.bf16.gmra.mrb[12].mxu0 %v1052_v48  ;;  %2598 = vmatprep.mubr.msk.bf16.mxu1 %vm3168_vm0, %v3167_v1  ;;  %v1806_v48 = vrot.slane %v3554_v38, 3  ;;  %v1610_v6 = vshrl.u32 %v3554_v38, 16 }
  0x40   : > { %2742 = vmatprep.mubr.msk.bf16.mxu0 %vm3168_vm0, %v3167_v1  ;;  %2759 = vmatpush3.bf16.msra.mxu0 %v3102_v43  ;;  %v3561_v43 = vld [vmem:[%s3249_s14 + $0x20] sm:$0xff]   ;;  %v3600_v62 = vsel %vm1802_vm5, %v1803_v59, %v1804_v44 }
  0x41   : > { %2615 = vmatpush3.bf16.msra.mxu1 %v3105_v51  ;;  %2760 = vmatprep.subr.bf16.mxu0 %v3167_v1  ;;  %v1808_v51 = vrot.slane %v3561_v43, 3  ;;  %v3578_v55 = vsel %vm1802_vm5, %v1804_v44, %v1806_v48 }
  0x42   : > { %2616 = vmatprep.subr.bf16.mxu1 %v3167_v1 }
  0x43   : > { %v3585_v56 = vsel %vm1802_vm5, %v1806_v48, %v1808_v51 }
  0x44   : > { %2761 = vmatpush3.bf16.msra.mxu0 %v3106_v21  ;;  %v1367_v21 = vld [vmem:[%s3249_s14 + $0x8] sm:$0xc] }
  0x45   : > { %2617 = vmatpush3.bf16.msra.mxu1 %v3107_v63  ;;  %2782 = vmatprep.subr.bf16.mxu0 %v3167_v1  ;;  %v3603_v63 = vcombine.low %v1367_v21, %v1368_v49  ;;  %v1603_v49 = vrot.slane %v1601_v40, 2  ;;  %v1612_v21 = vrot.slane %v1610_v6, 2 }
  0x46   : > { %2599 = vmatmul.mubr.bf16.gmra.mrb[16].mxu1 %v362_v4  ;;  %2638 = vmatprep.subr.bf16.mxu1 %v3167_v1  ;;  %v1424_v4 = vrot.slane %v3547_v36, 2 }
  0x47   : > { %2743 = vmatmul.mubr.bf16.gmra.mrb[16].mxu0 %v1061_v7  ;;  %2618 = vmatprep.mubr.msk.bf16.mxu1 %vm3168_vm0, %v3167_v1  ;;  %v1423_v2 = vrot.slane %v3603_v63, 2  ;;  %v1593_v32 = vshrl.u32 %v3603_v63, 16 }
  0x48   : > { %2762 = vmatprep.mubr.msk.bf16.mxu0 %vm3168_vm0, %v3167_v1  ;;  %v1427_v18 = vsel %vm1219_vm4, %v1424_v4, %v1426_v12 }
  0x49   : > { %v1425_v7 = vsel %vm1219_vm4, %v1423_v2, %v1424_v4  ;;  %v1619_v2 = vshrl.u32 %v3561_v43, 16  ;;  %v1622_v4 = vshll.u32 %v3561_v43, 16 }
  0x4e   : > { %2619 = vmatmul.mubr.bf16.vlgmr.msra.gmra.mrb[0].mxu1 %v3267_v14  ;;  %v3113_v14 = vld [vmem:[%s3884_s1 + $0x88] sm:$0xff]  }
  0x4f   : > { %2763 = vmatmul.mubr.bf16.vlgmr.msra.gmra.mrb[0].mxu0 %v1222_v13  ;;  %2622 = vmatprep.mubr.msk.bf16.mxu1 %vm3168_vm0, %v3167_v1  ;;  %v3136_v13 = vld [vmem:[%s3884_s1 + $0xd0] sm:$0xff]  }
  0x50   : > { %2783 = vmatpush3.bf16.msra.mxu0 %v3109_v20  ;;  %2766 = vmatprep.mubr.msk.bf16.mxu0 %vm3168_vm0, %v3167_v1  ;;  %v642_v20 = vrot.slane %v3339_v57, 1 }
  0x51   : > { %2784 = vmatprep.subr.bf16.mxu0 %v3167_v1  ;;  %2639 = vmatpush3.bf16.msra.mxu1 %v3111_v22  ;;  %v1428_v22 = vrot.slane %v3561_v43, 2 }
  0x52   : > { %2640 = vmatprep.subr.bf16.mxu1 %v3167_v1 }
  0x53   : > { %v1429_v23 = vsel %vm1219_vm4, %v1426_v12, %v1428_v22  ;;  %v3151_v12 = vld [vmem:[%s3884_s1 + $0x218] sm:$0xff]  }
  0x54   : > { %2785 = vmatpush3.bf16.msra.mxu0 %v3110_v16  ;;  %v3135_v16 = vld [vmem:[%s3884_s1 + $0x1d8] sm:$0xff]  }
  0x55   : > { %2786 = vmatprep.subr.bf16.mxu0 %v3167_v1  ;;  %2641 = vmatpush3.bf16.msra.mxu1 %v3113_v14  ;;  %v3138_v14 = vld [vmem:[%s3884_s1 + $0x1e0] sm:$0xff]  }
  0x56   : > { %2623 = vmatmul.mubr.bf16.gmra.mrb[4].mxu1 %v3270_v15  ;;  %2642 = vmatprep.subr.bf16.mxu1 %v3167_v1  ;;  %v3116_v15 = vld [vmem:[%s3884_s1 + $0x98] sm:$0xff]  }
  0x57   : > { %2767 = vmatmul.mubr.bf16.gmra.mrb[4].mxu0 %v1224_v24  ;;  %2626 = vmatprep.mubr.msk.bf16.mxu1 %vm3168_vm0, %v3167_v1  ;;  %v3667_v24 = vld [vmem:[%s3249_s14 + $0x28] sm:$0xff]  }
  0x58   : > { %2787 = vmatpush3.bf16.msra.mxu0 %v3112_v25  ;;  %2770 = vmatprep.mubr.msk.bf16.mxu0 %vm3168_vm0, %v3167_v1  ;;  %v3140_v25 = vld [vmem:[%s3884_s1 + $0xe0] sm:$0xff]  }
  0x59   : > { %2788 = vmatprep.subr.bf16.mxu0 %v3167_v1  ;;  %2643 = vmatpush3.bf16.msra.mxu1 %v3115_v35  ;;  %v3141_v35 = vld [vmem:[%s3884_s1 + $0x1e8] sm:$0xff]  }
  0x5a   : > { %2644 = vmatprep.subr.bf16.mxu1 %v3167_v1 }
  0x5c   : > { %2789 = vmatpush3.bf16.msra.mxu0 %v3114_v28 }
  0x5d   : > { %2790 = vmatprep.subr.bf16.mxu0 %v3167_v1  ;;  %2645 = vmatpush3.bf16.msra.mxu1 %v3116_v15  ;;  %v3143_v15 = vld [vmem:[%s3884_s1 + $0x1f0] sm:$0xff]  }
  0x5e   : > { %2627 = vmatmul.mubr.bf16.gmra.mrb[8].mxu1 %v3309_v39  ;;  %2646 = vmatprep.subr.bf16.mxu1 %v3167_v1  ;;  %v644_v39 = vrot.slane %v3368_v10, 1 }
  0x5f   : > { %2771 = vmatmul.mubr.bf16.gmra.mrb[8].mxu0 %v1226_v29  ;;  %2630 = vmatprep.mubr.msk.bf16.mxu1 %vm3168_vm0, %v3167_v1  ;;  %v3144_v29 = vld [vmem:[%s3249_s14 + $0x30] ss:$0 sps:$4 sm:$0x33]  }
  0x60   : > { %2791 = vmatpush3.bf16.msra.mxu0 %v3117_v52  ;;  %2774 = vmatprep.mubr.msk.bf16.mxu0 %vm3168_vm0, %v3167_v1  ;;  %v3145_v52 = vld [vmem:[%s3884_s1 + $0xf0] sm:$0xff]  }
  0x61   : > { %2647 = vmatpush3.bf16.msra.mxu1 %v3118_v30  ;;  %2792 = vmatprep.subr.bf16.mxu0 %v3167_v1  ;;  %v646_v30 = vrot.slane %v3397_v31, 1  ;;  %v3147_v31 = vld [vmem:[%s3884_s1 + $0xf8] sm:$0xff]  }
  0x62   : > { %2648 = vmatprep.subr.bf16.mxu1 %v3167_v1 }
  0x63   : > { %v647_v44 = vsel %vm636_vm3, %v644_v39, %v646_v30 }
  0x64   : > { %2793 = vmatpush3.bf16.msra.mxu0 %v3119_v33  ;;  %v1432_v33 = vrot.slane %v3144_v29, 2 }
  0x65   : > { %2649 = vmatpush3.bf16.msra.mxu1 %v3120_v34  ;;  %2794 = vmatprep.subr.bf16.mxu0 %v3167_v1  ;;  %v3146_v34 = vld [vmem:[%s3884_s1 + $0x1f8] sm:$0xff]  }
  0x66   : > { %2631 = vmatmul.mubr.bf16.gmra.mrb[12].mxu1 %v3339_v57  ;;  %2650 = vmatprep.subr.bf16.mxu1 %v3167_v1  ;;  %v643_v57 = vsel %vm636_vm3, %v640_v42, %v642_v20  ;;  %v1430_v42 = vrot.slane %v3667_v24, 2 }
  0x67   : > { %2775 = vmatmul.mubr.bf16.gmra.mrb[12].mxu0 %v1228_v45  ;;  %2634 = vmatprep.mubr.msk.bf16.mxu1 %vm3168_vm0, %v3167_v1  ;;  %v1595_v45 = vrot.slane %v1593_v32, 2 }
  0x68   : > { %2778 = vmatprep.mubr.msk.bf16.mxu0 %vm3168_vm0, %v3167_v1  ;;  %2795 = vmatpush3.bf16.msra.mxu0 %v3121_v37  ;;  %v1431_v28 = vsel %vm1219_vm4, %v1428_v22, %v1430_v42  ;;  %v1596_v37 = vshll.u32 %v3603_v63, 16  ;;  %v1433_v46 = vsel %vm1219_vm4, %v1430_v42, %v1432_v33  ;;  %v3156_v22 = vld [vmem:[%s3249_s14 + $0x30] ss:$0 sps:$4 sm:$0x77]  }
  0x69   : > { %2651 = vmatpush3.bf16.msra.mxu1 %v3122_v41  ;;  %2796 = vmatprep.subr.bf16.mxu0 %v3167_v1  ;;  %v1604_v41 = vshll.u32 %v3547_v36, 16 }
  0x6a   : > { %2652 = vmatprep.subr.bf16.mxu1 %v3167_v1  ;;  %v1598_v48 = vrot.slane %v1596_v37, 3 }
  0x6b   : > { %v1606_v50 = vrot.slane %v1604_v41, 3 }
  0x6c   : > { %2797 = vmatpush3.bf16.msra.mxu0 %v3123_v58  ;;  %v1599_v36 = vor.u32 %v1598_v48, %v1595_v45  ;;  %v1613_v58 = vshll.u32 %v3554_v38, 16  ;;  %v3149_v38 = vld [vmem:[%s3884_s1 + $0x208] sm:$0xff]  }
  0x6d   : > { %2653 = vmatpush3.bf16.msra.mxu1 %v3124_v60  ;;  %2818 = vmatprep.subr.bf16.mxu0 %v3167_v1  ;;  %v1607_v54 = vor.u32 %v1606_v50, %v1603_v49  ;;  %v3148_v60 = vld [vmem:[%s3884_s1 + $0x200] sm:$0xff]  }
  0x6e   : > { %2635 = vmatmul.mubr.bf16.gmra.mrb[16].mxu1 %v3368_v10  ;;  %2674 = vmatprep.subr.bf16.mxu1 %v3167_v1  ;;  %v645_v10 = vsel %vm636_vm3, %v642_v20, %v644_v39 }
  0x6f   : > { %2779 = vmatmul.mubr.bf16.gmra.mrb[16].mxu0 %v1230_v26  ;;  %2654 = vmatprep.mubr.msk.bf16.mxu1 %vm3168_vm0, %v3167_v1  ;;  %v1608_v59 = vsel %vm1591_vm6, %v1599_v36, %v1607_v54  ;;  %v1615_v26 = vrot.slane %v1613_v58, 3 }
  0x70   : > { %2798 = vmatprep.mubr.msk.bf16.mxu0 %vm3168_vm0, %v3167_v1 }
  0x71   : > { %v1616_v63 = vor.u32 %v1615_v26, %v1612_v21 }
  0x76   : > { %2655 = vmatmul.mubr.bf16.vlgmr.msra.gmra.mrb[0].mxu1 %v3478_v19  ;;  %v3132_v19 = vld [vmem:[%s3884_s1 + $0x1d0] sm:$0xff]  }
  0x77   : > { %2799 = vmatmul.mubr.bf16.vlgmr.msra.gmra.mrb[0].mxu0 %v1425_v7  ;;  %2658 = vmatprep.mubr.msk.bf16.mxu1 %vm3168_vm0, %v3167_v1  ;;  %v3150_v7 = vld [vmem:[%s3884_s1 + $0x210] sm:$0xff]  }
  0x78   : > { %2819 = vmatpush3.bf16.msra.mxu0 %v3128_v8  ;;  %2802 = vmatprep.mubr.msk.bf16.mxu0 %vm3168_vm0, %v3167_v1  ;;  %v1621_v8 = vrot.slane %v1619_v2, 2  ;;  %v2443_v2 = vld [vmem:[%s3827_s12 + $0x18] sm:$0xff]  }
  0x79   : > { %2820 = vmatprep.subr.bf16.mxu0 %v3167_v1  ;;  %2675 = vmatpush3.bf16.msra.mxu1 %v3131_v9  ;;  %v1624_v9 = vrot.slane %v1622_v4, 3 }
  0x7a   : > { %2676 = vmatprep.subr.bf16.mxu1 %v3167_v1 }
  0x7c   : > { %2821 = vmatpush3.bf16.msra.mxu0 %v3129_v11  ;;  %v1625_v11 = vor.u32 %v1624_v9, %v1621_v8 }
  0x7d   : > { %2822 = vmatprep.subr.bf16.mxu0 %v3167_v1  ;;  %2677 = vmatpush3.bf16.msra.mxu1 %v3133_v17  ;;  %v1628_v17 = vshrl.u32 %v3667_v24, 16 }
  0x7e   : > { %2659 = vmatmul.mubr.bf16.gmra.mrb[4].mxu1 %v3425_v47  ;;  %2678 = vmatprep.subr.bf16.mxu1 %v3167_v1  ;;  %v3137_v47 = vld [vmem:[%s3884_s1 + $0xd8] sm:$0xff]  }
  0x7f   : > { %2803 = vmatmul.mubr.bf16.gmra.mrb[4].mxu0 %v1427_v18  ;;  %2662 = vmatprep.mubr.msk.bf16.mxu1 %vm3168_vm0, %v3167_v1  ;;  %v1626_v18 = vsel %vm1591_vm6, %v1616_v63, %v1625_v11 }
  0x80   : > { %2823 = vmatpush3.bf16.msra.mxu0 %v3132_v19  ;;  %2806 = vmatprep.mubr.msk.bf16.mxu0 %vm3168_vm0, %v3167_v1  ;;  %v3152_v19 = vld [vmem:[%s3884_s1 + $0x220] sm:$0xff]  }
  0x81   : > { %2824 = vmatprep.subr.bf16.mxu0 %v3167_v1  ;;  %2679 = vmatpush3.bf16.msra.mxu1 %v3136_v13  ;;  %v1630_v13 = vrot.slane %v1628_v17, 2 }
  0x82   : > { %2680 = vmatprep.subr.bf16.mxu1 %v3167_v1 }
  0x84   : > { %2825 = vmatpush3.bf16.msra.mxu0 %v3135_v16 }
  0x85   : > { %2826 = vmatprep.subr.bf16.mxu0 %v3167_v1  ;;  %2681 = vmatpush3.bf16.msra.mxu1 %v3137_v47  ;;  %v3153_v47 = vld [vmem:[%s3884_s1 + $0x228] sm:$0xff]  }
  0x86   : > { %2663 = vmatmul.mubr.bf16.gmra.mrb[8].mxu1 %v643_v57  ;;  %2682 = vmatprep.subr.bf16.mxu1 %v3167_v1  ;;  %v1637_v57 = vshrl.u32 %v3156_v22, 16 }
  0x87   : > { %2807 = vmatmul.mubr.bf16.gmra.mrb[8].mxu0 %v1429_v23  ;;  %2666 = vmatprep.mubr.msk.bf16.mxu1 %vm3168_vm0, %v3167_v1  ;;  %v1640_v23 = vshll.u32 %v3156_v22, 16 }
  0x88   : > { %2827 = vmatpush3.bf16.msra.mxu0 %v3138_v14  ;;  %2810 = vmatprep.mubr.msk.bf16.mxu0 %vm3168_vm0, %v3167_v1  ;;  %v3154_v14 = vld [vmem:[%s3884_s1 + $0x230] sm:$0xff]  }
  0x89   : > { %2683 = vmatpush3.bf16.msra.mxu1 %v3140_v25  ;;  %2828 = vmatprep.subr.bf16.mxu0 %v3167_v1  ;;  %v1639_v25 = vrot.slane %v1637_v57, 2  ;;  %v1642_v39 = vrot.slane %v1640_v23, 3 }
  0x8a   : > { %2684 = vmatprep.subr.bf16.mxu1 %v3167_v1 }
  0x8b   : > { %v1643_v42 = vor.u32 %v1642_v39, %v1639_v25 }
  0x8c   : > { %2829 = vmatpush3.bf16.msra.mxu0 %v3141_v35  ;;  %v3157_v35 = vld [vmem:[%s3884_s1 + $0x238] sm:$0xff]  }
  0x8d   : > { %2685 = vmatpush3.bf16.msra.mxu1 %v3142_v27  ;;  %2830 = vmatprep.subr.bf16.mxu0 %v3167_v1  ;;  %v1810_v27 = vrot.slane %v3667_v24, 3 }
  0x8e   : > { %2667 = vmatmul.mubr.bf16.gmra.mrb[12].mxu1 %v645_v10  ;;  %2686 = vmatprep.subr.bf16.mxu1 %v3167_v1 }
  0x8f   : > { %2811 = vmatmul.mubr.bf16.gmra.mrb[12].mxu0 %v1431_v28  ;;  %2670 = vmatprep.mubr.msk.bf16.mxu1 %vm3168_vm0, %v3167_v1  ;;  %v1811_v10 = vsel %vm1802_vm5, %v1808_v51, %v1810_v27 }
  0x90   : > { %2814 = vmatprep.mubr.msk.bf16.mxu0 %vm3168_vm0, %v3167_v1  ;;  %2831 = vmatpush3.bf16.msra.mxu0 %v3143_v15 }
  0x91   : > { %2687 = vmatpush3.bf16.msra.mxu1 %v3145_v52  ;;  %2832 = vmatprep.subr.bf16.mxu0 %v3167_v1 }
  0x92   : > { %2688 = vmatprep.subr.bf16.mxu1 %v3167_v1 }
  0x94   : > { %2833 = vmatpush3.bf16.msra.mxu0 %v3146_v34 }
  0x95   : > { %2689 = vmatpush3.bf16.msra.mxu1 %v3147_v31  ;;  %2854 = vmatprep.subr.bf16.mxu0 %v3167_v1 }
  0x96   : > { %2671 = vmatmul.mubr.bf16.gmra.mrb[16].mxu1 %v647_v44  ;;  %2890 = vmatprep.subr.bf16.mxu1 %v3167_v1 }
  0x97   : > { %2815 = vmatmul.mubr.bf16.gmra.mrb[16].mxu0 %v1433_v46  ;;  %2690 = vmatprep.mubr.msk.bf16.mxu1 %vm3168_vm0, %v3167_v1 }
  0x98   : > { %2834 = vmatprep.mubr.msk.bf16.mxu0 %vm3168_vm0, %v3167_v1 }
  0x9e   : > { %2691 = vmatmul.mubr.bf16.vlgmr.msra.gmra.mrb[0].mxu1 %v3445_v61  ;;  %v1617_v61 = vsel %vm1591_vm6, %v1607_v54, %v1616_v63 }
  0x9f   : > { %2835 = vmatmul.mubr.bf16.vlgmr.msra.gmra.mrb[0].mxu0 %v1608_v59  ;;  %2694 = vmatprep.mubr.msk.bf16.mxu1 %vm3168_vm0, %v3167_v1 }
  0xa0   : > { %2855 = vmatpush3.bf16.msra.mxu0 %v3148_v60  ;;  %2838 = vmatprep.mubr.msk.bf16.mxu0 %vm3168_vm0, %v3167_v1 }
  0xa1   : > { %2856 = vmatprep.subr.bf16.mxu0 %v3167_v1  ;;  %2898 = vmatpush3.bf16.msra.mxu1 %v3148_v60 }
  0xa2   : > { %2891 = vmatprep.subr.bf16.mxu1 %v3167_v1 }
  0xa4   : > { %2857 = vmatpush3.bf16.msra.mxu0 %v3149_v38 }
  0xa5   : > { %2858 = vmatprep.subr.bf16.mxu0 %v3167_v1  ;;  %2899 = vmatpush3.bf16.msra.mxu1 %v3149_v38  ;;  %v3832_v38 = vld [vmem:[%s3885_s2] ss:$0 sm:$0xff] }
  0xa6   : > { %2695 = vmatmul.mubr.bf16.gmra.mrb[4].mxu1 %v3453_v0  ;;  %2892 = vmatprep.subr.bf16.mxu1 %v3167_v1  ;;  %v1631_v0 = vshll.u32 %v3667_v24, 16 }
  0xa7   : > { %2839 = vmatmul.mubr.bf16.gmra.mrb[4].mxu0 %v1617_v61  ;;  %2698 = vmatprep.mubr.msk.bf16.mxu1 %vm3168_vm0, %v3167_v1  ;;  %v2397_v61 = vld [vmem:[%s3827_s12] sm:$0xff]  }
  0xa8   : > { %2859 = vmatpush3.bf16.msra.mxu0 %v3150_v7  ;;  %2842 = vmatprep.mubr.msk.bf16.mxu0 %vm3168_vm0, %v3167_v1  ;;  %v1633_v20 = vrot.slane %v1631_v0, 3 }
  0xa9   : > { %2860 = vmatprep.subr.bf16.mxu0 %v3167_v1  ;;  %2900 = vmatpush3.bf16.msra.mxu1 %v3150_v7 }
  0xaa   : > { %2893 = vmatprep.subr.bf16.mxu1 %v3167_v1  ;;  %v1634_v16 = vor.u32 %v1633_v20, %v1630_v13 }
  0xac   : > { %2861 = vmatpush3.bf16.msra.mxu0 %v3151_v12 }
  0xad   : > { %2862 = vmatprep.subr.bf16.mxu0 %v3167_v1  ;;  %2901 = vmatpush3.bf16.msra.mxu1 %v3151_v12 }
  0xae   : > { %2699 = vmatmul.mubr.bf16.gmra.mrb[8].mxu1 %v3458_v3  ;;  %2894 = vmatprep.subr.bf16.mxu1 %v3167_v1  ;;  %v1635_v3 = vsel %vm1591_vm6, %v1625_v11, %v1634_v16  ;;  %v3839_v11 = vld [vmem:[%s3886_s3] ss:$0 sm:$0xff] }
  0xaf   : > { %2843 = vmatmul.mubr.bf16.gmra.mrb[8].mxu0 %v1626_v18  ;;  %2702 = vmatprep.mubr.msk.bf16.mxu1 %vm3168_vm0, %v3167_v1  ;;  %v2410_v18 = vunpack.c.l.bf16 %v2443_v2 }
  0xb0   : > { %2863 = vmatpush3.bf16.msra.mxu0 %v3152_v19  ;;  %2846 = vmatprep.mubr.msk.bf16.mxu0 %vm3168_vm0, %v3167_v1 }
  0xb1   : > { %2902 = vmatpush3.bf16.msra.mxu1 %v3152_v19  ;;  %2864 = vmatprep.subr.bf16.mxu0 %v3167_v1 }
  0xb2   : > { %2895 = vmatprep.subr.bf16.mxu1 %v3167_v1 }
  0xb4   : > { %2865 = vmatpush3.bf16.msra.mxu0 %v3153_v47 }
  0xb5   : > { %2903 = vmatpush3.bf16.msra.mxu1 %v3153_v47  ;;  %2866 = vmatprep.subr.bf16.mxu0 %v3167_v1 }
  0xb6   : > { %2703 = vmatmul.mubr.bf16.gmra.mrb[12].mxu1 %v3464_v5  ;;  %2896 = vmatprep.subr.bf16.mxu1 %v3167_v1  ;;  %v1644_v5 = vsel %vm1591_vm6, %v1634_v16, %v1643_v42  ;;  %v2398_v16 = vunpack.c.l.bf16 %v2397_v61  ;;  %v2399_v42 = vunpack.c.h.bf16 %v2397_v61 }
  0xb7   : > { %2847 = vmatmul.mubr.bf16.gmra.mrb[12].mxu0 %v1635_v3  ;;  %2706 = vmatprep.mubr.msk.bf16.mxu1 %vm3168_vm0, %v3167_v1 }
  0xb8   : > { %2850 = vmatprep.mubr.msk.bf16.mxu0 %vm3168_vm0, %v3167_v1  ;;  %2867 = vmatpush3.bf16.msra.mxu0 %v3154_v14 }
  0xb9   : > { %2904 = vmatpush3.bf16.msra.mxu1 %v3154_v14  ;;  %2868 = vmatprep.subr.bf16.mxu0 %v3167_v1  ;;  %v2411_v14 = vunpack.c.h.bf16 %v2443_v2 }
  0xba   : > { %2897 = vmatprep.subr.bf16.mxu1 %v3167_v1 }
  0xbc   : > { %2869 = vmatpush3.bf16.msra.mxu0 %v3157_v35 }
  0xbd   : > { %2905 = vmatpush3.bf16.msra.mxu1 %v3157_v35 }
  0xbe   : > { %2707 = vmatmul.mubr.bf16.gmra.mrb[16].mxu1 %v3575_v53  ;;  %v1812_v53 = vrot.slane %v3156_v22, 3 }
  0xbf   : > { %2851 = vmatmul.mubr.bf16.gmra.mrb[16].mxu0 %v1644_v5  ;;  %2882 = vmatprep.mubr.msk.bf16.mxu1 %vm3168_vm0, %v3167_v1 }
  0xc0   : > { %2870 = vmatprep.mubr.msk.bf16.mxu0 %vm3168_vm0, %v3167_v1  ;;  %v1813_v28 = vsel %vm1802_vm5, %v1810_v27, %v1812_v53  ;;  %v2441_v27 = vld [vmem:[%s3827_s12 + $0x8] sm:$0xff]  }
  0xc6   : > { %2883 = vmatmul.mubr.bf16.vlgmr.msra.gmra.mrb[20].mxu1 %v1811_v10  ;;  %v2444_v10 = vld [vmem:[%s3827_s12 + $0x20] sm:$0xff]  }
  0xc7   : > { %2871 = vmatmul.mubr.bf16.vlgmr.msra.gmra.mrb[0].mxu0 %v3600_v62  ;;  %2886 = vmatprep.mubr.msk.bf16.mxu1 %vm3168_vm0, %v3167_v1 }
  0xc8   : > { %2874 = vmatprep.mubr.msk.bf16.mxu0 %vm3168_vm0, %v3167_v1 }
  0xce   : > { %2887 = vmatmul.mubr.bf16.gmra.mrb[24].mxu1 %v1813_v28 }
  0xcf   : > { %2875 = vmatmul.mubr.bf16.gmra.mrb[4].mxu0 %v3578_v55 }
  0xd0   : > { %2878 = vmatprep.mubr.msk.bf16.mxu0 %vm3168_vm0, %v3167_v1 }
  0xd7   : > { %2879 = vmatmul.mubr.bf16.gmra.mrb[8].mxu0 %v3585_v56 }
 0x171   : > { %v938_v43 = vpop.f32.mrb[0].mxu1 }
 0x172   : > { %v2692_v51 = vpop.f32.mrb[1].mxu1 }
 0x173   : > { %v941_v62 = vpop.f32.mrb[2].mxu1 }
 0x174   : > { %v2693_v24 = vpop.f32.mrb[3].mxu1 }
 0x179   : > { %v3813_v15 = vpop.f32.mrb[4].mxu1 }
 0x17a   : > { %v2696_v29 = vpop.f32.mrb[5].mxu1 }
 0x17b   : > { %v3815_v52 = vpop.f32.mrb[6].mxu1 }
 0x17c   : > { %v2697_v30 = vpop.f32.mrb[7].mxu1 }
 0x181   : > { %v3817_v32 = vpop.f32.mrb[8].mxu1 }
 0x182   : > { %v2700_v33 = vpop.f32.mrb[9].mxu1 }
 0x183   : > { %v3819_v55 = vpop.f32.mrb[10].mxu1 }
 0x184   : > { %v2701_v34 = vpop.f32.mrb[11].mxu1 }
 0x185   : > { %v2402_v34 = vunpack.c.l.bf16 %v2441_v27 }
 0x189   : > { %v962_v1 = vpop.f32.mrb[12].mxu1 }
 0x18a   : > { %v1756_v37 = vpop.f32.mrb[12].mxu0  ;;  %v2704_v56 = vpop.f32.mrb[13].mxu1 }
 0x18b   : > { %v2912_v40 = vadd.f32 %v1756_v37, %v962_v1  ;;  %v2848_v41 = vpop.f32.mrb[13].mxu0  ;;  %v965_v31 = vpop.f32.mrb[14].mxu1  ;;  %v2414_v1 = vunpack.c.l.bf16 %v2444_v10 }
 0x18c   : > { %v1759_v44 = vpop.f32.mrb[14].mxu0  ;;  %v2705_v45 = vpop.f32.mrb[15].mxu1 }
 0x18d   : > { %v2914_v46 = vadd.f32 %v1759_v44, %v965_v31  ;;  %v2849_v48 = vpop.f32.mrb[15].mxu0 }
 0x191   : > { %v970_v49 = vpop.f32.mrb[16].mxu1 }
 0x192   : > { %v1764_v50 = vpop.f32.mrb[16].mxu0  ;;  %v2708_v36 = vpop.f32.mrb[17].mxu1 }
 0x193   : > { %v2916_v54 = vadd.f32 %v1764_v50, %v970_v49  ;;  %v2852_v6 = vpop.f32.mrb[17].mxu0  ;;  %v973_v58 = vpop.f32.mrb[18].mxu1 }
 0x194   : > { %v1767_v59 = vpop.f32.mrb[18].mxu0  ;;  %v2709_v60 = vpop.f32.mrb[19].mxu1 }
 0x195   : > { %v2918_v21 = vadd.f32 %v1767_v59, %v973_v58  ;;  %v2853_v26 = vpop.f32.mrb[19].mxu0  ;;  %v2415_v59 = vunpack.c.h.bf16 %v2444_v10 }
 0x199   : > { %v1925_v63 = vpop.f32.mrb[20].mxu1 }
 0x19a   : > { %v1901_v4 = vpop.f32.mrb[0].mxu0  ;;  %v2913_v7 = vadd.f32 %v2912_v40, %v1925_v63  ;;  %v2884_v8 = vpop.f32.mrb[21].mxu1  ;;  %v2403_v63 = vunpack.c.h.bf16 %v2441_v27 }
 0x19b   : > { %v2906_v9 = vadd.f32 %v1901_v4, %v938_v43  ;;  %v2872_v12 = vpop.f32.mrb[1].mxu0  ;;  %v1928_v17 = vpop.f32.mrb[22].mxu1 }
 0x19c   : > { %v1963_v0 = vmul.f32 %v2913_v7, %v3832_v38  ;;  %v1904_v19 = vpop.f32.mrb[2].mxu0  ;;  %v2915_v13 = vadd.f32 %v2914_v46, %v1928_v17  ;;  %v2885_v20 = vpop.f32.mrb[23].mxu1  ;;  %v2442_v7 = vld [vmem:[%s3827_s12 + $0x10] sm:$0xff]  }
 0x19d   : > { %v1957_v22 = vmul.f32 %v2906_v9, %v3832_v38  ;;  %v2907_v47 = vadd.f32 %v1904_v19, %v941_v62  ;;  %v2873_v57 = vpop.f32.mrb[3].mxu0 }
 0x19e   : > { %v1980_v23 = vadd.f32 %v3839_v11, %v1963_v0  ;;  %v1964_v3 = vmul.f32 %v2915_v13, %v3832_v38  ;;  %v2406_v13 = vunpack.c.l.bf16 %v2442_v7 }
 0x19f   : > { %v1974_v25 = vadd.f32 %v3839_v11, %v1957_v22  ;;  %v1958_v39 = vmul.f32 %v2907_v47, %v3832_v38 }
 0x1a0   : > { %v2010_v35 = vadd.f32 %v2410_v18, %v1980_v23  ;;  %v1981_v5 = vadd.f32 %v3839_v11, %v1964_v3 }
 0x1a1   : > { %v2004_v53 = vadd.f32 %v2398_v16, %v1974_v25  ;;  %v1975_v28 = vadd.f32 %v3839_v11, %v1958_v39  ;;  %v1933_v43 = vpop.f32.mrb[24].mxu1  ;;  %v2407_v39 = vunpack.c.h.bf16 %v2442_v7 }
 0x1a2   : > { %v2011_v51 = vadd.f32 %v2411_v14, %v1981_v5  ;;  %v1909_v62 = vpop.f32.mrb[4].mxu0  ;;  %v2917_v24 = vadd.f32 %v2916_v54, %v1933_v43  ;;  %v2888_v29 = vpop.f32.mrb[25].mxu1  ;;  %v2020_v40 = vmax.f32 %v2010_v35, 0.0 }
 0x1a3   : > { %v2005_v30 = vadd.f32 %v2399_v42, %v1975_v28  ;;  %v2908_v33 = vadd.f32 %v1909_v62, %v3813_v15  ;;  %v2876_v37 = vpop.f32.mrb[5].mxu0  ;;  %v1936_v56 = vpop.f32.mrb[26].mxu1  ;;  %v2014_v48 = vmax.f32 %v2004_v53, 0.0 }
 0x1a4   : > { %v2021_v41 = vmax.f32 %v2011_v51, 0.0  ;;  %v1965_v31 = vmul.f32 %v2917_v24, %v3832_v38  ;;  %v1912_v44 = vpop.f32.mrb[6].mxu0  ;;  %v2919_v45 = vadd.f32 %v2918_v21, %v1936_v56  ;;  %v2889_v46 = vpop.f32.mrb[27].mxu1 }
 0x1a5   : > { %v2015_v15 = vmax.f32 %v2005_v30, 0.0  ;;  %v1959_v49 = vmul.f32 %v2908_v33, %v3832_v38  ;;  %v2909_v50 = vadd.f32 %v1912_v44, %v3815_v52  ;;  %v2877_v36 = vpop.f32.mrb[7].mxu0 }
 0x1a6   : > { %v2434_v54 = vpack.c.bf16 %v2021_v41, %v2020_v40  ;;  %v1982_v6 = vadd.f32 %v3839_v11, %v1965_v31  ;;  %v1966_v58 = vmul.f32 %v2919_v45, %v3832_v38 }
 0x1a7   : > { %v2419_v60 = vpack.c.bf16 %v2015_v15, %v2014_v48  ;;  %v1976_v21 = vadd.f32 %v3839_v11, %v1959_v49  ;;  %v1960_v26 = vmul.f32 %v2909_v50, %v3832_v38 }
 0x1a8   : > { %2447 = vst [vmem:[%s3858_s22 + $0x18] sm:$0xff] %v2434_v54   ;;  %v2012_v2 = vadd.f32 %v2414_v1, %v1982_v6  ;;  %v1983_v4 = vadd.f32 %v3839_v11, %v1966_v58 }
 0x1a9   : > { %2420 = vst [vmem:[%s3858_s22] sm:$0xff] %v2419_v60   ;;  %v2006_v52 = vadd.f32 %v2402_v34, %v1976_v21  ;;  %v1977_v61 = vadd.f32 %v3839_v11, %v1960_v26 }
 0x1aa   : > { %v2013_v8 = vadd.f32 %v2415_v59, %v1983_v4  ;;  %v1917_v9 = vpop.f32.mrb[8].mxu0  ;;  %v2022_v18 = vmax.f32 %v2012_v2, 0.0 }
 0x1ab   : > { %v2007_v12 = vadd.f32 %v2403_v63, %v1977_v61  ;;  %v2910_v17 = vadd.f32 %v1917_v9, %v3817_v32  ;;  %v2880_v0 = vpop.f32.mrb[9].mxu0  ;;  %v2016_v22 = vmax.f32 %v2006_v52, 0.0 }
 0x1ac   : > { %v2023_v19 = vmax.f32 %v2013_v8, 0.0  ;;  %v1920_v20 = vpop.f32.mrb[10].mxu0 }
 0x1ad   : > { %v2017_v16 = vmax.f32 %v2007_v12, 0.0  ;;  %v1961_v47 = vmul.f32 %v2910_v17, %v3832_v38  ;;  %v2911_v57 = vadd.f32 %v1920_v20, %v3819_v55  ;;  %v2881_v23 = vpop.f32.mrb[11].mxu0 }
 0x1ae   : > { %v2439_v3 = vpack.c.bf16 %v2023_v19, %v2022_v18 }
 0x1af   : > { %v2424_v14 = vpack.c.bf16 %v2017_v16, %v2016_v22  ;;  %v1978_v25 = vadd.f32 %v3839_v11, %v1961_v47  ;;  %v1962_v32 = vmul.f32 %v2911_v57, %v3832_v38 }
 0x1b0   : > { %2448 = vst [vmem:[%s3858_s22 + $0x20] sm:$0xff] %v2439_v3  }
 0x1b1   : > { %2445 = vst [vmem:[%s3858_s22 + $0x8] sm:$0xff] %v2424_v14   ;;  %v2008_v42 = vadd.f32 %v2406_v13, %v1978_v25  ;;  %v1979_v35 = vadd.f32 %v3839_v11, %v1962_v32 }
 0x1b3   : > { %v2009_v5 = vadd.f32 %v2407_v39, %v1979_v35  ;;  %v2018_v27 = vmax.f32 %v2008_v42, 0.0 }
 0x1b5   : > { %v2019_v10 = vmax.f32 %v2009_v5, 0.0 }
 0x1b7   : > { %v2429_v53 = vpack.c.bf16 %v2019_v10, %v2018_v27 }
 0x1b9   : > { %2446 = vst [vmem:[%s3858_s22 + $0x10] sm:$0xff] %v2429_v53  }
 0x1ba PF: > { %s15_s18 = sadd.s32 1, %s3165_s18  }
 0x1bb   : > { %p12_p4 = scmp.ge.s32.totalorder %s15_s18, 4  }
 0x1bd   :  { %14 = sbr.rel (!%p12_p4) target bundleno = 1 (0x1), region = 81 }

// kernel: _lambda_.8
= control target key start
LH: loop header
LB: loop body
LE: loop exit
PB: predicated region body
PF: predicated region fallthrough
CT: control target
= control target key end

     0   :  { %s3080_s15 = smov 0   ;;  %s3747_s0 = inlined_call_operand.vmem [shape: bf16[2,102,128], index: 0, kind: input, shape index: {}]   ;;  %s3748_s1 = inlined_call_operand.vmem [shape: bf16[9,128,128], index: 1, kind: input, shape index: {}]   ;;  %s3749_s2 = inlined_call_operand.vmem [shape: f32[1,128], index: 2, kind: input, shape index: {}]   ;;  %s3750_s3 = inlined_call_operand.vmem [shape: f32[1,128], index: 3, kind: input, shape index: {}]   ;;  %s3751_s4 = inlined_call_operand.vmem [shape: bf16[2,80,128], index: 4, kind: output, shape index: {}]  }
   0x1 LB: > { %s2052_s16 = sadd.s32 4294967295, %s3051_s15   ;;  %p2056_p0 = scmp.ge.s32.totalorder %s3051_s15, 1  ;;  %s3051_s15 = sphi %s3080_s15, %s14_s15  }
   0x2   : > { %p162_p1 = scmp.lt.s32.totalorder %s3051_s15, 3 }
   0x4   : > { %p163_p2 = pnand %p2056_p0, %p162_p1 }
   0x5   : > { %v2950_v0 = vld [vmem:[%s3748_s1 + $0x40] sm:$0xff] (!%p163_p2)   ;;  %v3053_v1 = vmov (!%p163_p2), 0.0   ;;  %v2952_v3 = vld [vmem:[%s3748_s1 + $0x48] sm:$0xff] (!%p163_p2)   ;;  %vm3054_vm0 = vmmov (!%p163_p2), 0   ;;  %p188_p3 = scmp.lt.s32.totalorder (!%p163_p2), %s2052_s16, 1  ;;  %v2954_v5 = vld [vmem:[%s3748_s1 + $0x50] sm:$0xff] (!%p163_p2)  }
   0x6   : > { %166 = sbr.rel (%p163_p2) target bundleno = 440 (0x1b8), region = 36  ;;  %2452 = vmatprep.subr.bf16.mxu1 (!%p163_p2), %v3053_v1  ;;  %2596 = vmatprep.subr.bf16.mxu0 (!%p163_p2), %v3053_v1  ;;  %v2951_v2 = vld [vmem:[%s3748_s1 + $0x100] sm:$0xff] (!%p163_p2)   ;;  %v2953_v4 = vld [vmem:[%s3748_s1 + $0x108] sm:$0xff] (!%p163_p2)   ;;  %v2955_v6 = vld [vmem:[%s3748_s1 + $0x110] sm:$0xff] (!%p163_p2)   ;;  %vm271_vm1 = vsmask.f32 (!%p163_p2), 7424 }
   0x7   : > { %2453 = vmatpush3.bf16.msra.mxu1 (!%p163_p2), %v2950_v0  ;;  %2468 = vmatprep.mubr.msk.bf16.mxu1 (!%p163_p2), %vm3054_vm0, %v3053_v1  ;;  %v2956_v7 = vld [vmem:[%s3748_s1 + $0x58] sm:$0xff] (!%p163_p2)   ;;  %v2958_v9 = vld [vmem:[%s3748_s1 + $0x60] sm:$0xff] (!%p163_p2)   ;;  %v2960_v11 = vld [vmem:[%s3748_s1 + $0x68] sm:$0xff] (!%p163_p2)   ;;  %vm961_vm2 = vsmask.f32 (!%p163_p2), 6400  ;;  %vm589_vm3 = vcmask (!%p163_p2), 1046528  }
   0x8   : > { %2597 = vmatpush3.bf16.msra.mxu0 (!%p163_p2), %v2951_v2  ;;  %2454 = vmatprep.subr.bf16.mxu1 (!%p163_p2), %v3053_v1  ;;  %v2957_v8 = vld [vmem:[%s3748_s1 + $0x118] sm:$0xff] (!%p163_p2)   ;;  %v2959_v10 = vld [vmem:[%s3748_s1 + $0x120] sm:$0xff] (!%p163_p2)   ;;  %v2961_v19 = vld [vmem:[%s3748_s1 + $0x128] sm:$0xff] (!%p163_p2)   ;;  %vm1172_vm4 = vcmask (!%p163_p2), 1045504   ;;  %vm1755_vm5 = vcmask (!%p163_p2), 1044480  }
   0x9   : > { %2598 = vmatprep.subr.bf16.mxu0 (!%p163_p2), %v3053_v1  ;;  %2612 = vmatprep.mubr.msk.bf16.mxu0 (!%p163_p2), %vm3054_vm0, %v3053_v1  ;;  %v2962_v22 = vld [vmem:[%s3748_s1 + $0x70] sm:$0xff] (!%p163_p2)   ;;  %v2964_v36 = vld [vmem:[%s3748_s1 + $0x78] sm:$0xff] (!%p163_p2)   ;;  %v2970_v45 = vld [vmem:[%s3748_s1 + $0x140] sm:$0xff] (!%p163_p2)   ;;  %vm1544_vm6 = vsmask.f32 (!%p163_p2), 5376 }
   0xa   : > { %v2963_v25 = vld [vmem:[%s3748_s1 + $0x130] sm:$0xff] (!%p163_p2)   ;;  %v2965_v41 = vld [vmem:[%s3748_s1 + $0x138] sm:$0xff] (!%p163_p2)   ;;  %v2974_v53 = vld [vmem:[%s3748_s1] sm:$0xff] (!%p163_p2)  }
   0xb   : > { %2455 = vmatpush3.bf16.msra.mxu1 (!%p163_p2), %v2952_v3  ;;  %v2971_v54 = vld [vmem:[%s3748_s1 + $0x148] sm:$0xff] (!%p163_p2)   ;;  %v2975_v3 = vld [vmem:[%s3748_s1 + $0x150] sm:$0xff] (!%p163_p2)  }
   0xc   : > { %2599 = vmatpush3.bf16.msra.mxu0 (!%p163_p2), %v2953_v4  ;;  %2456 = vmatprep.subr.bf16.mxu1 (!%p163_p2), %v3053_v1  ;;  %v2976_v61 = vld [vmem:[%s3748_s1 + $0x8] sm:$0xff] (!%p163_p2)  }
   0xd   : > { %s3753_s16 = smov (!%p188_p3, %s2052_s16), 1  ;;  %2600 = vmatprep.subr.bf16.mxu0 %v3053_v1 }
   0xe   : > { %s2938_s29 = smul.u32 52, %s3753_s16 }
   0xf   : > { %2457 = vmatpush3.bf16.msra.mxu1 %v2954_v5 }
  0x10   : > { %2601 = vmatpush3.bf16.msra.mxu0 %v2955_v6  ;;  %2458 = vmatprep.subr.bf16.mxu1 %v3053_v1  ;;  %s3130_s10 = scalar_lea.vmem %s3747_s0, %s2938_s29  ;;  %s2939_s29 = smul.u32 40, %s3753_s16 }
  0x11   : > { %2602 = vmatprep.subr.bf16.mxu0 %v3053_v1  ;;  %v199_v12 = vld [vmem:[%s3130_s10] sm:$0xf]  ;;  %v3145_v13 = vld [vmem:[%s3130_s10 + $0x4] sm:$0xf]  ;;  %v3151_v15 = vld [vmem:[%s3130_s10 + $0x8] sm:$0xff]  }
  0x12   : > { %v3148_v14 = vcombine.low %v199_v12, %v3145_v13  ;;  %v3154_v16 = vld [vmem:[%s3130_s10 + $0xc] sm:$0xff]   ;;  %v737_v17 = vld [vmem:[%s3130_s10 + $0x4] sm:$0xe]  ;;  %v3158_v18 = vld [vmem:[%s3130_s10 + $0x8] sm:$0xf]  ;;  %v280_v26 = vshll.u32 %v3151_v15, 16  ;;  %s3722_s6 = scalar_lea.vmem %s3751_s4, %s2939_s29 }
  0x13   : > { %2459 = vmatpush3.bf16.msra.mxu1 %v2956_v7  ;;  %v3166_v21 = vcombine.low %v737_v17, %v3158_v18  ;;  %v971_v23 = vshrl.u32 %v3154_v16, 16  ;;  %v974_v24 = vshll.u32 %v3154_v16, 16  ;;  %v3184_v35 = vld [vmem:[%s3130_s10 + $0x14] sm:$0xff]   ;;  %v284_v46 = vshrl.u32 %v3151_v15, 16  ;;  %v3208_v52 = vld [vmem:[%s3130_s10 + $0x1c] sm:$0xff]   ;;  %v3239_v6 = vld [vmem:[%s3130_s10 + $0x24] sm:$0xff]  }
  0x14   : > { %2603 = vmatpush3.bf16.msra.mxu0 %v2957_v8  ;;  %2460 = vmatprep.subr.bf16.mxu1 %v3053_v1  ;;  %v275_v20 = vshll.u32 %v3148_v14, 16  ;;  %v273_v29 = vshrl.u32 %v3148_v14, 16  ;;  %v282_v37 = vrot.slane %v280_v26, 1  ;;  %v3190_v39 = vld [vmem:[%s3130_s10 + $0x10] sm:$0xff]   ;;  %v980_v40 = vshrl.u32 %v3184_v35, 16  ;;  %v3220_v57 = vld [vmem:[%s3130_s10 + $0x18] sm:$0xff]  }
  0x15   : > { %2604 = vmatprep.subr.bf16.mxu0 %v3053_v1  ;;  %v963_v27 = vshrl.u32 %v3166_v21, 16  ;;  %v966_v28 = vshll.u32 %v3166_v21, 16  ;;  %v973_v33 = vrot.slane %v971_v23, 1  ;;  %v976_v34 = vrot.slane %v974_v24, 2  ;;  %v2980_v7 = vld [vmem:[%s3748_s1 + $0x10] sm:$0xff]   ;;  %v2979_v12 = vld [vmem:[%s3748_s1 + $0x158] sm:$0xff]  }
  0x16   : > { %v277_v30 = vrot.slane %v275_v20, 1  ;;  %v983_v44 = vshll.u32 %v3184_v35, 16  ;;  %v288_v48 = vshll.u32 %v3190_v39, 16  ;;  %v982_v49 = vrot.slane %v980_v40, 1  ;;  %v2981_v20 = vld [vmem:[%s3748_s1 + $0x18] sm:$0xff]  }
  0x17   : > { %2461 = vmatpush3.bf16.msra.mxu1 %v2958_v9  ;;  %v965_v31 = vrot.slane %v963_v27, 1  ;;  %v968_v32 = vrot.slane %v966_v28, 2  ;;  %v977_v43 = vor.u32 %v976_v34, %v973_v33  ;;  %v286_v55 = vor.u32 %v284_v46, %v282_v37  ;;  %v3270_v26 = vld [vmem:[%s3130_s10 + $0x2c] ss:$0 sps:$4 sm:$0x33]  }
  0x18   : > { %2605 = vmatpush3.bf16.msra.mxu0 %v2959_v10  ;;  %2462 = vmatprep.subr.bf16.mxu1 %v3053_v1  ;;  %v278_v38 = vor.u32 %v277_v30, %v273_v29  ;;  %v985_v51 = vrot.slane %v983_v44, 2  ;;  %v290_v56 = vrot.slane %v288_v48, 1  ;;  %v989_v59 = vshrl.u32 %v3208_v52, 16  ;;  %v3249_v10 = vld [vmem:[%s3130_s10 + $0x20] sm:$0xff]  }
  0x19   : > { %2606 = vmatprep.subr.bf16.mxu0 %v3053_v1  ;;  %v969_v42 = vor.u32 %v968_v32, %v965_v31  ;;  %v992_v60 = vshll.u32 %v3208_v52, 16  ;;  %v292_v63 = vshrl.u32 %v3190_v39, 16  ;;  %v296_v0 = vshll.u32 %v3220_v57, 16  ;;  %v2985_v30 = vld [vmem:[%s3748_s1 + $0x20] sm:$0xff]   ;;  %v2986_v32 = vld [vmem:[%s3748_s1 + $0x168] sm:$0xff]  }
  0x1a   : > { %v283_v47 = vsel %vm271_vm1, %v278_v38, %v282_v37  ;;  %v986_v58 = vor.u32 %v985_v51, %v982_v49  ;;  %v291_v62 = vsel %vm271_vm1, %v286_v55, %v290_v56  ;;  %v991_v4 = vrot.slane %v989_v59, 1  ;;  %v3278_v31 = vld [vmem:[%s3130_s10 + $0x28] ss:$0 sps:$4 sm:$0x11]   ;;  %v2991_v51 = vld [vmem:[%s3748_s1 + $0x30] sm:$0xff]  }
  0x1b   : > { %2463 = vmatpush3.bf16.msra.mxu1 %v2960_v11  ;;  %v978_v50 = vsel %vm961_vm2, %v969_v42, %v977_v43  ;;  %v994_v5 = vrot.slane %v992_v60, 2  ;;  %v294_v8 = vor.u32 %v292_v63, %v290_v56  ;;  %v298_v9 = vrot.slane %v296_v0, 1  ;;  %v2993_v63 = vld [vmem:[%s3748_s1 + $0x38] sm:$0xff]  }
  0x1c   : > { %2607 = vmatpush3.bf16.msra.mxu0 %v2961_v19  ;;  %2464 = vmatprep.subr.bf16.mxu1 %v3053_v1  ;;  %v987_v2 = vsel %vm961_vm2, %v977_v43, %v986_v58  ;;  %v998_v17 = vshrl.u32 %v3239_v6, 16  ;;  %v1001_v19 = vshll.u32 %v3239_v6, 16  ;;  %v300_v23 = vshrl.u32 %v3220_v57, 16  ;;  %v2988_v43 = vld [vmem:[%s3748_s1 + $0x170] sm:$0xff]  }
  0x1d   : > { %2608 = vmatprep.subr.bf16.mxu0 %v3053_v1  ;;  %v995_v11 = vor.u32 %v994_v5, %v991_v4  ;;  %v299_v24 = vsel %vm271_vm1, %v294_v8, %v298_v9  ;;  %v1007_v38 = vshrl.u32 %v3270_v26, 16  ;;  %v1010_v40 = vshll.u32 %v3270_v26, 16 }
  0x1e   : > { %v1000_v28 = vrot.slane %v998_v17, 1  ;;  %v1003_v29 = vrot.slane %v1001_v19, 2  ;;  %v302_v33 = vor.u32 %v300_v23, %v298_v9  ;;  %v593_v42 = vrot.slane %v3190_v39, 1  ;;  %v568_v9 = vld [vmem:[%s3130_s10] sm:$0xe] }
  0x1f   : > { %2465 = vmatpush3.bf16.msra.mxu1 %v2962_v22  ;;  %v2982_v22 = vld [vmem:[%s3748_s1 + $0x160] sm:$0xff]   ;;  %v996_v27 = vsel %vm961_vm2, %v986_v58, %v995_v11  ;;  %v312_v46 = vshll.u32 %v3278_v31, 16  ;;  %v1009_v49 = vrot.slane %v1007_v38, 1  ;;  %v796_v59 = vrot.slane %v3184_v35, 1  ;;  %v3435_v38 = vld [vmem:[%s3130_s10 + $0x18] sm:$0xff]  }
  0x20   : > { %2609 = vmatpush3.bf16.msra.mxu0 %v2963_v25  ;;  %2466 = vmatprep.subr.bf16.mxu1 %v3053_v1  ;;  %v304_v25 = vshll.u32 %v3249_v10, 16  ;;  %v1004_v37 = vor.u32 %v1003_v29, %v1000_v28  ;;  %v1151_v58 = vld [vmem:[%s3130_s10 + $0x4] sm:$0xc]  ;;  %v1176_v23 = vrot.slane %v3184_v35, 2  ;;  %v3001_v35 = vld [vmem:[%s3748_s1 + $0x90] sm:$0xff]   ;;  %v3000_v28 = vld [vmem:[%s3748_s1 + $0x198] sm:$0xff]  }
  0x21   : > { %2610 = vmatprep.subr.bf16.mxu0 %v3053_v1  ;;  %v314_v56 = vrot.slane %v312_v46, 1  ;;  %v2193_v8 = vcombine.low %v1151_v58, %v3158_v18  ;;  %v1174_v18 = vrot.slane %v3154_v16, 2  ;;  %v3009_v58 = vld [vmem:[%s3748_s1 + $0x1b8] sm:$0xff]  }
  0x22   : > { %v306_v34 = vrot.slane %v304_v25, 1  ;;  %v1005_v48 = vsel %vm961_vm2, %v995_v11, %v1004_v37  ;;  %v2113_v11 = vcombine.low %v568_v9, %v3145_v13  ;;  %v2998_v25 = vld [vmem:[%s3748_s1 + $0x190] sm:$0xff]   ;;  %v3017_v9 = vld [vmem:[%s3748_s1 + $0xc0] sm:$0xff]  }
  0x23   : > { %2467 = vmatpush3.bf16.msra.mxu1 %v2964_v36  ;;  %v2987_v36 = vld [vmem:[%s3748_s1 + $0x28] sm:$0xff]   ;;  %v1173_v17 = vrot.slane %v2193_v8, 2  ;;  %v3014_v8 = vld [vmem:[%s3748_s1 + $0x1c0] sm:$0xff]  }
  0x24   : > { %2611 = vmatpush3.bf16.msra.mxu0 %v2965_v41  ;;  %2488 = vmatprep.subr.bf16.mxu1 %v3053_v1  ;;  %v591_v41 = vrot.slane %v3151_v15, 1  ;;  %v307_v44 = vsel %vm271_vm1, %v302_v33, %v306_v34  ;;  %v3005_v33 = vld [vmem:[%s3748_s1 + $0x1a8] sm:$0xff]  }
  0x25   : > { %2632 = vmatprep.subr.bf16.mxu0 %v3053_v1  ;;  %v1175_v13 = vsel %vm1172_vm4, %v1173_v17, %v1174_v18  ;;  %v3019_v17 = vld [vmem:[%s3748_s1 + $0xc8] sm:$0xff]  }
  0x26   : > { %2469 = vmatmul.mubr.bf16.vlgmr.msra.gmra.mrb[0].mxu1 %v283_v47  ;;  %v3306_v47 = vsel %vm589_vm3, %v591_v41, %v593_v42 }
  0x27   : > { %2613 = vmatmul.mubr.bf16.vlgmr.msra.gmra.mrb[0].mxu0 %v978_v50  ;;  %2472 = vmatprep.mubr.msk.bf16.mxu1 %vm3054_vm0, %v3053_v1  ;;  %v1012_v50 = vrot.slane %v1010_v40, 2  ;;  %v3041_v40 = vld [vmem:[%s3130_s10 + $0x2c] ss:$0 sps:$4 sm:$0x11]  }
  0x28   : > { %2633 = vmatpush3.bf16.msra.mxu0 %v2970_v45  ;;  %2616 = vmatprep.mubr.msk.bf16.mxu0 %vm3054_vm0, %v3053_v1  ;;  %v308_v45 = vshrl.u32 %v3249_v10, 16  ;;  %v802_v46 = vrot.slane %v3041_v40, 1 }
  0x29   : > { %2634 = vmatprep.subr.bf16.mxu0 %v3053_v1  ;;  %2489 = vmatpush3.bf16.msra.mxu1 %v2974_v53  ;;  %v793_v53 = vrot.slane %v3166_v21, 1  ;;  %v1013_v60 = vor.u32 %v1012_v50, %v1009_v49  ;;  %v2992_v21 = vld [vmem:[%s3748_s1 + $0x178] sm:$0xff]   ;;  %v1321_v49 = vld [vmem:[%s3130_s10 + $0xc] sm:$0xf]  ;;  %v1734_v50 = vld [vmem:[%s3130_s10 + $0x8] sm:$0x8] }
  0x2a   : > { %2490 = vmatprep.subr.bf16.mxu1 %v3053_v1  ;;  %v310_v55 = vor.u32 %v308_v45, %v306_v34  ;;  %v3006_v34 = vld [vmem:[%s3748_s1 + $0xa8] sm:$0xff]  }
  0x2c   : > { %2635 = vmatpush3.bf16.msra.mxu0 %v2971_v54  ;;  %v794_v54 = vrot.slane %v3154_v16, 1  ;;  %v315_v4 = vsel %vm271_vm1, %v310_v55, %v314_v56  ;;  %v2996_v16 = vld [vmem:[%s3748_s1 + $0x188] sm:$0xff]  }
  0x2d   : > { %2636 = vmatprep.subr.bf16.mxu0 %v3053_v1  ;;  %2491 = vmatpush3.bf16.msra.mxu1 %v2976_v61 }
  0x2e   : > { %2473 = vmatmul.mubr.bf16.gmra.mrb[4].mxu1 %v291_v62  ;;  %2492 = vmatprep.subr.bf16.mxu1 %v3053_v1  ;;  %v3326_v61 = vsel %vm589_vm3, %v793_v53, %v794_v54  ;;  %v798_v62 = vrot.slane %v3208_v52, 1  ;;  %v3334_v0 = vsel %vm589_vm3, %v794_v54, %v796_v59  ;;  %v2273_v54 = vcombine.low %v1734_v50, %v1321_v49 }
  0x2f   : > { %2617 = vmatmul.mubr.bf16.gmra.mrb[4].mxu0 %v987_v2  ;;  %2476 = vmatprep.mubr.msk.bf16.mxu1 %vm3054_vm0, %v3053_v1  ;;  %v800_v2 = vrot.slane %v3239_v6, 1 }
  0x30   : > { %2637 = vmatpush3.bf16.msra.mxu0 %v2975_v3  ;;  %2620 = vmatprep.mubr.msk.bf16.mxu0 %vm3054_vm0, %v3053_v1  ;;  %v3339_v3 = vsel %vm589_vm3, %v796_v59, %v798_v62  ;;  %v1756_v59 = vrot.slane %v2273_v54, 3 }
  0x31   : > { %2638 = vmatprep.subr.bf16.mxu0 %v3053_v1  ;;  %2493 = vmatpush3.bf16.msra.mxu1 %v2980_v7  ;;  %v3345_v5 = vsel %vm589_vm3, %v798_v62, %v800_v2  ;;  %v1014_v7 = vsel %vm961_vm2, %v1004_v37, %v1013_v60  ;;  %v3007_v37 = vld [vmem:[%s3748_s1 + $0x1b0] sm:$0xff]   ;;  %v3456_v53 = vsel %vm589_vm3, %v800_v2, %v802_v46  ;;  %v3010_v60 = vld [vmem:[%s3748_s1 + $0xb8] sm:$0xff]  }
  0x32   : > { %2494 = vmatprep.subr.bf16.mxu1 %v3053_v1 }
  0x34   : > { %2639 = vmatpush3.bf16.msra.mxu0 %v2979_v12  ;;  %v590_v12 = vrot.slane %v2113_v11, 1  ;;  %v3015_v11 = vld [vmem:[%s3748_s1 + $0x1c8] sm:$0xff]  }
  0x35   : > { %2640 = vmatprep.subr.bf16.mxu0 %v3053_v1  ;;  %2495 = vmatpush3.bf16.msra.mxu1 %v2981_v20  ;;  %v2995_v20 = vld [vmem:[%s3748_s1 + $0x180] sm:$0xff]  }
  0x36   : > { %2477 = vmatmul.mubr.bf16.gmra.mrb[8].mxu1 %v299_v24  ;;  %2496 = vmatprep.subr.bf16.mxu1 %v3053_v1  ;;  %v3359_v19 = vsel %vm589_vm3, %v590_v12, %v591_v41  ;;  %v1177_v24 = vsel %vm1172_vm4, %v1174_v18, %v1176_v23  ;;  %v3008_v41 = vld [vmem:[%s3748_s1 + $0xb0] sm:$0xff]   ;;  %v1379_v12 = vrot.slane %v3435_v38, 2 }
  0x37   : > { %2621 = vmatmul.mubr.bf16.gmra.mrb[8].mxu0 %v996_v27  ;;  %2480 = vmatprep.mubr.msk.bf16.mxu1 %vm3054_vm0, %v3053_v1  ;;  %v1178_v27 = vrot.slane %v3208_v52, 2  ;;  %v3003_v52 = vld [vmem:[%s3748_s1 + $0x1a0] sm:$0xff]  }
  0x38   : > { %2641 = vmatpush3.bf16.msra.mxu0 %v2982_v22  ;;  %2624 = vmatprep.mubr.msk.bf16.mxu0 %vm3054_vm0, %v3053_v1  ;;  %v2997_v22 = vld [vmem:[%s3748_s1 + $0x80] sm:$0xff]  }
  0x39   : > { %2497 = vmatpush3.bf16.msra.mxu1 %v2985_v30  ;;  %2642 = vmatprep.subr.bf16.mxu0 %v3053_v1  ;;  %v1179_v29 = vsel %vm1172_vm4, %v1176_v23, %v1178_v27  ;;  %v3004_v30 = vld [vmem:[%s3748_s1 + $0xa0] sm:$0xff]  }
  0x3a   : > { %2498 = vmatprep.subr.bf16.mxu1 %v3053_v1 }
  0x3c   : > { %2643 = vmatpush3.bf16.msra.mxu0 %v2986_v32  ;;  %v1180_v32 = vrot.slane %v3239_v6, 2  ;;  %v1182_v6 = vrot.slane %v3270_v26, 2 }
  0x3d   : > { %2499 = vmatpush3.bf16.msra.mxu1 %v2987_v36  ;;  %2644 = vmatprep.subr.bf16.mxu0 %v3053_v1  ;;  %v3428_v36 = vld [vmem:[%s3130_s10 + $0x10] sm:$0xff]  }
  0x3e   : > { %2481 = vmatmul.mubr.bf16.gmra.mrb[12].mxu1 %v307_v44  ;;  %2500 = vmatprep.subr.bf16.mxu1 %v3053_v1  ;;  %v1757_v44 = vrot.slane %v3428_v36, 3  ;;  %v1181_v45 = vsel %vm1172_vm4, %v1178_v27, %v1180_v32  ;;  %v1183_v26 = vsel %vm1172_vm4, %v1180_v32, %v1182_v6  ;;  %v3028_v27 = vld [vmem:[%s3748_s1 + $0xe8] sm:$0xff]   ;;  %v1554_v40 = vshrl.u32 %v3428_v36, 16 }
  0x3f   : > { %2625 = vmatmul.mubr.bf16.gmra.mrb[12].mxu0 %v1005_v48  ;;  %2484 = vmatprep.mubr.msk.bf16.mxu1 %vm3054_vm0, %v3053_v1  ;;  %v1759_v48 = vrot.slane %v3435_v38, 3  ;;  %v1563_v6 = vshrl.u32 %v3435_v38, 16 }
  0x40   : > { %2628 = vmatprep.mubr.msk.bf16.mxu0 %vm3054_vm0, %v3053_v1  ;;  %2645 = vmatpush3.bf16.msra.mxu0 %v2988_v43  ;;  %v3442_v43 = vld [vmem:[%s3130_s10 + $0x20] sm:$0xff]   ;;  %v3481_v62 = vsel %vm1755_vm5, %v1756_v59, %v1757_v44 }
  0x41   : > { %2501 = vmatpush3.bf16.msra.mxu1 %v2991_v51  ;;  %2646 = vmatprep.subr.bf16.mxu0 %v3053_v1  ;;  %v1761_v51 = vrot.slane %v3442_v43, 3  ;;  %v3459_v55 = vsel %vm1755_vm5, %v1757_v44, %v1759_v48 }
  0x42   : > { %2502 = vmatprep.subr.bf16.mxu1 %v3053_v1 }
  0x43   : > { %v3466_v56 = vsel %vm1755_vm5, %v1759_v48, %v1761_v51 }
  0x44   : > { %2647 = vmatpush3.bf16.msra.mxu0 %v2992_v21  ;;  %v1320_v21 = vld [vmem:[%s3130_s10 + $0x8] sm:$0xc] }
  0x45   : > { %2503 = vmatpush3.bf16.msra.mxu1 %v2993_v63  ;;  %2668 = vmatprep.subr.bf16.mxu0 %v3053_v1  ;;  %v3484_v63 = vcombine.low %v1320_v21, %v1321_v49  ;;  %v1556_v49 = vrot.slane %v1554_v40, 2  ;;  %v1565_v21 = vrot.slane %v1563_v6, 2 }
  0x46   : > { %2485 = vmatmul.mubr.bf16.gmra.mrb[16].mxu1 %v315_v4  ;;  %2524 = vmatprep.subr.bf16.mxu1 %v3053_v1  ;;  %v1377_v4 = vrot.slane %v3428_v36, 2 }
  0x47   : > { %2629 = vmatmul.mubr.bf16.gmra.mrb[16].mxu0 %v1014_v7  ;;  %2504 = vmatprep.mubr.msk.bf16.mxu1 %vm3054_vm0, %v3053_v1  ;;  %v1376_v2 = vrot.slane %v3484_v63, 2  ;;  %v1546_v32 = vshrl.u32 %v3484_v63, 16 }
  0x48   : > { %2648 = vmatprep.mubr.msk.bf16.mxu0 %vm3054_vm0, %v3053_v1  ;;  %v1380_v18 = vsel %vm1172_vm4, %v1377_v4, %v1379_v12 }
  0x49   : > { %v1378_v7 = vsel %vm1172_vm4, %v1376_v2, %v1377_v4  ;;  %v1572_v2 = vshrl.u32 %v3442_v43, 16  ;;  %v1575_v4 = vshll.u32 %v3442_v43, 16 }
  0x4e   : > { %2505 = vmatmul.mubr.bf16.vlgmr.msra.gmra.mrb[0].mxu1 %v3148_v14  ;;  %v2999_v14 = vld [vmem:[%s3748_s1 + $0x88] sm:$0xff]  }
  0x4f   : > { %2649 = vmatmul.mubr.bf16.vlgmr.msra.gmra.mrb[0].mxu0 %v1175_v13  ;;  %2508 = vmatprep.mubr.msk.bf16.mxu1 %vm3054_vm0, %v3053_v1  ;;  %v3022_v13 = vld [vmem:[%s3748_s1 + $0xd0] sm:$0xff]  }
  0x50   : > { %2669 = vmatpush3.bf16.msra.mxu0 %v2995_v20  ;;  %2652 = vmatprep.mubr.msk.bf16.mxu0 %vm3054_vm0, %v3053_v1  ;;  %v595_v20 = vrot.slane %v3220_v57, 1 }
  0x51   : > { %2670 = vmatprep.subr.bf16.mxu0 %v3053_v1  ;;  %2525 = vmatpush3.bf16.msra.mxu1 %v2997_v22  ;;  %v1381_v22 = vrot.slane %v3442_v43, 2 }
  0x52   : > { %2526 = vmatprep.subr.bf16.mxu1 %v3053_v1 }
  0x53   : > { %v1382_v23 = vsel %vm1172_vm4, %v1379_v12, %v1381_v22  ;;  %v3037_v12 = vld [vmem:[%s3748_s1 + $0x218] sm:$0xff]  }
  0x54   : > { %2671 = vmatpush3.bf16.msra.mxu0 %v2996_v16  ;;  %v3021_v16 = vld [vmem:[%s3748_s1 + $0x1d8] sm:$0xff]  }
  0x55   : > { %2672 = vmatprep.subr.bf16.mxu0 %v3053_v1  ;;  %2527 = vmatpush3.bf16.msra.mxu1 %v2999_v14  ;;  %v3024_v14 = vld [vmem:[%s3748_s1 + $0x1e0] sm:$0xff]  }
  0x56   : > { %2509 = vmatmul.mubr.bf16.gmra.mrb[4].mxu1 %v3151_v15  ;;  %2528 = vmatprep.subr.bf16.mxu1 %v3053_v1  ;;  %v3002_v15 = vld [vmem:[%s3748_s1 + $0x98] sm:$0xff]  }
  0x57   : > { %2653 = vmatmul.mubr.bf16.gmra.mrb[4].mxu0 %v1177_v24  ;;  %2512 = vmatprep.mubr.msk.bf16.mxu1 %vm3054_vm0, %v3053_v1  ;;  %v3548_v24 = vld [vmem:[%s3130_s10 + $0x28] sm:$0xff]  }
  0x58   : > { %2673 = vmatpush3.bf16.msra.mxu0 %v2998_v25  ;;  %2656 = vmatprep.mubr.msk.bf16.mxu0 %vm3054_vm0, %v3053_v1  ;;  %v3026_v25 = vld [vmem:[%s3748_s1 + $0xe0] sm:$0xff]  }
  0x59   : > { %2674 = vmatprep.subr.bf16.mxu0 %v3053_v1  ;;  %2529 = vmatpush3.bf16.msra.mxu1 %v3001_v35  ;;  %v3027_v35 = vld [vmem:[%s3748_s1 + $0x1e8] sm:$0xff]  }
  0x5a   : > { %2530 = vmatprep.subr.bf16.mxu1 %v3053_v1 }
  0x5c   : > { %2675 = vmatpush3.bf16.msra.mxu0 %v3000_v28 }
  0x5d   : > { %2676 = vmatprep.subr.bf16.mxu0 %v3053_v1  ;;  %2531 = vmatpush3.bf16.msra.mxu1 %v3002_v15  ;;  %v3029_v15 = vld [vmem:[%s3748_s1 + $0x1f0] sm:$0xff]  }
  0x5e   : > { %2513 = vmatmul.mubr.bf16.gmra.mrb[8].mxu1 %v3190_v39  ;;  %2532 = vmatprep.subr.bf16.mxu1 %v3053_v1  ;;  %v597_v39 = vrot.slane %v3249_v10, 1 }
  0x5f   : > { %2657 = vmatmul.mubr.bf16.gmra.mrb[8].mxu0 %v1179_v29  ;;  %2516 = vmatprep.mubr.msk.bf16.mxu1 %vm3054_vm0, %v3053_v1  ;;  %v3030_v29 = vld [vmem:[%s3130_s10 + $0x30] ss:$0 sps:$4 sm:$0x33]  }
  0x60   : > { %2677 = vmatpush3.bf16.msra.mxu0 %v3003_v52  ;;  %2660 = vmatprep.mubr.msk.bf16.mxu0 %vm3054_vm0, %v3053_v1  ;;  %v3031_v52 = vld [vmem:[%s3748_s1 + $0xf0] sm:$0xff]  }
  0x61   : > { %2533 = vmatpush3.bf16.msra.mxu1 %v3004_v30  ;;  %2678 = vmatprep.subr.bf16.mxu0 %v3053_v1  ;;  %v599_v30 = vrot.slane %v3278_v31, 1  ;;  %v3033_v31 = vld [vmem:[%s3748_s1 + $0xf8] sm:$0xff]  }
  0x62   : > { %2534 = vmatprep.subr.bf16.mxu1 %v3053_v1 }
  0x63   : > { %v600_v44 = vsel %vm589_vm3, %v597_v39, %v599_v30 }
  0x64   : > { %2679 = vmatpush3.bf16.msra.mxu0 %v3005_v33  ;;  %v1385_v33 = vrot.slane %v3030_v29, 2 }
  0x65   : > { %2535 = vmatpush3.bf16.msra.mxu1 %v3006_v34  ;;  %2680 = vmatprep.subr.bf16.mxu0 %v3053_v1  ;;  %v3032_v34 = vld [vmem:[%s3748_s1 + $0x1f8] sm:$0xff]  }
  0x66   : > { %2517 = vmatmul.mubr.bf16.gmra.mrb[12].mxu1 %v3220_v57  ;;  %2536 = vmatprep.subr.bf16.mxu1 %v3053_v1  ;;  %v596_v57 = vsel %vm589_vm3, %v593_v42, %v595_v20  ;;  %v1383_v42 = vrot.slane %v3548_v24, 2 }
  0x67   : > { %2661 = vmatmul.mubr.bf16.gmra.mrb[12].mxu0 %v1181_v45  ;;  %2520 = vmatprep.mubr.msk.bf16.mxu1 %vm3054_vm0, %v3053_v1  ;;  %v1548_v45 = vrot.slane %v1546_v32, 2 }
  0x68   : > { %2664 = vmatprep.mubr.msk.bf16.mxu0 %vm3054_vm0, %v3053_v1  ;;  %2681 = vmatpush3.bf16.msra.mxu0 %v3007_v37  ;;  %v1384_v28 = vsel %vm1172_vm4, %v1381_v22, %v1383_v42  ;;  %v1549_v37 = vshll.u32 %v3484_v63, 16  ;;  %v1386_v46 = vsel %vm1172_vm4, %v1383_v42, %v1385_v33  ;;  %v3042_v22 = vld [vmem:[%s3130_s10 + $0x30] ss:$0 sps:$4 sm:$0x77]  }
  0x69   : > { %2537 = vmatpush3.bf16.msra.mxu1 %v3008_v41  ;;  %2682 = vmatprep.subr.bf16.mxu0 %v3053_v1  ;;  %v1557_v41 = vshll.u32 %v3428_v36, 16 }
  0x6a   : > { %2538 = vmatprep.subr.bf16.mxu1 %v3053_v1  ;;  %v1551_v48 = vrot.slane %v1549_v37, 3 }
  0x6b   : > { %v1559_v50 = vrot.slane %v1557_v41, 3 }
  0x6c   : > { %2683 = vmatpush3.bf16.msra.mxu0 %v3009_v58  ;;  %v1552_v36 = vor.u32 %v1551_v48, %v1548_v45  ;;  %v1566_v58 = vshll.u32 %v3435_v38, 16  ;;  %v3035_v38 = vld [vmem:[%s3748_s1 + $0x208] sm:$0xff]  }
  0x6d   : > { %2539 = vmatpush3.bf16.msra.mxu1 %v3010_v60  ;;  %2704 = vmatprep.subr.bf16.mxu0 %v3053_v1  ;;  %v1560_v54 = vor.u32 %v1559_v50, %v1556_v49  ;;  %v3034_v60 = vld [vmem:[%s3748_s1 + $0x200] sm:$0xff]  }
  0x6e   : > { %2521 = vmatmul.mubr.bf16.gmra.mrb[16].mxu1 %v3249_v10  ;;  %2560 = vmatprep.subr.bf16.mxu1 %v3053_v1  ;;  %v598_v10 = vsel %vm589_vm3, %v595_v20, %v597_v39 }
  0x6f   : > { %2665 = vmatmul.mubr.bf16.gmra.mrb[16].mxu0 %v1183_v26  ;;  %2540 = vmatprep.mubr.msk.bf16.mxu1 %vm3054_vm0, %v3053_v1  ;;  %v1561_v59 = vsel %vm1544_vm6, %v1552_v36, %v1560_v54  ;;  %v1568_v26 = vrot.slane %v1566_v58, 3 }
  0x70   : > { %2684 = vmatprep.mubr.msk.bf16.mxu0 %vm3054_vm0, %v3053_v1 }
  0x71   : > { %v1569_v63 = vor.u32 %v1568_v26, %v1565_v21 }
  0x76   : > { %2541 = vmatmul.mubr.bf16.vlgmr.msra.gmra.mrb[0].mxu1 %v3359_v19  ;;  %v3018_v19 = vld [vmem:[%s3748_s1 + $0x1d0] sm:$0xff]  }
  0x77   : > { %2685 = vmatmul.mubr.bf16.vlgmr.msra.gmra.mrb[0].mxu0 %v1378_v7  ;;  %2544 = vmatprep.mubr.msk.bf16.mxu1 %vm3054_vm0, %v3053_v1  ;;  %v3036_v7 = vld [vmem:[%s3748_s1 + $0x210] sm:$0xff]  }
  0x78   : > { %2705 = vmatpush3.bf16.msra.mxu0 %v3014_v8  ;;  %2688 = vmatprep.mubr.msk.bf16.mxu0 %vm3054_vm0, %v3053_v1  ;;  %v1574_v8 = vrot.slane %v1572_v2, 2 }
  0x79   : > { %2706 = vmatprep.subr.bf16.mxu0 %v3053_v1  ;;  %2561 = vmatpush3.bf16.msra.mxu1 %v3017_v9  ;;  %v1577_v9 = vrot.slane %v1575_v4, 3 }
  0x7a   : > { %2562 = vmatprep.subr.bf16.mxu1 %v3053_v1 }
  0x7c   : > { %2707 = vmatpush3.bf16.msra.mxu0 %v3015_v11  ;;  %v1578_v11 = vor.u32 %v1577_v9, %v1574_v8  ;;  %v3708_v8 = vld [vmem:[%s3750_s3] ss:$0 sm:$0xff] }
  0x7d   : > { %2708 = vmatprep.subr.bf16.mxu0 %v3053_v1  ;;  %2563 = vmatpush3.bf16.msra.mxu1 %v3019_v17  ;;  %v1581_v17 = vshrl.u32 %v3548_v24, 16 }
  0x7e   : > { %2545 = vmatmul.mubr.bf16.gmra.mrb[4].mxu1 %v3306_v47  ;;  %2564 = vmatprep.subr.bf16.mxu1 %v3053_v1  ;;  %v3023_v47 = vld [vmem:[%s3748_s1 + $0xd8] sm:$0xff]  }
  0x7f   : > { %2689 = vmatmul.mubr.bf16.gmra.mrb[4].mxu0 %v1380_v18  ;;  %2548 = vmatprep.mubr.msk.bf16.mxu1 %vm3054_vm0, %v3053_v1  ;;  %v1579_v18 = vsel %vm1544_vm6, %v1569_v63, %v1578_v11 }
  0x80   : > { %2709 = vmatpush3.bf16.msra.mxu0 %v3018_v19  ;;  %2692 = vmatprep.mubr.msk.bf16.mxu0 %vm3054_vm0, %v3053_v1  ;;  %v3038_v19 = vld [vmem:[%s3748_s1 + $0x220] sm:$0xff]  }
  0x81   : > { %2710 = vmatprep.subr.bf16.mxu0 %v3053_v1  ;;  %2565 = vmatpush3.bf16.msra.mxu1 %v3022_v13  ;;  %v1583_v13 = vrot.slane %v1581_v17, 2 }
  0x82   : > { %2566 = vmatprep.subr.bf16.mxu1 %v3053_v1 }
  0x84   : > { %2711 = vmatpush3.bf16.msra.mxu0 %v3021_v16 }
  0x85   : > { %2712 = vmatprep.subr.bf16.mxu0 %v3053_v1  ;;  %2567 = vmatpush3.bf16.msra.mxu1 %v3023_v47  ;;  %v3039_v47 = vld [vmem:[%s3748_s1 + $0x228] sm:$0xff]  }
  0x86   : > { %2549 = vmatmul.mubr.bf16.gmra.mrb[8].mxu1 %v596_v57  ;;  %2568 = vmatprep.subr.bf16.mxu1 %v3053_v1  ;;  %v1590_v57 = vshrl.u32 %v3042_v22, 16 }
  0x87   : > { %2693 = vmatmul.mubr.bf16.gmra.mrb[8].mxu0 %v1382_v23  ;;  %2552 = vmatprep.mubr.msk.bf16.mxu1 %vm3054_vm0, %v3053_v1  ;;  %v1593_v23 = vshll.u32 %v3042_v22, 16 }
  0x88   : > { %2713 = vmatpush3.bf16.msra.mxu0 %v3024_v14  ;;  %2696 = vmatprep.mubr.msk.bf16.mxu0 %vm3054_vm0, %v3053_v1  ;;  %v3040_v14 = vld [vmem:[%s3748_s1 + $0x230] sm:$0xff]  }
  0x89   : > { %2569 = vmatpush3.bf16.msra.mxu1 %v3026_v25  ;;  %2714 = vmatprep.subr.bf16.mxu0 %v3053_v1  ;;  %v1592_v25 = vrot.slane %v1590_v57, 2  ;;  %v1595_v39 = vrot.slane %v1593_v23, 3 }
  0x8a   : > { %2570 = vmatprep.subr.bf16.mxu1 %v3053_v1 }
  0x8b   : > { %v1596_v42 = vor.u32 %v1595_v39, %v1592_v25 }
  0x8c   : > { %2715 = vmatpush3.bf16.msra.mxu0 %v3027_v35  ;;  %v3043_v35 = vld [vmem:[%s3748_s1 + $0x238] sm:$0xff]  }
  0x8d   : > { %2571 = vmatpush3.bf16.msra.mxu1 %v3028_v27  ;;  %2716 = vmatprep.subr.bf16.mxu0 %v3053_v1  ;;  %v1763_v27 = vrot.slane %v3548_v24, 3 }
  0x8e   : > { %2553 = vmatmul.mubr.bf16.gmra.mrb[12].mxu1 %v598_v10  ;;  %2572 = vmatprep.subr.bf16.mxu1 %v3053_v1 }
  0x8f   : > { %2697 = vmatmul.mubr.bf16.gmra.mrb[12].mxu0 %v1384_v28  ;;  %2556 = vmatprep.mubr.msk.bf16.mxu1 %vm3054_vm0, %v3053_v1  ;;  %v1764_v10 = vsel %vm1755_vm5, %v1761_v51, %v1763_v27 }
  0x90   : > { %2700 = vmatprep.mubr.msk.bf16.mxu0 %vm3054_vm0, %v3053_v1  ;;  %2717 = vmatpush3.bf16.msra.mxu0 %v3029_v15 }
  0x91   : > { %2573 = vmatpush3.bf16.msra.mxu1 %v3031_v52  ;;  %2718 = vmatprep.subr.bf16.mxu0 %v3053_v1 }
  0x92   : > { %2574 = vmatprep.subr.bf16.mxu1 %v3053_v1 }
  0x94   : > { %2719 = vmatpush3.bf16.msra.mxu0 %v3032_v34 }
  0x95   : > { %2575 = vmatpush3.bf16.msra.mxu1 %v3033_v31  ;;  %2740 = vmatprep.subr.bf16.mxu0 %v3053_v1 }
  0x96   : > { %2557 = vmatmul.mubr.bf16.gmra.mrb[16].mxu1 %v600_v44  ;;  %2776 = vmatprep.subr.bf16.mxu1 %v3053_v1 }
  0x97   : > { %2701 = vmatmul.mubr.bf16.gmra.mrb[16].mxu0 %v1386_v46  ;;  %2576 = vmatprep.mubr.msk.bf16.mxu1 %vm3054_vm0, %v3053_v1 }
  0x98   : > { %2720 = vmatprep.mubr.msk.bf16.mxu0 %vm3054_vm0, %v3053_v1 }
  0x9e   : > { %2577 = vmatmul.mubr.bf16.vlgmr.msra.gmra.mrb[0].mxu1 %v3326_v61  ;;  %v1570_v61 = vsel %vm1544_vm6, %v1560_v54, %v1569_v63 }
  0x9f   : > { %2721 = vmatmul.mubr.bf16.vlgmr.msra.gmra.mrb[0].mxu0 %v1561_v59  ;;  %2580 = vmatprep.mubr.msk.bf16.mxu1 %vm3054_vm0, %v3053_v1 }
  0xa0   : > { %2741 = vmatpush3.bf16.msra.mxu0 %v3034_v60  ;;  %2724 = vmatprep.mubr.msk.bf16.mxu0 %vm3054_vm0, %v3053_v1 }
  0xa1   : > { %2742 = vmatprep.subr.bf16.mxu0 %v3053_v1  ;;  %2784 = vmatpush3.bf16.msra.mxu1 %v3034_v60 }
  0xa2   : > { %2777 = vmatprep.subr.bf16.mxu1 %v3053_v1 }
  0xa4   : > { %2743 = vmatpush3.bf16.msra.mxu0 %v3035_v38 }
  0xa5   : > { %2744 = vmatprep.subr.bf16.mxu0 %v3053_v1  ;;  %2785 = vmatpush3.bf16.msra.mxu1 %v3035_v38  ;;  %v3703_v38 = vld [vmem:[%s3749_s2] ss:$0 sm:$0xff] }
  0xa6   : > { %2581 = vmatmul.mubr.bf16.gmra.mrb[4].mxu1 %v3334_v0  ;;  %2778 = vmatprep.subr.bf16.mxu1 %v3053_v1  ;;  %v1584_v0 = vshll.u32 %v3548_v24, 16 }
  0xa7   : > { %2725 = vmatmul.mubr.bf16.gmra.mrb[4].mxu0 %v1570_v61  ;;  %2584 = vmatprep.mubr.msk.bf16.mxu1 %vm3054_vm0, %v3053_v1 }
  0xa8   : > { %2745 = vmatpush3.bf16.msra.mxu0 %v3036_v7  ;;  %2728 = vmatprep.mubr.msk.bf16.mxu0 %vm3054_vm0, %v3053_v1  ;;  %v1586_v20 = vrot.slane %v1584_v0, 3 }
  0xa9   : > { %2746 = vmatprep.subr.bf16.mxu0 %v3053_v1  ;;  %2786 = vmatpush3.bf16.msra.mxu1 %v3036_v7 }
  0xaa   : > { %2779 = vmatprep.subr.bf16.mxu1 %v3053_v1  ;;  %v1587_v16 = vor.u32 %v1586_v20, %v1583_v13 }
  0xac   : > { %2747 = vmatpush3.bf16.msra.mxu0 %v3037_v12 }
  0xad   : > { %2748 = vmatprep.subr.bf16.mxu0 %v3053_v1  ;;  %2787 = vmatpush3.bf16.msra.mxu1 %v3037_v12 }
  0xae   : > { %2585 = vmatmul.mubr.bf16.gmra.mrb[8].mxu1 %v3339_v3  ;;  %2780 = vmatprep.subr.bf16.mxu1 %v3053_v1  ;;  %v1588_v3 = vsel %vm1544_vm6, %v1578_v11, %v1587_v16 }
  0xaf   : > { %2729 = vmatmul.mubr.bf16.gmra.mrb[8].mxu0 %v1579_v18  ;;  %2588 = vmatprep.mubr.msk.bf16.mxu1 %vm3054_vm0, %v3053_v1 }
  0xb0   : > { %2749 = vmatpush3.bf16.msra.mxu0 %v3038_v19  ;;  %2732 = vmatprep.mubr.msk.bf16.mxu0 %vm3054_vm0, %v3053_v1 }
  0xb1   : > { %2788 = vmatpush3.bf16.msra.mxu1 %v3038_v19  ;;  %2750 = vmatprep.subr.bf16.mxu0 %v3053_v1 }
  0xb2   : > { %2781 = vmatprep.subr.bf16.mxu1 %v3053_v1 }
  0xb4   : > { %2751 = vmatpush3.bf16.msra.mxu0 %v3039_v47 }
  0xb5   : > { %2789 = vmatpush3.bf16.msra.mxu1 %v3039_v47  ;;  %2752 = vmatprep.subr.bf16.mxu0 %v3053_v1 }
  0xb6   : > { %2589 = vmatmul.mubr.bf16.gmra.mrb[12].mxu1 %v3345_v5  ;;  %2782 = vmatprep.subr.bf16.mxu1 %v3053_v1  ;;  %v1597_v5 = vsel %vm1544_vm6, %v1587_v16, %v1596_v42 }
  0xb7   : > { %2733 = vmatmul.mubr.bf16.gmra.mrb[12].mxu0 %v1588_v3  ;;  %2592 = vmatprep.mubr.msk.bf16.mxu1 %vm3054_vm0, %v3053_v1 }
  0xb8   : > { %2736 = vmatprep.mubr.msk.bf16.mxu0 %vm3054_vm0, %v3053_v1  ;;  %2753 = vmatpush3.bf16.msra.mxu0 %v3040_v14 }
  0xb9   : > { %2790 = vmatpush3.bf16.msra.mxu1 %v3040_v14  ;;  %2754 = vmatprep.subr.bf16.mxu0 %v3053_v1 }
  0xba   : > { %2783 = vmatprep.subr.bf16.mxu1 %v3053_v1 }
  0xbc   : > { %2755 = vmatpush3.bf16.msra.mxu0 %v3043_v35 }
  0xbd   : > { %2791 = vmatpush3.bf16.msra.mxu1 %v3043_v35 }
  0xbe   : > { %2593 = vmatmul.mubr.bf16.gmra.mrb[16].mxu1 %v3456_v53  ;;  %v1765_v53 = vrot.slane %v3042_v22, 3 }
  0xbf   : > { %2737 = vmatmul.mubr.bf16.gmra.mrb[16].mxu0 %v1597_v5  ;;  %2768 = vmatprep.mubr.msk.bf16.mxu1 %vm3054_vm0, %v3053_v1 }
  0xc0   : > { %2756 = vmatprep.mubr.msk.bf16.mxu0 %vm3054_vm0, %v3053_v1  ;;  %v1766_v28 = vsel %vm1755_vm5, %v1763_v27, %v1765_v53 }
  0xc6   : > { %2769 = vmatmul.mubr.bf16.vlgmr.msra.gmra.mrb[20].mxu1 %v1764_v10 }
  0xc7   : > { %2757 = vmatmul.mubr.bf16.vlgmr.msra.gmra.mrb[0].mxu0 %v3481_v62  ;;  %2772 = vmatprep.mubr.msk.bf16.mxu1 %vm3054_vm0, %v3053_v1 }
  0xc8   : > { %2760 = vmatprep.mubr.msk.bf16.mxu0 %vm3054_vm0, %v3053_v1 }
  0xce   : > { %2773 = vmatmul.mubr.bf16.gmra.mrb[24].mxu1 %v1766_v28 }
  0xcf   : > { %2761 = vmatmul.mubr.bf16.gmra.mrb[4].mxu0 %v3459_v55 }
  0xd0   : > { %2764 = vmatprep.mubr.msk.bf16.mxu0 %vm3054_vm0, %v3053_v1 }
  0xd7   : > { %2765 = vmatmul.mubr.bf16.gmra.mrb[8].mxu0 %v3466_v56 }
 0x171   : > { %v891_v43 = vpop.f32.mrb[0].mxu1 }
 0x172   : > { %v2578_v51 = vpop.f32.mrb[1].mxu1 }
 0x173   : > { %v894_v62 = vpop.f32.mrb[2].mxu1 }
 0x174   : > { %v2579_v24 = vpop.f32.mrb[3].mxu1 }
 0x179   : > { %v899_v15 = vpop.f32.mrb[4].mxu1 }
 0x17a   : > { %v2582_v29 = vpop.f32.mrb[5].mxu1 }
 0x17b   : > { %v3694_v52 = vpop.f32.mrb[6].mxu1 }
 0x17c   : > { %v2583_v30 = vpop.f32.mrb[7].mxu1 }
 0x181   : > { %v3696_v32 = vpop.f32.mrb[8].mxu1 }
 0x182   : > { %v2586_v33 = vpop.f32.mrb[9].mxu1 }
 0x183   : > { %v3698_v34 = vpop.f32.mrb[10].mxu1 }
 0x184   : > { %v2587_v55 = vpop.f32.mrb[11].mxu1 }
 0x189   : > { %v915_v37 = vpop.f32.mrb[12].mxu1 }
 0x18a   : > { %v1709_v40 = vpop.f32.mrb[12].mxu0  ;;  %v2590_v1 = vpop.f32.mrb[13].mxu1 }
 0x18b   : > { %v2798_v41 = vadd.f32 %v1709_v40, %v915_v37  ;;  %v2734_v56 = vpop.f32.mrb[13].mxu0  ;;  %v918_v31 = vpop.f32.mrb[14].mxu1 }
 0x18c   : > { %v1712_v44 = vpop.f32.mrb[14].mxu0  ;;  %v2591_v45 = vpop.f32.mrb[15].mxu1 }
 0x18d   : > { %v2800_v46 = vadd.f32 %v1712_v44, %v918_v31  ;;  %v2735_v48 = vpop.f32.mrb[15].mxu0 }
 0x191   : > { %v923_v49 = vpop.f32.mrb[16].mxu1 }
 0x192   : > { %v1717_v50 = vpop.f32.mrb[16].mxu0  ;;  %v2594_v36 = vpop.f32.mrb[17].mxu1 }
 0x193   : > { %v2802_v54 = vadd.f32 %v1717_v50, %v923_v49  ;;  %v2738_v6 = vpop.f32.mrb[17].mxu0  ;;  %v926_v58 = vpop.f32.mrb[18].mxu1 }
 0x194   : > { %v1720_v59 = vpop.f32.mrb[18].mxu0  ;;  %v2595_v60 = vpop.f32.mrb[19].mxu1 }
 0x195   : > { %v2804_v21 = vadd.f32 %v1720_v59, %v926_v58  ;;  %v2739_v26 = vpop.f32.mrb[19].mxu0 }
 0x199   : > { %v1878_v63 = vpop.f32.mrb[20].mxu1 }
 0x19a   : > { %v1854_v2 = vpop.f32.mrb[0].mxu0  ;;  %v2799_v4 = vadd.f32 %v2798_v41, %v1878_v63  ;;  %v2770_v61 = vpop.f32.mrb[21].mxu1 }
 0x19b   : > { %v2792_v7 = vadd.f32 %v1854_v2, %v891_v43  ;;  %v2758_v9 = vpop.f32.mrb[1].mxu0  ;;  %v1881_v11 = vpop.f32.mrb[22].mxu1 }
 0x19c   : > { %v1916_v12 = vmul.f32 %v2799_v4, %v3703_v38  ;;  %v1857_v17 = vpop.f32.mrb[2].mxu0  ;;  %v2801_v0 = vadd.f32 %v2800_v46, %v1881_v11  ;;  %v2771_v18 = vpop.f32.mrb[23].mxu1 }
 0x19d   : > { %v1910_v19 = vmul.f32 %v2792_v7, %v3703_v38  ;;  %v2793_v13 = vadd.f32 %v1857_v17, %v894_v62  ;;  %v2759_v20 = vpop.f32.mrb[3].mxu0 }
 0x19e   : > { %v1933_v22 = vadd.f32 %v3708_v8, %v1916_v12  ;;  %v1917_v16 = vmul.f32 %v2801_v0, %v3703_v38 }
 0x19f   : > { %v1927_v47 = vadd.f32 %v3708_v8, %v1910_v19  ;;  %v1911_v57 = vmul.f32 %v2793_v13, %v3703_v38 }
 0x1a0   : > { %v1934_v23 = vadd.f32 %v3708_v8, %v1917_v16  ;;  %v1943_v25 = vmax.f32 %v1933_v22, 0.0 }
 0x1a1   : > { %v1928_v3 = vadd.f32 %v3708_v8, %v1911_v57  ;;  %v1886_v14 = vpop.f32.mrb[24].mxu1  ;;  %v1937_v27 = vmax.f32 %v1927_v47, 0.0 }
 0x1a2   : > { %v1944_v39 = vmax.f32 %v1934_v23, 0.0  ;;  %v1862_v42 = vpop.f32.mrb[4].mxu0  ;;  %v2803_v35 = vadd.f32 %v2802_v54, %v1886_v14  ;;  %v2774_v5 = vpop.f32.mrb[25].mxu1 }
 0x1a3   : > { %v1938_v10 = vmax.f32 %v1928_v3, 0.0  ;;  %v2794_v53 = vadd.f32 %v1862_v42, %v899_v15  ;;  %v2762_v28 = vpop.f32.mrb[5].mxu0  ;;  %v1889_v43 = vpop.f32.mrb[26].mxu1 }
 0x1a4   : > { %v2324_v51 = vpack.c.bf16 %v1944_v39, %v1943_v25  ;;  %v1918_v62 = vmul.f32 %v2803_v35, %v3703_v38  ;;  %v1865_v24 = vpop.f32.mrb[6].mxu0  ;;  %v2805_v29 = vadd.f32 %v2804_v21, %v1889_v43  ;;  %v2775_v30 = vpop.f32.mrb[27].mxu1 }
 0x1a5   : > { %v2309_v33 = vpack.c.bf16 %v1938_v10, %v1937_v27  ;;  %v1912_v55 = vmul.f32 %v2794_v53, %v3703_v38  ;;  %v2795_v37 = vadd.f32 %v1865_v24, %v3694_v52  ;;  %v2763_v40 = vpop.f32.mrb[7].mxu0 }
 0x1a6   : > { %2333 = vst [vmem:[%s3722_s6 + $0x18] sm:$0xff] %v2324_v51   ;;  %v1935_v1 = vadd.f32 %v3708_v8, %v1918_v62  ;;  %v1919_v41 = vmul.f32 %v2805_v29, %v3703_v38 }
 0x1a7   : > { %2310 = vst [vmem:[%s3722_s6] sm:$0xff] %v2309_v33   ;;  %v1929_v15 = vadd.f32 %v3708_v8, %v1912_v55  ;;  %v1913_v56 = vmul.f32 %v2795_v37, %v3703_v38 }
 0x1a8   : > { %v1936_v31 = vadd.f32 %v3708_v8, %v1919_v41  ;;  %v1945_v45 = vmax.f32 %v1935_v1, 0.0 }
 0x1a9   : > { %v1930_v44 = vadd.f32 %v3708_v8, %v1913_v56  ;;  %v1939_v48 = vmax.f32 %v1929_v15, 0.0 }
 0x1aa   : > { %v1946_v46 = vmax.f32 %v1936_v31, 0.0  ;;  %v1870_v52 = vpop.f32.mrb[8].mxu0 }
 0x1ab   : > { %v1940_v49 = vmax.f32 %v1930_v44, 0.0  ;;  %v2796_v50 = vadd.f32 %v1870_v52, %v3696_v32  ;;  %v2766_v36 = vpop.f32.mrb[9].mxu0 }
 0x1ac   : > { %v2329_v54 = vpack.c.bf16 %v1946_v46, %v1945_v45  ;;  %v1873_v6 = vpop.f32.mrb[10].mxu0 }
 0x1ad   : > { %v2314_v58 = vpack.c.bf16 %v1940_v49, %v1939_v48  ;;  %v1914_v59 = vmul.f32 %v2796_v50, %v3703_v38  ;;  %v2797_v60 = vadd.f32 %v1873_v6, %v3698_v34  ;;  %v2767_v21 = vpop.f32.mrb[11].mxu0 }
 0x1ae   : > { %2334 = vst [vmem:[%s3722_s6 + $0x20] sm:$0xff] %v2329_v54  }
 0x1af   : > { %2331 = vst [vmem:[%s3722_s6 + $0x8] sm:$0xff] %v2314_v58   ;;  %v1931_v26 = vadd.f32 %v3708_v8, %v1914_v59  ;;  %v1915_v63 = vmul.f32 %v2797_v60, %v3703_v38 }
 0x1b1   : > { %v1932_v2 = vadd.f32 %v3708_v8, %v1915_v63  ;;  %v1941_v4 = vmax.f32 %v1931_v26, 0.0 }
 0x1b3   : > { %v1942_v32 = vmax.f32 %v1932_v2, 0.0 }
 0x1b5   : > { %v2319_v61 = vpack.c.bf16 %v1942_v32, %v1941_v4 }
 0x1b7   : > { %2332 = vst [vmem:[%s3722_s6 + $0x10] sm:$0xff] %v2319_v61  }
 0x1b8 PF: > { %s14_s15 = sadd.s32 1, %s3051_s15  }
 0x1b9   : > { %p11_p4 = scmp.ge.s32.totalorder %s14_s15, 4  }
 0x1bb   :  { %13 = sbr.rel (!%p11_p4) target bundleno = 1 (0x1), region = 74 }

</bundles_post_ra>
